<compile_context>
chip_gen: v5e
topology: v5e:2x2
jax: 0.10.0
libtpu: 0.0.40
codegen_flags: <defaults>
</compile_context>

<pallas_src>
import numpy as np
import jax
import jax.numpy as jnp
from jax import lax
from jax.experimental import pallas as pl
from jax.experimental.pallas import tpu as pltpu


# ----------------------------------------------------------------------------
# Pallas kernel: 4-bit unpack -> bf16 slab -> MXU GEMV, + (down_proj @ up) + bias
# ----------------------------------------------------------------------------
def _quant4_eora_kernel(x2_ref,      # (nchunks, 2, 8*rc) bf16  x hi/lo, chunk-permuted
                        dp_ref,      # (1, R)             bf16  x @ down (hoisted)
                        q_ref,       # (IN//8, OT)        uint32 4-bit packed weights
                        scales_ref,  # (1, OT)            f32
                        bias_ref,    # (1, OT)            f32   bias - zeros*sum(x)
                        up_ref,      # (R, OT)            bf16
                        o_ref,       # (1, OT)            f32
                        slab_ref):   # (2, 8*rc, OT)      bf16  dequant scratch (dbl buf)
    gp, o_tile = q_ref.shape
    nchunks, _, kdim = x2_ref.shape
    rc = kdim // 8                     # packed rows per chunk (16 -> K = 128)

    def process_chunk(c, slot, acc):
        base = pl.multiple_of(c * rc, rc)
        qc = q_ref[pl.ds(base, rc), :]                       # (rc, OT) uint32
        for k in range(8):                                   # fully unrolled
            if k == 0:
                nib = qc & 0xF                               # no shift
            elif k == 7:
                nib = qc >> 28                               # logical shift, no mask
            else:
                nib = (qc >> (4 * k)) & 0xF
            wf = pltpu.bitcast(nib, jnp.int32).astype(jnp.float32)
            slab_ref[slot, pl.ds(k * rc, rc), :] = wf.astype(jnp.bfloat16)
        # (2, K) x (K, OT) on the MXU, f32 accumulation; row0 = x_hi, row1 = x_lo
        return acc + jnp.dot(x2_ref[c], slab_ref[slot],
                             preferred_element_type=jnp.float32)

    acc0 = jnp.zeros((2, o_tile), jnp.float32)

    def pair_body(i, acc):                                   # 2 chunks / iteration so
        c0 = i * 2                                           # dequant(c+1) overlaps
        acc = process_chunk(c0, 0, acc)                      # the MXU feed of chunk c
        acc = process_chunk(c0 + 1, 1, acc)
        return acc

    acc = lax.fori_loop(0, nchunks // 2, pair_body, acc0)
    if nchunks % 2:
        acc = process_chunk(jnp.asarray(nchunks - 1, jnp.int32), 0, acc)

    acc_q = jnp.sum(acc, axis=0, keepdims=True)              # (1, OT) = (x_hi+x_lo)·q

    # EoRA low-rank path: (x @ down) @ up — down_proj hoisted to the wrapper.
    eora = jnp.dot(dp_ref[...], up_ref[...],
                   preferred_element_type=jnp.float32)        # (1, OT)

    o_ref[...] = bias_ref[...] + scales_ref[...] * acc_q + eora


# ----------------------------------------------------------------------------
# o_tile heuristic: largest 128-aligned tile fitting a v7x-safe VMEM budget,
# preferring an even number of tiles for megacore balance.
# ----------------------------------------------------------------------------
def _select_o_tile(outfeatures, gp, rank, requested):
    if requested is not None:
        o_tile = min(int(requested), outfeatures)
        if outfeatures % o_tile != 0 or (o_tile % 128 != 0 and o_tile != outfeatures):
            raise ValueError("o_tile must divide outfeatures and be 128-aligned.")
        return o_tile

    budget = 24 << 20  # 2x q tile + dequant slab + 2x up tile (v7x scoped-VMEM safe)

    def footprint(ot):
        return (2 * gp * ot * 4        # double-buffered q tile
                + 2 * 128 * ot * 2     # double-buffered bf16 dequant slab
                + 2 * rank * ot * 2    # double-buffered up tile
                + 8 * ot * 4)          # scales / bias / out

    cands = [c for c in (1024, 512, 256, 128)
             if c <= outfeatures and outfeatures % c == 0 and footprint(c) <= budget]
    if not cands:
        return outfeatures
    for c in cands:                    # prefer an even grid split
        if (outfeatures // c) % 2 == 0:
            return c
    return cands[0]


# ----------------------------------------------------------------------------
# Wrapper: reshapes / casts / BlockSpecs (all hot math lives in the kernel)
# ----------------------------------------------------------------------------
def quant4_eora_forward(x, qweight, scales, zeros, bias, down, up, o_tile=None):
    if x.shape[-1] != x.size:
        raise ValueError("Only supports a single token currently.")
    infeatures = int(x.shape[-1])
    outfeatures = int(bias.size)
    rank = int(down.shape[-1])
    if infeatures % 64 != 0:
        raise ValueError("infeatures must be a multiple of 64.")

    gp = infeatures // 8                      # packed int32 rows (8 vals each)
    rc = 16 if gp % 16 == 0 else 8            # packed rows per chunk
    nchunks = gp // rc
    kdim = 8 * rc                             # features per chunk (MXU K dim)

    o_tile = _select_o_tile(outfeatures, gp, rank, o_tile)
    grid = (outfeatures // o_tile,)

    dtype = x.dtype
    outshape = list(x.shape)
    outshape[-1] = outfeatures

    # quant path: bf16 hi/lo split of f32 x keeps ~f32 accuracy on the MXU
    x_f32 = x.reshape(1, infeatures).astype(jnp.float32)
    x_hi = x_f32.astype(jnp.bfloat16)
    x_lo = (x_f32 - x_hi.astype(jnp.float32)).astype(jnp.bfloat16)

    # permute so chunk c, slab row k*rc+i lines up with feature 8*(c*rc+i)+k
    def permute(v):
        return jnp.transpose(v.reshape(nchunks, rc, 8), (0, 2, 1)).reshape(nchunks, kdim)

    x2 = jnp.stack([permute(x_hi), permute(x_lo)], axis=1)    # (nchunks, 2, kdim)

    # EoRA down-projection is O-tile invariant -> hoisted out of the kernel.
    down_b = down.astype(jnp.bfloat16)
    up_b = up.astype(jnp.bfloat16)
    down_proj = jnp.dot(x_hi, down_b,
                        preferred_element_type=jnp.float32).astype(jnp.bfloat16)  # (1,R)

    scales2 = scales.reshape(1, outfeatures).astype(jnp.float32)
    zeros2 = zeros.reshape(1, outfeatures).astype(jnp.float32)
    # fold zeros * sum(x) into the bias (one fewer per-tile DMA + two VPU ops)
    bias_eff = (bias.reshape(1, outfeatures).astype(jnp.float32)
                - zeros2 * jnp.sum(x_f32))

    # uint32 view -> logical shifts in-kernel (no mask for nibble 7)
    qw = lax.bitcast_convert_type(
        qweight.reshape(gp, outfeatures).astype(jnp.int32), jnp.uint32)

    # VMEM budget: double-buffered per-tile inputs + single-buffered residents.
    tile_bytes = (gp * o_tile * 4          # q tile
                  + rank * o_tile * 2      # up tile
                  + 2 * o_tile * 4         # scales + bias_eff
                  + o_tile * 4)            # output tile
    resident_bytes = (nchunks * 2 * kdim * 2     # x2 (bf16)
                      + rank * 2                 # down_proj
                      + 2 * kdim * o_tile * 2)   # dequant slab scratch
    vmem_limit = int(min(2 * tile_bytes + resident_bytes + (16 << 20), 48 << 20))

    cost = pl.CostEstimate(
        flops=4 * infeatures * outfeatures            # hi + lo GEMV
              + 2 * rank * outfeatures,               # up matmul
        transcendentals=0,
        bytes_accessed=(infeatures * outfeatures // 2       # 4-bit weights
                        + 2 * outfeatures * 4               # scales / bias_eff
                        + rank * outfeatures * 2            # up (bf16)
                        + 2 * infeatures * 2 + rank * 2     # x2 + down_proj
                        + outfeatures * 4))                 # output

    const3 = lambda j: (0, 0, 0)          # resident across O tiles
    const2 = lambda j: (0, 0)
    otile = lambda j: (0, j)              # march over O tiles

    y = pl.pallas_call(
        _quant4_eora_kernel,
        out_shape=jax.ShapeDtypeStruct((1, outfeatures), jnp.float32),
        grid=grid,
        in_specs=[
            pl.BlockSpec((nchunks, 2, kdim), const3),   # x2 hi/lo (resident, lane-dense)
            pl.BlockSpec((1, rank), const2),            # down_proj (resident)
            pl.BlockSpec((gp, o_tile), otile),          # packed 4-bit weights
            pl.BlockSpec((1, o_tile), otile),           # scales
            pl.BlockSpec((1, o_tile), otile),           # bias - zeros*sum(x)
            pl.BlockSpec((rank, o_tile), otile),        # up tile
        ],
        out_specs=pl.BlockSpec((1, o_tile), otile),
        scratch_shapes=[pltpu.VMEM((2, kdim, o_tile), jnp.bfloat16)],
        compiler_params=pltpu.CompilerParams(
            dimension_semantics=("parallel",),          # megacore shards O tiles
            vmem_limit_bytes=vmem_limit),
        cost_estimate=cost,
    )(x2, down_proj, qw, scales2, bias_eff, up_b)

    return y.astype(dtype).reshape(outshape)


# ----------------------------------------------------------------------------
# Host-side 4-bit GPTQ packing (done once at weight-load time, not per forward)
# ----------------------------------------------------------------------------
def pack4(q_int):
    """Pack (IN, O) 4-bit values into (IN//8, O) int32, vecquant4matmul layout."""
    q = q_int.astype(np.uint32)
    in_f, out_f = q.shape
    qw = np.zeros((in_f // 8, out_f), dtype=np.uint32)
    for k in range(8):
        qw |= (q[k::8] & 0xF) << (4 * k)
    return qw.view(np.int32)


if __name__ == "__main__":
    infeatures, outfeatures, rank = 256, 2048, 64   # grid = 2 O-tiles of 1024

    key = jax.random.PRNGKey(0)
    k1, k2, k3, k4, k5, k6, k7 = jax.random.split(key, 7)

    # single token input (x.shape[-1] == x.numel())
    x = jax.random.normal(k1, (1, 1, infeatures), dtype=jnp.float32)

    # synthetic deterministic "checkpoint"
    q_int = np.asarray(jax.random.randint(k2, (infeatures, outfeatures), 0, 16,
                                          dtype=jnp.int32))
    qweight = jnp.asarray(pack4(q_int))                                   # (IN//8, O)
    scales = jax.random.uniform(k3, (1, outfeatures), minval=0.01, maxval=0.1)
    zeros = jax.random.uniform(k4, (1, outfeatures), minval=-0.1, maxval=0.1)
    bias = 0.1 * jax.random.normal(k5, (outfeatures,), dtype=jnp.float32)
    down = (0.05 * jax.random.normal(k6, (infeatures, rank))).astype(jnp.bfloat16)
    up = (0.05 * jax.random.normal(k7, (rank, outfeatures))).astype(jnp.bfloat16)

    y = quant4_eora_forward(x, qweight, scales, zeros, bias, down, up)
    y = jax.block_until_ready(y)

    # ---------------- numpy reference (same math, unpacked weights) ----------
    x_np = np.asarray(x, np.float64).reshape(1, infeatures)
    W = (np.asarray(scales, np.float64) * q_int.astype(np.float64)
         - np.asarray(zeros, np.float64))                                 # (IN, O)
    y_quant_ref = x_np @ W

    x_bf = np.asarray(jnp.asarray(x_np, jnp.float32)
                      .astype(jnp.bfloat16).astype(jnp.float32), np.float64)
    down_f = np.asarray(down.astype(jnp.float32), np.float64)
    up_f = np.asarray(up.astype(jnp.float32), np.float64)
    dp = x_bf @ down_f
    dp = np.asarray(jnp.asarray(dp, jnp.float32)
                    .astype(jnp.bfloat16).astype(jnp.float32), np.float64)
    eora_ref = dp @ up_f

    y_ref = (np.asarray(bias, np.float64).reshape(1, -1)
             + y_quant_ref + eora_ref).reshape(1, 1, outfeatures)

    np.testing.assert_allclose(np.asarray(y, np.float64), y_ref,
                               rtol=2e-3, atol=2e-3)
    print("KERNEL_OK")
</pallas_src>

<mosaic_0001>
module attributes {stable_mosaic.version = 11 : i64} {
  func.func @_quant4_eora_kernel(%arg0: i32, %arg1: memref<2x2x128xbf16, #tpu.memory_space<vmem>>, %arg2: memref<1x64xbf16, #tpu.memory_space<vmem>>, %arg3: memref<32x1024xi32, #tpu.memory_space<vmem>>, %arg4: memref<1x1024xf32, #tpu.memory_space<vmem>>, %arg5: memref<1x1024xf32, #tpu.memory_space<vmem>>, %arg6: memref<64x1024xbf16, #tpu.memory_space<vmem>>, %arg7: memref<1x1024xf32, #tpu.memory_space<vmem>>, %arg8: memref<2x128x1024xbf16, #tpu.memory_space<vmem>>) attributes {dimension_semantics = [#tpu.dimension_semantics<parallel>], iteration_bounds = array<i64: 2>, scalar_prefetch = 0 : i64, scratch_operands = 1 : i64, tpu.core_type = #tpu.core_type<tc>, window_params = [{pipeline_mode = #tpu.pipeline_mode<synchronous>, transform_indices = @transform_0, window_bounds = array<i64: 2, 2, 128>}, {pipeline_mode = #tpu.pipeline_mode<synchronous>, transform_indices = @transform_1, window_bounds = array<i64: 1, 64>}, {transform_indices = @transform_2, window_bounds = array<i64: 32, 1024>}, {transform_indices = @transform_3, window_bounds = array<i64: 1, 1024>}, {transform_indices = @transform_4, window_bounds = array<i64: 1, 1024>}, {transform_indices = @transform_5, window_bounds = array<i64: 64, 1024>}, {transform_indices = @transform_6, window_bounds = array<i64: 1, 1024>}]} {
    %cst = arith.constant 0.000000e+00 : f32
    %0 = vector.broadcast %cst : f32 to vector<2x1024xf32>
    %c0_i32 = arith.constant 0 : i32
    %c2_i32 = arith.constant 2 : i32
    %1 = arith.muli %c0_i32, %c2_i32 : i32
    %c16_i32 = arith.constant 16 : i32
    %2 = arith.muli %1, %c16_i32 : i32
    %3 = tpu.assume_multiple %2, 16 : i32
    %4 = arith.index_cast %3 : i32 to index
    %c0 = arith.constant 0 : index
    %5 = vector.load %arg3[%4, %c0] : memref<32x1024xi32, #tpu.memory_space<vmem>>, vector<16x1024xi32>
    %c15_i32 = arith.constant 15 : i32
    %6 = vector.broadcast %c15_i32 : i32 to vector<16x1024xi32>
    %7 = arith.andi %5, %6 : vector<16x1024xi32>
    %8 = tpu.bitcast %7 : vector<16x1024xi32> -> vector<16x1024xi32>
    %9 = arith.sitofp %8 : vector<16x1024xi32> to vector<16x1024xf32>
    %10 = arith.truncf %9 : vector<16x1024xf32> to vector<16x1024xbf16>
    %c0_0 = arith.constant 0 : index
    %c0_1 = arith.constant 0 : index
    %c0_2 = arith.constant 0 : index
    %11 = vector.load %arg8[%c0_0, %c0_1, %c0_2] : memref<2x128x1024xbf16, #tpu.memory_space<vmem>>, vector<1x16x1024xbf16>
    %12 = vector.shape_cast %11 : vector<1x16x1024xbf16> to vector<16x1024xbf16>
    %13 = vector.shape_cast %10 : vector<16x1024xbf16> to vector<1x16x1024xbf16>
    tpu.vector_store %arg8[%c0_0, %c0_1, %c0_2], %13 {strides = array<i32>} : memref<2x128x1024xbf16, #tpu.memory_space<vmem>>, vector<1x16x1024xbf16>,
    %c4_i32 = arith.constant 4 : i32
    %14 = vector.broadcast %c4_i32 : i32 to vector<16x1024xi32>
    %15 = arith.shrui %5, %14 : vector<16x1024xi32>
    %c15_i32_3 = arith.constant 15 : i32
    %16 = vector.broadcast %c15_i32_3 : i32 to vector<16x1024xi32>
    %17 = arith.andi %15, %16 : vector<16x1024xi32>
    %18 = tpu.bitcast %17 : vector<16x1024xi32> -> vector<16x1024xi32>
    %19 = arith.sitofp %18 : vector<16x1024xi32> to vector<16x1024xf32>
    %20 = arith.truncf %19 : vector<16x1024xf32> to vector<16x1024xbf16>
    %c0_4 = arith.constant 0 : index
    %c16 = arith.constant 16 : index
    %c0_5 = arith.constant 0 : index
    %21 = vector.load %arg8[%c0_4, %c16, %c0_5] : memref<2x128x1024xbf16, #tpu.memory_space<vmem>>, vector<1x16x1024xbf16>
    %22 = vector.shape_cast %21 : vector<1x16x1024xbf16> to vector<16x1024xbf16>
    %23 = vector.shape_cast %20 : vector<16x1024xbf16> to vector<1x16x1024xbf16>
    tpu.vector_store %arg8[%c0_4, %c16, %c0_5], %23 {strides = array<i32>} : memref<2x128x1024xbf16, #tpu.memory_space<vmem>>, vector<1x16x1024xbf16>,
    %c8_i32 = arith.constant 8 : i32
    %24 = vector.broadcast %c8_i32 : i32 to vector<16x1024xi32>
    %25 = arith.shrui %5, %24 : vector<16x1024xi32>
    %c15_i32_6 = arith.constant 15 : i32
    %26 = vector.broadcast %c15_i32_6 : i32 to vector<16x1024xi32>
    %27 = arith.andi %25, %26 : vector<16x1024xi32>
    %28 = tpu.bitcast %27 : vector<16x1024xi32> -> vector<16x1024xi32>
    %29 = arith.sitofp %28 : vector<16x1024xi32> to vector<16x1024xf32>
    %30 = arith.truncf %29 : vector<16x1024xf32> to vector<16x1024xbf16>
    %c0_7 = arith.constant 0 : index
    %c32 = arith.constant 32 : index
    %c0_8 = arith.constant 0 : index
    %31 = vector.load %arg8[%c0_7, %c32, %c0_8] : memref<2x128x1024xbf16, #tpu.memory_space<vmem>>, vector<1x16x1024xbf16>
    %32 = vector.shape_cast %31 : vector<1x16x1024xbf16> to vector<16x1024xbf16>
    %33 = vector.shape_cast %30 : vector<16x1024xbf16> to vector<1x16x1024xbf16>
    tpu.vector_store %arg8[%c0_7, %c32, %c0_8], %33 {strides = array<i32>} : memref<2x128x1024xbf16, #tpu.memory_space<vmem>>, vector<1x16x1024xbf16>,
    %c12_i32 = arith.constant 12 : i32
    %34 = vector.broadcast %c12_i32 : i32 to vector<16x1024xi32>
    %35 = arith.shrui %5, %34 : vector<16x1024xi32>
    %c15_i32_9 = arith.constant 15 : i32
    %36 = vector.broadcast %c15_i32_9 : i32 to vector<16x1024xi32>
    %37 = arith.andi %35, %36 : vector<16x1024xi32>
    %38 = tpu.bitcast %37 : vector<16x1024xi32> -> vector<16x1024xi32>
    %39 = arith.sitofp %38 : vector<16x1024xi32> to vector<16x1024xf32>
    %40 = arith.truncf %39 : vector<16x1024xf32> to vector<16x1024xbf16>
    %c0_10 = arith.constant 0 : index
    %c48 = arith.constant 48 : index
    %c0_11 = arith.constant 0 : index
    %41 = vector.load %arg8[%c0_10, %c48, %c0_11] : memref<2x128x1024xbf16, #tpu.memory_space<vmem>>, vector<1x16x1024xbf16>
    %42 = vector.shape_cast %41 : vector<1x16x1024xbf16> to vector<16x1024xbf16>
    %43 = vector.shape_cast %40 : vector<16x1024xbf16> to vector<1x16x1024xbf16>
    tpu.vector_store %arg8[%c0_10, %c48, %c0_11], %43 {strides = array<i32>} : memref<2x128x1024xbf16, #tpu.memory_space<vmem>>, vector<1x16x1024xbf16>,
    %c16_i32_12 = arith.constant 16 : i32
    %44 = vector.broadcast %c16_i32_12 : i32 to vector<16x1024xi32>
    %45 = arith.shrui %5, %44 : vector<16x1024xi32>
    %c15_i32_13 = arith.constant 15 : i32
    %46 = vector.broadcast %c15_i32_13 : i32 to vector<16x1024xi32>
    %47 = arith.andi %45, %46 : vector<16x1024xi32>
    %48 = tpu.bitcast %47 : vector<16x1024xi32> -> vector<16x1024xi32>
    %49 = arith.sitofp %48 : vector<16x1024xi32> to vector<16x1024xf32>
    %50 = arith.truncf %49 : vector<16x1024xf32> to vector<16x1024xbf16>
    %c0_14 = arith.constant 0 : index
    %c64 = arith.constant 64 : index
    %c0_15 = arith.constant 0 : index
    %51 = vector.load %arg8[%c0_14, %c64, %c0_15] : memref<2x128x1024xbf16, #tpu.memory_space<vmem>>, vector<1x16x1024xbf16>
    %52 = vector.shape_cast %51 : vector<1x16x1024xbf16> to vector<16x1024xbf16>
    %53 = vector.shape_cast %50 : vector<16x1024xbf16> to vector<1x16x1024xbf16>
    tpu.vector_store %arg8[%c0_14, %c64, %c0_15], %53 {strides = array<i32>} : memref<2x128x1024xbf16, #tpu.memory_space<vmem>>, vector<1x16x1024xbf16>,
    %c20_i32 = arith.constant 20 : i32
    %54 = vector.broadcast %c20_i32 : i32 to vector<16x1024xi32>
    %55 = arith.shrui %5, %54 : vector<16x1024xi32>
    %c15_i32_16 = arith.constant 15 : i32
    %56 = vector.broadcast %c15_i32_16 : i32 to vector<16x1024xi32>
    %57 = arith.andi %55, %56 : vector<16x1024xi32>
    %58 = tpu.bitcast %57 : vector<16x1024xi32> -> vector<16x1024xi32>
    %59 = arith.sitofp %58 : vector<16x1024xi32> to vector<16x1024xf32>
    %60 = arith.truncf %59 : vector<16x1024xf32> to vector<16x1024xbf16>
    %c0_17 = arith.constant 0 : index
    %c80 = arith.constant 80 : index
    %c0_18 = arith.constant 0 : index
    %61 = vector.load %arg8[%c0_17, %c80, %c0_18] : memref<2x128x1024xbf16, #tpu.memory_space<vmem>>, vector<1x16x1024xbf16>
    %62 = vector.shape_cast %61 : vector<1x16x1024xbf16> to vector<16x1024xbf16>
    %63 = vector.shape_cast %60 : vector<16x1024xbf16> to vector<1x16x1024xbf16>
    tpu.vector_store %arg8[%c0_17, %c80, %c0_18], %63 {strides = array<i32>} : memref<2x128x1024xbf16, #tpu.memory_space<vmem>>, vector<1x16x1024xbf16>,
    %c24_i32 = arith.constant 24 : i32
    %64 = vector.broadcast %c24_i32 : i32 to vector<16x1024xi32>
    %65 = arith.shrui %5, %64 : vector<16x1024xi32>
    %c15_i32_19 = arith.constant 15 : i32
    %66 = vector.broadcast %c15_i32_19 : i32 to vector<16x1024xi32>
    %67 = arith.andi %65, %66 : vector<16x1024xi32>
    %68 = tpu.bitcast %67 : vector<16x1024xi32> -> vector<16x1024xi32>
    %69 = arith.sitofp %68 : vector<16x1024xi32> to vector<16x1024xf32>
    %70 = arith.truncf %69 : vector<16x1024xf32> to vector<16x1024xbf16>
    %c0_20 = arith.constant 0 : index
    %c96 = arith.constant 96 : index
    %c0_21 = arith.constant 0 : index
    %71 = vector.load %arg8[%c0_20, %c96, %c0_21] : memref<2x128x1024xbf16, #tpu.memory_space<vmem>>, vector<1x16x1024xbf16>
    %72 = vector.shape_cast %71 : vector<1x16x1024xbf16> to vector<16x1024xbf16>
    %73 = vector.shape_cast %70 : vector<16x1024xbf16> to vector<1x16x1024xbf16>
    tpu.vector_store %arg8[%c0_20, %c96, %c0_21], %73 {strides = array<i32>} : memref<2x128x1024xbf16, #tpu.memory_space<vmem>>, vector<1x16x1024xbf16>,
    %c28_i32 = arith.constant 28 : i32
    %74 = vector.broadcast %c28_i32 : i32 to vector<16x1024xi32>
    %75 = arith.shrui %5, %74 : vector<16x1024xi32>
    %76 = tpu.bitcast %75 : vector<16x1024xi32> -> vector<16x1024xi32>
    %77 = arith.sitofp %76 : vector<16x1024xi32> to vector<16x1024xf32>
    %78 = arith.truncf %77 : vector<16x1024xf32> to vector<16x1024xbf16>
    %c0_22 = arith.constant 0 : index
    %c112 = arith.constant 112 : index
    %c0_23 = arith.constant 0 : index
    %79 = vector.load %arg8[%c0_22, %c112, %c0_23] : memref<2x128x1024xbf16, #tpu.memory_space<vmem>>, vector<1x16x1024xbf16>
    %80 = vector.shape_cast %79 : vector<1x16x1024xbf16> to vector<16x1024xbf16>
    %81 = vector.shape_cast %78 : vector<16x1024xbf16> to vector<1x16x1024xbf16>
    tpu.vector_store %arg8[%c0_22, %c112, %c0_23], %81 {strides = array<i32>} : memref<2x128x1024xbf16, #tpu.memory_space<vmem>>, vector<1x16x1024xbf16>,
    %82 = arith.index_cast %1 : i32 to index
    %c0_24 = arith.constant 0 : index
    %c0_25 = arith.constant 0 : index
    %83 = vector.load %arg1[%82, %c0_24, %c0_25] : memref<2x2x128xbf16, #tpu.memory_space<vmem>>, vector<1x2x128xbf16>
    %84 = vector.shape_cast %83 : vector<1x2x128xbf16> to vector<2x128xbf16>
    %c0_26 = arith.constant 0 : index
    %c0_27 = arith.constant 0 : index
    %c0_28 = arith.constant 0 : index
    %85 = vector.load %arg8[%c0_26, %c0_27, %c0_28] : memref<2x128x1024xbf16, #tpu.memory_space<vmem>>, vector<1x128x1024xbf16>
    %86 = vector.shape_cast %85 : vector<1x128x1024xbf16> to vector<128x1024xbf16>
    %cst_29 = arith.constant dense<0.000000e+00> : vector<2x1024xf32>
    %87 = tpu.matmul %84, %86, %cst_29 {dimension_numbers = #tpu.dot_dimension_numbers<[1], [0], [0], [1], [0, 0, 1, 1], [], []>} : vector<2x128xbf16>, vector<128x1024xbf16>, vector<2x1024xf32> -> vector<2x1024xf32>
    %88 = arith.addf %0, %87 : vector<2x1024xf32>
    %c1_i32 = arith.constant 1 : i32
    %89 = arith.addi %1, %c1_i32 : i32
    %c16_i32_30 = arith.constant 16 : i32
    %90 = arith.muli %89, %c16_i32_30 : i32
    %91 = tpu.assume_multiple %90, 16 : i32
    %92 = arith.index_cast %91 : i32 to index
    %c0_31 = arith.constant 0 : index
    %93 = vector.load %arg3[%92, %c0_31] : memref<32x1024xi32, #tpu.memory_space<vmem>>, vector<16x1024xi32>
    %c15_i32_32 = arith.constant 15 : i32
    %94 = vector.broadcast %c15_i32_32 : i32 to vector<16x1024xi32>
    %95 = arith.andi %93, %94 : vector<16x1024xi32>
    %96 = tpu.bitcast %95 : vector<16x1024xi32> -> vector<16x1024xi32>
    %97 = arith.sitofp %96 : vector<16x1024xi32> to vector<16x1024xf32>
    %98 = arith.truncf %97 : vector<16x1024xf32> to vector<16x1024xbf16>
    %c1 = arith.constant 1 : index
    %c0_33 = arith.constant 0 : index
    %c0_34 = arith.constant 0 : index
    %99 = vector.load %arg8[%c1, %c0_33, %c0_34] : memref<2x128x1024xbf16, #tpu.memory_space<vmem>>, vector<1x16x1024xbf16>
    %100 = vector.shape_cast %99 : vector<1x16x1024xbf16> to vector<16x1024xbf16>
    %101 = vector.shape_cast %98 : vector<16x1024xbf16> to vector<1x16x1024xbf16>
    tpu.vector_store %arg8[%c1, %c0_33, %c0_34], %101 {strides = array<i32>} : memref<2x128x1024xbf16, #tpu.memory_space<vmem>>, vector<1x16x1024xbf16>,
    %c4_i32_35 = arith.constant 4 : i32
    %102 = vector.broadcast %c4_i32_35 : i32 to vector<16x1024xi32>
    %103 = arith.shrui %93, %102 : vector<16x1024xi32>
    %c15_i32_36 = arith.constant 15 : i32
    %104 = vector.broadcast %c15_i32_36 : i32 to vector<16x1024xi32>
    %105 = arith.andi %103, %104 : vector<16x1024xi32>
    %106 = tpu.bitcast %105 : vector<16x1024xi32> -> vector<16x1024xi32>
    %107 = arith.sitofp %106 : vector<16x1024xi32> to vector<16x1024xf32>
    %108 = arith.truncf %107 : vector<16x1024xf32> to vector<16x1024xbf16>
    %c1_37 = arith.constant 1 : index
    %c16_38 = arith.constant 16 : index
    %c0_39 = arith.constant 0 : index
    %109 = vector.load %arg8[%c1_37, %c16_38, %c0_39] : memref<2x128x1024xbf16, #tpu.memory_space<vmem>>, vector<1x16x1024xbf16>
    %110 = vector.shape_cast %109 : vector<1x16x1024xbf16> to vector<16x1024xbf16>
    %111 = vector.shape_cast %108 : vector<16x1024xbf16> to vector<1x16x1024xbf16>
    tpu.vector_store %arg8[%c1_37, %c16_38, %c0_39], %111 {strides = array<i32>} : memref<2x128x1024xbf16, #tpu.memory_space<vmem>>, vector<1x16x1024xbf16>,
    %c8_i32_40 = arith.constant 8 : i32
    %112 = vector.broadcast %c8_i32_40 : i32 to vector<16x1024xi32>
    %113 = arith.shrui %93, %112 : vector<16x1024xi32>
    %c15_i32_41 = arith.constant 15 : i32
    %114 = vector.broadcast %c15_i32_41 : i32 to vector<16x1024xi32>
    %115 = arith.andi %113, %114 : vector<16x1024xi32>
    %116 = tpu.bitcast %115 : vector<16x1024xi32> -> vector<16x1024xi32>
    %117 = arith.sitofp %116 : vector<16x1024xi32> to vector<16x1024xf32>
    %118 = arith.truncf %117 : vector<16x1024xf32> to vector<16x1024xbf16>
    %c1_42 = arith.constant 1 : index
    %c32_43 = arith.constant 32 : index
    %c0_44 = arith.constant 0 : index
    %119 = vector.load %arg8[%c1_42, %c32_43, %c0_44] : memref<2x128x1024xbf16, #tpu.memory_space<vmem>>, vector<1x16x1024xbf16>
    %120 = vector.shape_cast %119 : vector<1x16x1024xbf16> to vector<16x1024xbf16>
    %121 = vector.shape_cast %118 : vector<16x1024xbf16> to vector<1x16x1024xbf16>
    tpu.vector_store %arg8[%c1_42, %c32_43, %c0_44], %121 {strides = array<i32>} : memref<2x128x1024xbf16, #tpu.memory_space<vmem>>, vector<1x16x1024xbf16>,
    %c12_i32_45 = arith.constant 12 : i32
    %122 = vector.broadcast %c12_i32_45 : i32 to vector<16x1024xi32>
    %123 = arith.shrui %93, %122 : vector<16x1024xi32>
    %c15_i32_46 = arith.constant 15 : i32
    %124 = vector.broadcast %c15_i32_46 : i32 to vector<16x1024xi32>
    %125 = arith.andi %123, %124 : vector<16x1024xi32>
    %126 = tpu.bitcast %125 : vector<16x1024xi32> -> vector<16x1024xi32>
    %127 = arith.sitofp %126 : vector<16x1024xi32> to vector<16x1024xf32>
    %128 = arith.truncf %127 : vector<16x1024xf32> to vector<16x1024xbf16>
    %c1_47 = arith.constant 1 : index
    %c48_48 = arith.constant 48 : index
    %c0_49 = arith.constant 0 : index
    %129 = vector.load %arg8[%c1_47, %c48_48, %c0_49] : memref<2x128x1024xbf16, #tpu.memory_space<vmem>>, vector<1x16x1024xbf16>
    %130 = vector.shape_cast %129 : vector<1x16x1024xbf16> to vector<16x1024xbf16>
    %131 = vector.shape_cast %128 : vector<16x1024xbf16> to vector<1x16x1024xbf16>
    tpu.vector_store %arg8[%c1_47, %c48_48, %c0_49], %131 {strides = array<i32>} : memref<2x128x1024xbf16, #tpu.memory_space<vmem>>, vector<1x16x1024xbf16>,
    %c16_i32_50 = arith.constant 16 : i32
    %132 = vector.broadcast %c16_i32_50 : i32 to vector<16x1024xi32>
    %133 = arith.shrui %93, %132 : vector<16x1024xi32>
    %c15_i32_51 = arith.constant 15 : i32
    %134 = vector.broadcast %c15_i32_51 : i32 to vector<16x1024xi32>
    %135 = arith.andi %133, %134 : vector<16x1024xi32>
    %136 = tpu.bitcast %135 : vector<16x1024xi32> -> vector<16x1024xi32>
    %137 = arith.sitofp %136 : vector<16x1024xi32> to vector<16x1024xf32>
    %138 = arith.truncf %137 : vector<16x1024xf32> to vector<16x1024xbf16>
    %c1_52 = arith.constant 1 : index
    %c64_53 = arith.constant 64 : index
    %c0_54 = arith.constant 0 : index
    %139 = vector.load %arg8[%c1_52, %c64_53, %c0_54] : memref<2x128x1024xbf16, #tpu.memory_space<vmem>>, vector<1x16x1024xbf16>
    %140 = vector.shape_cast %139 : vector<1x16x1024xbf16> to vector<16x1024xbf16>
    %141 = vector.shape_cast %138 : vector<16x1024xbf16> to vector<1x16x1024xbf16>
    tpu.vector_store %arg8[%c1_52, %c64_53, %c0_54], %141 {strides = array<i32>} : memref<2x128x1024xbf16, #tpu.memory_space<vmem>>, vector<1x16x1024xbf16>,
    %c20_i32_55 = arith.constant 20 : i32
    %142 = vector.broadcast %c20_i32_55 : i32 to vector<16x1024xi32>
    %143 = arith.shrui %93, %142 : vector<16x1024xi32>
    %c15_i32_56 = arith.constant 15 : i32
    %144 = vector.broadcast %c15_i32_56 : i32 to vector<16x1024xi32>
    %145 = arith.andi %143, %144 : vector<16x1024xi32>
    %146 = tpu.bitcast %145 : vector<16x1024xi32> -> vector<16x1024xi32>
    %147 = arith.sitofp %146 : vector<16x1024xi32> to vector<16x1024xf32>
    %148 = arith.truncf %147 : vector<16x1024xf32> to vector<16x1024xbf16>
    %c1_57 = arith.constant 1 : index
    %c80_58 = arith.constant 80 : index
    %c0_59 = arith.constant 0 : index
    %149 = vector.load %arg8[%c1_57, %c80_58, %c0_59] : memref<2x128x1024xbf16, #tpu.memory_space<vmem>>, vector<1x16x1024xbf16>
    %150 = vector.shape_cast %149 : vector<1x16x1024xbf16> to vector<16x1024xbf16>
    %151 = vector.shape_cast %148 : vector<16x1024xbf16> to vector<1x16x1024xbf16>
    tpu.vector_store %arg8[%c1_57, %c80_58, %c0_59], %151 {strides = array<i32>} : memref<2x128x1024xbf16, #tpu.memory_space<vmem>>, vector<1x16x1024xbf16>,
    %c24_i32_60 = arith.constant 24 : i32
    %152 = vector.broadcast %c24_i32_60 : i32 to vector<16x1024xi32>
    %153 = arith.shrui %93, %152 : vector<16x1024xi32>
    %c15_i32_61 = arith.constant 15 : i32
    %154 = vector.broadcast %c15_i32_61 : i32 to vector<16x1024xi32>
    %155 = arith.andi %153, %154 : vector<16x1024xi32>
    %156 = tpu.bitcast %155 : vector<16x1024xi32> -> vector<16x1024xi32>
    %157 = arith.sitofp %156 : vector<16x1024xi32> to vector<16x1024xf32>
    %158 = arith.truncf %157 : vector<16x1024xf32> to vector<16x1024xbf16>
    %c1_62 = arith.constant 1 : index
    %c96_63 = arith.constant 96 : index
    %c0_64 = arith.constant 0 : index
    %159 = vector.load %arg8[%c1_62, %c96_63, %c0_64] : memref<2x128x1024xbf16, #tpu.memory_space<vmem>>, vector<1x16x1024xbf16>
    %160 = vector.shape_cast %159 : vector<1x16x1024xbf16> to vector<16x1024xbf16>
    %161 = vector.shape_cast %158 : vector<16x1024xbf16> to vector<1x16x1024xbf16>
    tpu.vector_store %arg8[%c1_62, %c96_63, %c0_64], %161 {strides = array<i32>} : memref<2x128x1024xbf16, #tpu.memory_space<vmem>>, vector<1x16x1024xbf16>,
    %c28_i32_65 = arith.constant 28 : i32
    %162 = vector.broadcast %c28_i32_65 : i32 to vector<16x1024xi32>
    %163 = arith.shrui %93, %162 : vector<16x1024xi32>
    %164 = tpu.bitcast %163 : vector<16x1024xi32> -> vector<16x1024xi32>
    %165 = arith.sitofp %164 : vector<16x1024xi32> to vector<16x1024xf32>
    %166 = arith.truncf %165 : vector<16x1024xf32> to vector<16x1024xbf16>
    %c1_66 = arith.constant 1 : index
    %c112_67 = arith.constant 112 : index
    %c0_68 = arith.constant 0 : index
    %167 = vector.load %arg8[%c1_66, %c112_67, %c0_68] : memref<2x128x1024xbf16, #tpu.memory_space<vmem>>, vector<1x16x1024xbf16>
    %168 = vector.shape_cast %167 : vector<1x16x1024xbf16> to vector<16x1024xbf16>
    %169 = vector.shape_cast %166 : vector<16x1024xbf16> to vector<1x16x1024xbf16>
    tpu.vector_store %arg8[%c1_66, %c112_67, %c0_68], %169 {strides = array<i32>} : memref<2x128x1024xbf16, #tpu.memory_space<vmem>>, vector<1x16x1024xbf16>,
    %170 = arith.index_cast %89 : i32 to index
    %c0_69 = arith.constant 0 : index
    %c0_70 = arith.constant 0 : index
    %171 = vector.load %arg1[%170, %c0_69, %c0_70] : memref<2x2x128xbf16, #tpu.memory_space<vmem>>, vector<1x2x128xbf16>
    %172 = vector.shape_cast %171 : vector<1x2x128xbf16> to vector<2x128xbf16>
    %c1_71 = arith.constant 1 : index
    %c0_72 = arith.constant 0 : index
    %c0_73 = arith.constant 0 : index
    %173 = vector.load %arg8[%c1_71, %c0_72, %c0_73] : memref<2x128x1024xbf16, #tpu.memory_space<vmem>>, vector<1x128x1024xbf16>
    %174 = vector.shape_cast %173 : vector<1x128x1024xbf16> to vector<128x1024xbf16>
    %cst_74 = arith.constant dense<0.000000e+00> : vector<2x1024xf32>
    %175 = tpu.matmul %172, %174, %cst_74 {dimension_numbers = #tpu.dot_dimension_numbers<[1], [0], [0], [1], [0, 0, 1, 1], [], []>} : vector<2x128xbf16>, vector<128x1024xbf16>, vector<2x1024xf32> -> vector<2x1024xf32>
    %176 = arith.addf %88, %175 : vector<2x1024xf32>
    %c1_i32_75 = arith.constant 1 : i32
    %cst_76 = arith.constant dense<0.000000e+00> : vector<1024xf32>
    %177 = vector.multi_reduction <add>, %176, %cst_76 [0] : vector<2x1024xf32> to vector<1024xf32>
    %178 = vector.shape_cast %177 : vector<1024xf32> to vector<1x1024xf32>
    %c0_77 = arith.constant 0 : index
    %c0_78 = arith.constant 0 : index
    %179 = vector.load %arg2[%c0_77, %c0_78] : memref<1x64xbf16, #tpu.memory_space<vmem>>, vector<1x64xbf16>
    %c0_79 = arith.constant 0 : index
    %c0_80 = arith.constant 0 : index
    %180 = vector.load %arg6[%c0_79, %c0_80] : memref<64x1024xbf16, #tpu.memory_space<vmem>>, vector<64x1024xbf16>
    %cst_81 = arith.constant dense<0.000000e+00> : vector<1x1024xf32>
    %181 = tpu.matmul %179, %180, %cst_81 {dimension_numbers = #tpu.dot_dimension_numbers<[1], [0], [0], [1], [0, 0, 1, 1], [], []>} : vector<1x64xbf16>, vector<64x1024xbf16>, vector<1x1024xf32> -> vector<1x1024xf32>
    %c0_82 = arith.constant 0 : index
    %c0_83 = arith.constant 0 : index
    %182 = vector.load %arg5[%c0_82, %c0_83] : memref<1x1024xf32, #tpu.memory_space<vmem>>, vector<1x1024xf32>
    %c0_84 = arith.constant 0 : index
    %c0_85 = arith.constant 0 : index
    %183 = vector.load %arg4[%c0_84, %c0_85] : memref<1x1024xf32, #tpu.memory_space<vmem>>, vector<1x1024xf32>
    %184 = arith.mulf %183, %178 : vector<1x1024xf32>
    %185 = arith.addf %182, %184 : vector<1x1024xf32>
    %186 = arith.addf %185, %181 : vector<1x1024xf32>
    %c0_86 = arith.constant 0 : index
    %c0_87 = arith.constant 0 : index
    %187 = vector.load %arg7[%c0_86, %c0_87] : memref<1x1024xf32, #tpu.memory_space<vmem>>, vector<1x1024xf32>
    tpu.vector_store %arg7[%c0_86, %c0_87], %186 {strides = array<i32>} : memref<1x1024xf32, #tpu.memory_space<vmem>>, vector<1x1024xf32>,
    return
  }
  func.func @transform_0(%arg0: i32) -> (i32, i32, i32) {
    %c0_i32 = arith.constant 0 : i32
    %c0_i32_0 = arith.constant 0 : i32
    %c0_i32_1 = arith.constant 0 : i32
    %c0_i32_2 = arith.constant 0 : i32
    return %c0_i32, %c0_i32_0, %c0_i32_1 : i32, i32, i32
  }
  func.func @transform_1(%arg0: i32) -> (i32, i32) {
    %c0_i32 = arith.constant 0 : i32
    %c0_i32_0 = arith.constant 0 : i32
    %c0_i32_1 = arith.constant 0 : i32
    return %c0_i32, %c0_i32_0 : i32, i32
  }
  func.func @transform_2(%arg0: i32) -> (i32, i32) {
    %c0_i32 = arith.constant 0 : i32
    %c0_i32_0 = arith.constant 0 : i32
    return %c0_i32, %arg0 : i32, i32
  }
  func.func @transform_3(%arg0: i32) -> (i32, i32) {
    %c0_i32 = arith.constant 0 : i32
    %c0_i32_0 = arith.constant 0 : i32
    return %c0_i32, %arg0 : i32, i32
  }
  func.func @transform_4(%arg0: i32) -> (i32, i32) {
    %c0_i32 = arith.constant 0 : i32
    %c0_i32_0 = arith.constant 0 : i32
    return %c0_i32, %arg0 : i32, i32
  }
  func.func @transform_5(%arg0: i32) -> (i32, i32) {
    %c0_i32 = arith.constant 0 : i32
    %c0_i32_0 = arith.constant 0 : i32
    return %c0_i32, %arg0 : i32, i32
  }
  func.func @transform_6(%arg0: i32) -> (i32, i32) {
    %c0_i32 = arith.constant 0 : i32
    %c0_i32_0 = arith.constant 0 : i32
    return %c0_i32, %arg0 : i32, i32
  }
}

</mosaic_0001>

<bundles_post_ra>
// kernel: tpu_custom_call.1
= control target key start
LH: loop header
LB: loop body
LE: loop exit
PB: predicated region body
PF: predicated region fallthrough
CT: control target
= control target key end

     0   :  { %s4958_s0 = inlined_call_operand.hbm [shape: bf16[2,2,128], index: 0, kind: input, shape index: {}]   ;;  %s4959_s1 = inlined_call_operand.hbm [shape: bf16[1,64], index: 1, kind: input, shape index: {}]   ;;  %s4960_s2 = inlined_call_operand.hbm [shape: u32[32,2048], index: 2, kind: input, shape index: {}]   ;;  %s4961_s3 = inlined_call_operand.hbm [shape: f32[1,2048], index: 3, kind: input, shape index: {}]   ;;  %s4962_s4 = inlined_call_operand.hbm [shape: f32[1,2048], index: 4, kind: input, shape index: {}]   ;;  %s4963_s5 = inlined_call_operand.hbm [shape: bf16[64,2048], index: 5, kind: input, shape index: {}]   ;;  %s4964_s6 = inlined_call_operand.hbm [shape: f32[1,2048], index: 6, kind: output, shape index: {}]  }
   0x1   :  { %4973 = sst [smem:[#allocation22_spill]] %s4958_s0 }
   0x2   :  { %4974 = sst [smem:[#allocation23_spill]] %s4960_s2 }
   0x3   :  { %11 = vsyncpa [#allocation4], 0 }
   0x4   :  { %12 = vsyncpa [#allocation7], 0 }
   0x5   :  { %13 = vsyncpa [#allocation5], 0 }
   0x6   :  { %15 = vsyncpa [#allocation5 + $0x1], 0  ;;  %s4220_s21 = smov 0   ;;  %s4222_s22 = smov 0  }
   0x7   :  { %s4224_s23 = smov 0   ;;  %s4226_s24 = smov 0  }
   0x8 LB: > { %4975 = sst [smem:[#allocation17_spill]] %s4162_s21  ;;  %s4241_s25 = sadd.s32 4294967295, %s4174_s24   ;;  %s4174_s24 = sphi %s4226_s24, %s4998_s24   ;;  %s4170_s23 = sphi %s4224_s23, %s5002_s23   ;;  %s4166_s22 = sphi %s4222_s22, %s5001_s22   ;;  %s4162_s21 = sphi %s4220_s21, %s5000_s21  }
   0x9   : > { %s2978_s26 = sadd.s32 4294967294, %s4174_s24   ;;  %s4245_s27 = sadd.s32 1, %s4174_s24  }
   0xa   : > { %4976 = sst [smem:[#allocation18_spill]] %s4245_s27  ;;  %s70_s28 = sadd.s32 1, %s4170_s23 }
   0xb   : > { %s67_s29 = ssub.s32 %s4174_s24, %s4245_s27  ;;  %p77_p0 = scmp.ne.s32.totalorder %s4170_s23, %s4166_s22 }
   0xc   : > { %p68_p1 = scmp.eq.s32.totalorder %s67_s29, 0  ;;  %p78_p2 = scmp.eq.s32.totalorder %s4174_s24, 0 }
   0xd   : > { %p83_p3 = scmp.ne.s32.totalorder %s4166_s22, %s4162_s21  ;;  %p4966_p4 = scmp.eq.s32.totalorder %s4241_s25, 0 }
   0xe   : > { %s4257_s30 = scalar_select %p68_p1, %s4170_s23, %s70_s28  }
   0xf   : > { %p4259_p5 = por %p78_p2, %p77_p0  ;;  %p4265_p6 = por %p4966_p4, %p83_p3 }
  0x10   : > { %4977 = sst [smem:[#allocation19_spill]] %s4257_s30  ;;  %p185_p7 = scmp.eq.s32.totalorder %s4241_s25, 1 }
  0x11   : > { %p191_p8 = scmp.eq.s32.totalorder %s2978_s26, 1  ;;  %p2979_p9 = scmp.ge.s32.totalorder %s4174_s24, 1 }
  0x12   : > { %p198_p10 = scmp.lt.s32.totalorder %s4174_s24, 3  ;;  %p4272_p11 = por %p185_p7, %p77_p0 }
  0x13   : > { %p4276_p12 = por %p191_p8, %p83_p3  ;;  %s4985_s0 = sld [smem:[#allocation22_spill]] }
  0x14   : > { %s4980_s9 = scalar_select %p4272_p11, 1, 0 }
  0x15   : > { %s4982_s10 = scalar_select %p4276_p12, 1, 0 }
  0x16   : > { %4981 = sst [smem:[#allocation20_spill]] %s4980_s9  ;;  %p4280_p13 = pnand %p2979_p9, %p198_p10 }
  0x17   : > { %4983 = sst [smem:[#allocation21_spill]] %s4982_s10  ;;  %s4176_s15 = smov [#allocation3]  }
  0x18   : > { %p3849_p0 = pneg %p4280_p13  ;;  %s211_s16 = sshll.u32 %s4176_s15, 4  ;;  %s212_s16 = int_to_ptr.vmem [resolvable:$true] %s211_s16 }
  0x19   : > { %s209_s14 = sshll.u32 %s4985_s0, 4  ;;  %p3875_p3 = scmp.lt.s32.totalorder %s4174_s24, 2  ;;  %s210_s14 = int_to_ptr.hbm [resolvable:$true] %s209_s14 }
  0x1a   : > { %p4291_p1 = pnand %p3849_p0, %p4966_p4  ;;  %s4177_s18 = smov 16  }
  0x1b   : > { %s4178_s19 = smov 1   ;;  %p4301_p7 = pnand %p3875_p3, %p4259_p5 }
  0x1c   : > { %3852 = dma.hbm_to_vmem [thread:$0]  (!%p4291_p1), %s210_s14, 32, %s212_s16, [#allocation4], %s4177_s18, %s4177_s18, %s4178_s19  }
  0x1d   : > { %s237_s26 = sand.u32 1, %s4174_s24   ;;  %s4965_s28 = sand.u32 1, %s4170_s23  }
  0x1e   : > { %s4309_s29 = sshll.u32 %s4965_s28, 8  ;;  %s3669_s12 = sshll.u32 %s4174_s24, 6 }
  0x1f   : > { %s4988_s2 = sld [smem:[#allocation23_spill]]  ;;  %s241_s30 = scalar_lea.vmem [#allocation8], %s4309_s29 }
  0x20   : > { %s249_s14 = sshll.u32 %s241_s30, 4  ;;  %s4316_s16 = scalar_lea.sflag [#allocation4], %s237_s26  ;;  %s250_s14 = int_to_ptr.vmem [resolvable:$true] %s249_s14 }
  0x21   : > { %p3954_p8 = pneg %p4301_p7 }
  0x25   : > { %s246_s0 = scalar_lea.hbm %s4988_s2, %s3669_s12  ;;  %s3957_s12 = scalar_lea.hbm %s4988_s2, 512 }
  0x26   : > { %s247_s7 = sshll.u32 %s246_s0, 4  ;;  %s248_s7 = int_to_ptr.hbm [resolvable:$true] %s247_s7 }
  0x27   : > { %s3950_s18 = sshra.s32 %s248_s7, 4  ;;  %s3951_s18 = int_to_ptr.hbm [resolvable:$true] %s3950_s18 }
  0x28   : > { %s3952_s19 = scalar_lea.hbm %s3951_s18, 256  ;;  %p3958_p0 = scmp.lt.s32.totalorder %s3951_s18, %s4988_s2 }
  0x29   : > { %p3953_p5 = scmp.ne.s32.totalorder %s3951_s18, %s3952_s19  ;;  %p3959_p3 = scmp.lt.s32.totalorder %s3957_s12, %s3952_s19 }
  0x2b   : > { %p3955_p9 = pnand %p3954_p8, %p3953_p5  ;;  %p3960_p2 = por %p3959_p3, %p3958_p0 }
  0x2d   : > { %p3956_p10 = pneg %p3955_p9 }
  0x2f   : > { %p3961_p4 = pnand %p3960_p2, %p3956_p10 }
  0x31   : > { %3964 = shalt.err (!%p3961_p4)
}
  0x32   : > { %s4179_s26 = smov 2048   ;;  %s4180_s15 = smov 1024  }
  0x33   : > { %s4181_s27 = smov 64   ;;  %s4989_s28 = sand.u32 1, %s4170_s23  }
  0x34   : > { %3859 = dma.hbm_to_vmem [thread:$0]  (!%p4301_p7), %s248_s7, 4096, %s250_s14, %s4316_s16, %s4179_s26, %s4180_s15, %s4181_s27  }
  0x35   : > { %s2986_s13 = sshll.u32 %s4989_s28, 3  ;;  %s2987_s10 = sshll.u32 %s4174_s24, 3 }
  0x36   : > { %s267_s19 = scalar_lea.hbm %s4961_s3, %s2987_s10  ;;  %s263_s0 = scalar_lea.vmem [#allocation9], %s2986_s13 }
  0x37   : > { %s269_s12 = sshll.u32 %s267_s19, 4  ;;  %s271_s2 = sshll.u32 %s263_s0, 4  ;;  %s270_s12 = int_to_ptr.hbm [resolvable:$true] %s269_s12  ;;  %s272_s2 = int_to_ptr.vmem [resolvable:$true] %s271_s2 }
  0x38   : > { %s3980_s21 = sshra.s32 %s270_s12, 4  ;;  %s3987_s7 = scalar_lea.hbm %s4961_s3, 16  ;;  %s3981_s21 = int_to_ptr.hbm [resolvable:$true] %s3980_s21 }
  0x39   : > { %s3982_s9 = scalar_lea.hbm %s3981_s21, 8  ;;  %p3988_p9 = scmp.lt.s32.totalorder %s3981_s21, %s4961_s3 }
  0x3a   : > { %p3983_p4 = scmp.ne.s32.totalorder %s3981_s21, %s3982_s9  ;;  %p3989_p10 = scmp.lt.s32.totalorder %s3987_s7, %s3982_s9 }
  0x3c   : > { %p3985_p2 = pnand %p3983_p4, %p3954_p8  ;;  %p3990_p0 = por %p3989_p10, %p3988_p9 }
  0x3e   : > { %p3986_p5 = pneg %p3985_p2 }
  0x40   : > { %p3991_p3 = pnand %p3990_p0, %p3986_p5 }
  0x42   : > { %3994 = shalt.err (!%p3991_p3)
}
  0x43   : > { %3862 = dma.hbm_to_vmem [thread:$0]  (!%p4301_p7), %s270_s12, 128, %s272_s2, %s4316_s16  }
  0x44   : > { %s286_s19 = scalar_lea.hbm %s4962_s4, %s2987_s10  ;;  %s282_s27 = scalar_lea.vmem [#allocation10], %s2986_s13 }
  0x45   : > { %s288_s0 = sshll.u32 %s286_s19, 4  ;;  %s290_s14 = sshll.u32 %s282_s27, 4  ;;  %s289_s0 = int_to_ptr.hbm [resolvable:$true] %s288_s0  ;;  %s291_s14 = int_to_ptr.vmem [resolvable:$true] %s290_s14 }
  0x46   : > { %s4010_s26 = sshra.s32 %s289_s0, 4  ;;  %s4017_s2 = scalar_lea.hbm %s4962_s4, 16  ;;  %s4011_s26 = int_to_ptr.hbm [resolvable:$true] %s4010_s26 }
  0x47   : > { %s4012_s21 = scalar_lea.hbm %s4011_s26, 8  ;;  %p4018_p9 = scmp.lt.s32.totalorder %s4011_s26, %s4962_s4 }
  0x48   : > { %p4013_p4 = scmp.ne.s32.totalorder %s4011_s26, %s4012_s21  ;;  %p4019_p10 = scmp.lt.s32.totalorder %s4017_s2, %s4012_s21 }
  0x4a   : > { %p4015_p2 = pnand %p4013_p4, %p3954_p8  ;;  %p4020_p0 = por %p4019_p10, %p4018_p9 }
  0x4c   : > { %p4016_p5 = pneg %p4015_p2 }
  0x4e   : > { %p4021_p3 = pnand %p4020_p0, %p4016_p5 }
  0x50   : > { %4024 = shalt.err (!%p4021_p3)
}
  0x51   : > { %3865 = dma.hbm_to_vmem [thread:$0]  (!%p4301_p7), %s289_s0, 128, %s291_s14, %s4316_s16  }
  0x52   : > { %s224_s30 = sshll.u32 %s4959_s1, 4  ;;  %s4182_s18 = smov [#allocation6]   ;;  %s225_s30 = int_to_ptr.hbm [resolvable:$true] %s224_s30 }
  0x53   : > { %s226_s19 = sshll.u32 %s4182_s18, 4  ;;  %s3670_s27 = sshll.u32 %s4174_s24, 5  ;;  %s227_s19 = int_to_ptr.vmem [resolvable:$true] %s226_s19 }
  0x54   : > { %3855 = dma.hbm_to_vmem [thread:$0]  (!%p4291_p1), %s225_s30, 16, %s227_s19, [#allocation7]  }
  0x55   : > { %s301_s26 = scalar_lea.vmem [#allocation11], %s4309_s29  ;;  %s306_s2 = scalar_lea.hbm %s4963_s5, %s3670_s27 }
  0x56   : > { %s309_s21 = sshll.u32 %s301_s26, 4  ;;  %s307_s0 = sshll.u32 %s306_s2, 4  ;;  %s310_s21 = int_to_ptr.vmem [resolvable:$true] %s309_s21  ;;  %s308_s0 = int_to_ptr.hbm [resolvable:$true] %s307_s0 }
  0x57   : > { %s4070_s14 = sshra.s32 %s308_s0, 4  ;;  %s4077_s29 = scalar_lea.hbm %s4963_s5, 512  ;;  %s4071_s14 = int_to_ptr.hbm [resolvable:$true] %s4070_s14 }
  0x58   : > { %s4072_s12 = scalar_lea.hbm %s4071_s14, 256  ;;  %p4078_p1 = scmp.lt.s32.totalorder %s4071_s14, %s4963_s5 }
  0x59   : > { %p4073_p4 = scmp.ne.s32.totalorder %s4071_s14, %s4072_s12  ;;  %p4079_p9 = scmp.lt.s32.totalorder %s4077_s29, %s4072_s12 }
  0x5b   : > { %p4075_p2 = pnand %p4073_p4, %p3954_p8  ;;  %p4080_p10 = por %p4079_p9, %p4078_p1 }
  0x5d   : > { %p4076_p5 = pneg %p4075_p2 }
  0x5f   : > { %p4081_p0 = pnand %p4080_p10, %p4076_p5 }
  0x61   : > { %4084 = shalt.err (!%p4081_p0)
}
  0x62   : > { %s4183_s30 = smov 512   ;;  %s4184_s18 = smov 32  }
  0x63   : > { %3868 = dma.hbm_to_vmem [thread:$0]  (!%p4301_p7), %s308_s0, 4096, %s310_s21, %s4316_s16, %s4180_s15, %s4183_s30, %s4184_s18  }
  0x64   : > { %321 = sbr.rel (%p4280_p13) target bundleno = 575 (0x23f), region = 44  ;;  %p4990_p8 = scmp.eq.s32.totalorder (!%p4280_p13), %s4241_s25, 0 }
  0x69   : > { %4145 = dma.done.wait (%p4990_p8), [#allocation4], 32   ;;  %p4991_p3 = pmov %p4990_p8 }
  0x6b   : > { %4147 = vsyncadd (%p4991_p3), [#allocation4], 4294967264  ;;  %p4992_p4 = pmov %p4991_p3 }
  0x6c   : > { %p4993_p2 = pmov %p4991_p3 }
  0x6d   : > { %4149 = dma.done.wait (%p4992_p4), [#allocation7], 16  }
  0x6e   : > { %4151 = vsyncadd (%p4993_p2), [#allocation7], 4294967280  ;;  %s333_s20 = sand.u32 1, %s4241_s25   ;;  %s4401_s16 = sand.u32 1, %s4166_s22  }
  0x6f   : > { %s2996_s11 = sshll.u32 %s4401_s16, 8  ;;  %s334_s15 = scalar_lea.sflag [#allocation4], %s333_s20 }
  0x70   : > { %s4406_s19 = scalar_lea.vmem [#allocation8], %s2996_s11 }
  0x71   : > { %4153 = dma.done.wait (%p4265_p6), %s334_s15, 8448  }
  0x72   : > { %4155 = vsyncadd (%p4265_p6), %s334_s15, 4294958848  ;;  %v4413_v0 = vld [vmem:[%s4406_s19 + $0x80] sm:$0xff]  ;;  %v4416_v1 = vld [vmem:[%s4406_s19 + $0x88] sm:$0xff]  ;;  %s4782_s8 = scalar_lea.vmem [#allocation11], %s2996_s11  ;;  %vm2646_vm0 = vcmask 523264   ;;  %vm2396_vm1 = vcmask 1041408  }
  0x73   : > { %v4419_v2 = vld [vmem:[%s4406_s19 + $0xc0] sm:$0xff]  ;;  %v4422_v3 = vld [vmem:[%s4406_s19 + $0xc8] sm:$0xff]  ;;  %v1434_v4 = vshrl.u32 %v4413_v0, 28  ;;  %v1435_v5 = vshrl.u32 %v4416_v1, 28  ;;  %v4428_v7 = vld [vmem:[%s4406_s19 + $0x90] sm:$0xff]  ;;  %v1370_v14 = vshrl.u32 %v4413_v0, 24 }
  0x74   : > { %v1442_v6 = vshrl.u32 %v4419_v2, 28  ;;  %v4431_v8 = vld [vmem:[%s4406_s19 + $0x98] sm:$0xff]  ;;  %v1443_v9 = vshrl.u32 %v4422_v3, 28  ;;  %v4435_v10 = vld [vmem:[%s4406_s19 + $0xd0] sm:$0xff]  ;;  %v1436_v12 = vshrl.u32 %v4428_v7, 28  ;;  %v1371_v25 = vshrl.u32 %v4416_v1, 24 }
  0x75   : > { %v4438_v11 = vld [vmem:[%s4406_s19 + $0xd8] sm:$0xff]  ;;  %v1437_v13 = vshrl.u32 %v4431_v8, 28  ;;  %v1450_v15 = vcvt.s32.f32 %v1434_v4  ;;  %v1451_v16 = vcvt.s32.f32 %v1435_v5  ;;  %v1444_v18 = vshrl.u32 %v4435_v10, 28  ;;  %s4909_s27 = sshll.u32 %s4401_s16, 3  ;;  %s3666_s21 = sshll.u32 %s4241_s25, 3 }
  0x76   : > { %v1458_v17 = vcvt.s32.f32 %v1442_v6  ;;  %v1459_v19 = vcvt.s32.f32 %v1443_v9  ;;  %v1445_v20 = vshrl.u32 %v4438_v11, 28  ;;  %v1452_v21 = vcvt.s32.f32 %v1436_v12  ;;  %s347_s26 = scalar_lea.vmem [#allocation9], %s4909_s27  ;;  %s2823_s2 = scalar_lea.hbm %s4964_s6, %s3666_s21 }
  0x77   : > { %v1453_v22 = vcvt.s32.f32 %v1437_v13  ;;  %v1466_v23 = vpack.c.bf16 %v1451_v16, %v1450_v15  ;;  %v1460_v24 = vcvt.s32.f32 %v1444_v18  ;;  %v1378_v26 = vshrl.u32 %v4419_v2, 24  ;;  %s357_s0 = scalar_lea.vmem [#allocation10], %s4909_s27  ;;  %s411_s25 = scalar_lea.vmem [#allocation12], %s4909_s27 }
  0x78   : > { %v1470_v27 = vpack.c.bf16 %v1459_v19, %v1458_v17  ;;  %v1461_v28 = vcvt.s32.f32 %v1445_v20  ;;  %v1379_v30 = vshrl.u32 %v4422_v3, 24  ;;  %v1386_v31 = vand.u32 15, %v1370_v14  ;;  %s2825_s14 = sshll.u32 %s411_s25, 4  ;;  %s2827_s12 = sshll.u32 %s2823_s2, 4  ;;  %s2826_s14 = int_to_ptr.vmem [resolvable:$true] %s2825_s14  ;;  %s2828_s12 = int_to_ptr.hbm [resolvable:$true] %s2827_s12 }
  0x79   : > { %v1467_v29 = vpack.c.bf16 %v1453_v22, %v1452_v21  ;;  %1474 = vst [vmem:[#allocation2 + $0x3c0] sm:$0xff] %v1466_v23  ;;  %v1387_v32 = vand.u32 15, %v1371_v25  ;;  %v1394_v33 = vand.u32 15, %v1378_v26  ;;  %v1372_v34 = vshrl.u32 %v4428_v7, 24  ;;  %s2813_s28 = scalar_lea.sflag [#allocation5], %s4401_s16  ;;  %s4114_s29 = sshra.s32 %s2828_s12, 4  ;;  %s4115_s29 = int_to_ptr.hbm [resolvable:$true] %s4114_s29 }
  0x7a   : > { %1478 = vst [vmem:[#allocation2 + $0x3e0] sm:$0xff] %v1470_v27  ;;  %v1471_v35 = vpack.c.bf16 %v1461_v28, %v1460_v24  ;;  %v1395_v36 = vand.u32 15, %v1379_v30  ;;  %v1373_v37 = vshrl.u32 %v4431_v8, 24  ;;  %v1380_v38 = vshrl.u32 %v4435_v10, 24  ;;  %s4116_s10 = scalar_lea.hbm %s4115_s29, 8  ;;  %s4120_s18 = scalar_lea.hbm %s4964_s6, 16 }
  0x7b   : > { %1475 = vst [vmem:[#allocation2 + $0x3c8] sm:$0xff] %v1467_v29  ;;  %v1402_v39 = vcvt.s32.f32 %v1386_v31  ;;  %v1403_v40 = vcvt.s32.f32 %v1387_v32  ;;  %v1410_v41 = vcvt.s32.f32 %v1394_v33  ;;  %v1381_v42 = vshrl.u32 %v4438_v11, 24  ;;  %p4117_p6 = scmp.ne.s32.totalorder %s4115_s29, %s4116_s10  ;;  %p4121_p5 = scmp.lt.s32.totalorder %s4115_s29, %s4964_s6 }
  0x7c   : > { %1479 = vst [vmem:[#allocation2 + $0x3e8] sm:$0xff] %v1471_v35  ;;  %v1411_v43 = vcvt.s32.f32 %v1395_v36  ;;  %v1388_v44 = vand.u32 15, %v1372_v34  ;;  %v1389_v45 = vand.u32 15, %v1373_v37  ;;  %v1396_v46 = vand.u32 15, %v1380_v38  ;;  %p4122_p1 = scmp.lt.s32.totalorder %s4120_s18, %s4116_s10 }
  0x7d   : > { %v1418_v47 = vpack.c.bf16 %v1403_v40, %v1402_v39  ;;  %v1397_v48 = vand.u32 15, %v1381_v42  ;;  %v1306_v49 = vshrl.u32 %v4413_v0, 20  ;;  %v1307_v50 = vshrl.u32 %v4416_v1, 20  ;;  %p4118_p13 = pnand %p4117_p6, %p4272_p11 }
  0x7e   : > { %v1422_v51 = vpack.c.bf16 %v1411_v43, %v1410_v41  ;;  %v1404_v52 = vcvt.s32.f32 %v1388_v44  ;;  %v1405_v53 = vcvt.s32.f32 %v1389_v45  ;;  %v1412_v54 = vcvt.s32.f32 %v1396_v46  ;;  %p4123_p9 = por %p4122_p1, %p4121_p5 }
  0x7f   : > { %1426 = vst [vmem:[#allocation2 + $0x380] sm:$0xff] %v1418_v47  ;;  %v1413_v55 = vcvt.s32.f32 %v1397_v48  ;;  %v1314_v56 = vshrl.u32 %v4419_v2, 20  ;;  %v1315_v57 = vshrl.u32 %v4422_v3, 20  ;;  %v1322_v58 = vand.u32 15, %v1306_v49  ;;  %p4119_p7 = pneg %p4118_p13 }
  0x80   : > { %v3243_v59 = vld [vmem:[#allocation2 + $0x3c0] sm:$0xf]  ;;  %v3791_v60 = vld [vmem:[#allocation2 + $0x3c4] sm:$0xf]  ;;  %1430 = vst [vmem:[#allocation2 + $0x3a0] sm:$0xff] %v1422_v51  ;;  %v1419_v61 = vpack.c.bf16 %v1405_v53, %v1404_v52  ;;  %v1323_v62 = vand.u32 15, %v1307_v50 }
  0x81   : > { %v3795_v63 = vld [vmem:[#allocation2 + $0x3dc] sm:$0xf0]  ;;  %v3245_v4 = vld [vmem:[#allocation2 + $0x3e0] sm:$0xf0]  ;;  %v1423_v5 = vpack.c.bf16 %v1413_v55, %v1412_v54  ;;  %v1330_v6 = vand.u32 15, %v1314_v56  ;;  %v1331_v9 = vand.u32 15, %v1315_v57  ;;  %v1338_v12 = vcvt.s32.f32 %v1322_v58  ;;  %p4124_p10 = pnand %p4123_p9, %p4119_p7 }
  0x82   : > { %v3244_v13 = vor.u32 %v3795_v63, %v3243_v59  ;;  %v3248_v14 = vor.u32 %v3791_v60, %v3245_v4  ;;  %v3251_v15 = vld [vmem:[#allocation2 + $0x3c8] sm:$0xf]  ;;  %v3792_v16 = vld [vmem:[#allocation2 + $0x3cc] sm:$0xf]  ;;  %1427 = vst [vmem:[#allocation2 + $0x388] sm:$0xff] %v1419_v61  ;;  %v1339_v17 = vcvt.s32.f32 %v1323_v62  ;;  %v1308_v18 = vshrl.u32 %v4428_v7, 20 }
  0x83   : > { %v3796_v19 = vld [vmem:[#allocation2 + $0x3e4] sm:$0xf0]  ;;  %v3253_v20 = vld [vmem:[#allocation2 + $0x3e8] sm:$0xf0]  ;;  %1431 = vst [vmem:[#allocation2 + $0x3a8] sm:$0xff] %v1423_v5  ;;  %v1346_v21 = vcvt.s32.f32 %v1330_v6  ;;  %v1347_v22 = vcvt.s32.f32 %v1331_v9  ;;  %v1309_v23 = vshrl.u32 %v4431_v8, 20 }
  0x84   : > { %1868 = vmatpush.bf16.msra.mxu0 %v3244_v13  ;;  %1881 = vmatpush.bf16.msra.mxu1 %v3248_v14  ;;  %v3252_v24 = vor.u32 %v3796_v19, %v3251_v15  ;;  %v3256_v25 = vor.u32 %v3792_v16, %v3253_v20  ;;  %v1354_v26 = vpack.c.bf16 %v1339_v17, %v1338_v12  ;;  %v1316_v27 = vshrl.u32 %v4435_v10, 20 }
  0x85   : > { %v1358_v28 = vpack.c.bf16 %v1347_v22, %v1346_v21  ;;  %v1317_v29 = vshrl.u32 %v4438_v11, 20  ;;  %v1324_v30 = vand.u32 15, %v1308_v18  ;;  %v1325_v31 = vand.u32 15, %v1309_v23 }
  0x86   : > { %1894 = vmatpush.bf16.msra.mxu2 %v3252_v24  ;;  %1907 = vmatpush.bf16.msra.mxu3 %v3256_v25  ;;  %v3211_v32 = vld [vmem:[#allocation2 + $0x380] sm:$0xf]  ;;  %v3783_v33 = vld [vmem:[#allocation2 + $0x384] sm:$0xf]  ;;  %1362 = vst [vmem:[#allocation2 + $0x340] sm:$0xff] %v1354_v26  ;;  %v1332_v34 = vand.u32 15, %v1316_v27 }
  0x87   : > { %v3787_v35 = vld [vmem:[#allocation2 + $0x39c] sm:$0xf0]  ;;  %v3213_v36 = vld [vmem:[#allocation2 + $0x3a0] sm:$0xf0]  ;;  %1366 = vst [vmem:[#allocation2 + $0x360] sm:$0xff] %v1358_v28  ;;  %v1333_v37 = vand.u32 15, %v1317_v29  ;;  %v1340_v38 = vcvt.s32.f32 %v1324_v30  ;;  %v1341_v39 = vcvt.s32.f32 %v1325_v31 }
  0x88   : > { %v3212_v40 = vor.u32 %v3787_v35, %v3211_v32  ;;  %v3216_v41 = vor.u32 %v3783_v33, %v3213_v36  ;;  %v1348_v42 = vcvt.s32.f32 %v1332_v34  ;;  %v1242_v43 = vshrl.u32 %v4413_v0, 16 }
  0x89   : > { %v3219_v44 = vld [vmem:[#allocation2 + $0x388] sm:$0xf]  ;;  %v3784_v45 = vld [vmem:[#allocation2 + $0x38c] sm:$0xf]  ;;  %v1349_v46 = vcvt.s32.f32 %v1333_v37  ;;  %v1355_v47 = vpack.c.bf16 %v1341_v39, %v1340_v38  ;;  %v1243_v48 = vshrl.u32 %v4416_v1, 16  ;;  %v1250_v49 = vshrl.u32 %v4419_v2, 16 }
  0x8a   : > { %1869 = vmatpush.bf16.msra.mxu0 %v3212_v40  ;;  %1882 = vmatpush.bf16.msra.mxu1 %v3216_v41  ;;  %v3788_v50 = vld [vmem:[#allocation2 + $0x3a4] sm:$0xf0]  ;;  %v3221_v51 = vld [vmem:[#allocation2 + $0x3a8] sm:$0xf0]  ;;  %v1251_v52 = vshrl.u32 %v4422_v3, 16  ;;  %v1258_v53 = vand.u32 15, %v1242_v43 }
  0x8b   : > { %v3220_v54 = vor.u32 %v3788_v50, %v3219_v44  ;;  %v3224_v55 = vor.u32 %v3784_v45, %v3221_v51  ;;  %v1359_v56 = vpack.c.bf16 %v1349_v46, %v1348_v42  ;;  %1363 = vst [vmem:[#allocation2 + $0x348] sm:$0xff] %v1355_v47  ;;  %v1259_v57 = vand.u32 15, %v1243_v48 }
  0x8c   : > { %v1266_v58 = vand.u32 15, %v1250_v49  ;;  %v1267_v59 = vand.u32 15, %v1251_v52  ;;  %v1274_v60 = vcvt.s32.f32 %v1258_v53  ;;  %v1244_v61 = vshrl.u32 %v4428_v7, 16 }
  0x8d   : > { %1895 = vmatpush.bf16.msra.mxu2 %v3220_v54  ;;  %1908 = vmatpush.bf16.msra.mxu3 %v3224_v55  ;;  %v3179_v62 = vld [vmem:[#allocation2 + $0x340] sm:$0xf]  ;;  %v3775_v63 = vld [vmem:[#allocation2 + $0x344] sm:$0xf]  ;;  %1367 = vst [vmem:[#allocation2 + $0x368] sm:$0xff] %v1359_v56  ;;  %v1275_v4 = vcvt.s32.f32 %v1259_v57  ;;  %v1245_v5 = vshrl.u32 %v4431_v8, 16 }
  0x8e   : > { %v3779_v6 = vld [vmem:[#allocation2 + $0x35c] sm:$0xf0]  ;;  %v3181_v9 = vld [vmem:[#allocation2 + $0x360] sm:$0xf0]  ;;  %v1282_v12 = vcvt.s32.f32 %v1266_v58  ;;  %v1283_v13 = vcvt.s32.f32 %v1267_v59  ;;  %v1252_v14 = vshrl.u32 %v4435_v10, 16  ;;  %v1253_v15 = vshrl.u32 %v4438_v11, 16 }
  0x8f   : > { %v3180_v16 = vor.u32 %v3779_v6, %v3179_v62  ;;  %v3184_v17 = vor.u32 %v3775_v63, %v3181_v9  ;;  %v1290_v18 = vpack.c.bf16 %v1275_v4, %v1274_v60  ;;  %v1260_v19 = vand.u32 15, %v1244_v61 }
  0x90   : > { %v1294_v20 = vpack.c.bf16 %v1283_v13, %v1282_v12  ;;  %v1261_v21 = vand.u32 15, %v1245_v5  ;;  %v1268_v22 = vand.u32 15, %v1252_v14  ;;  %v1269_v23 = vand.u32 15, %v1253_v15 }
  0x91   : > { %1870 = vmatpush.bf16.msra.mxu0 %v3180_v16  ;;  %1883 = vmatpush.bf16.msra.mxu1 %v3184_v17  ;;  %1298 = vst [vmem:[#allocation2 + $0x300] sm:$0xff] %v1290_v18  ;;  %v1276_v24 = vcvt.s32.f32 %v1260_v19  ;;  %v1178_v25 = vshrl.u32 %v4413_v0, 12  ;;  %v1179_v26 = vshrl.u32 %v4416_v1, 12  ;;  %v1186_v27 = vshrl.u32 %v4419_v2, 12 }
  0x92   : > { %v3187_v28 = vld [vmem:[#allocation2 + $0x348] sm:$0xf]  ;;  %v3776_v29 = vld [vmem:[#allocation2 + $0x34c] sm:$0xf]  ;;  %1302 = vst [vmem:[#allocation2 + $0x320] sm:$0xff] %v1294_v20  ;;  %v1277_v30 = vcvt.s32.f32 %v1261_v21  ;;  %v1284_v31 = vcvt.s32.f32 %v1268_v22  ;;  %v1285_v32 = vcvt.s32.f32 %v1269_v23  ;;  %v1187_v33 = vshrl.u32 %v4422_v3, 12 }
  0x93   : > { %v1194_v34 = vand.u32 15, %v1178_v25  ;;  %v1195_v35 = vand.u32 15, %v1179_v26  ;;  %v1202_v36 = vand.u32 15, %v1186_v27  ;;  %v1180_v37 = vshrl.u32 %v4428_v7, 12 }
  0x94   : > { %v3780_v38 = vld [vmem:[#allocation2 + $0x364] sm:$0xf0]  ;;  %v3189_v39 = vld [vmem:[#allocation2 + $0x368] sm:$0xf0]  ;;  %v1291_v40 = vpack.c.bf16 %v1277_v30, %v1276_v24  ;;  %v1295_v41 = vpack.c.bf16 %v1285_v32, %v1284_v31  ;;  %v1203_v42 = vand.u32 15, %v1187_v33  ;;  %v1181_v43 = vshrl.u32 %v4431_v8, 12 }
  0x95   : > { %v3188_v44 = vor.u32 %v3780_v38, %v3187_v28  ;;  %v3192_v45 = vor.u32 %v3776_v29, %v3189_v39  ;;  %v1210_v46 = vcvt.s32.f32 %v1194_v34  ;;  %v1211_v47 = vcvt.s32.f32 %v1195_v35 }
  0x96   : > { %1299 = vst [vmem:[#allocation2 + $0x308] sm:$0xff] %v1291_v40  ;;  %v1218_v48 = vcvt.s32.f32 %v1202_v36  ;;  %v1219_v49 = vcvt.s32.f32 %v1203_v42  ;;  %v1188_v50 = vshrl.u32 %v4435_v10, 12  ;;  %v1189_v51 = vshrl.u32 %v4438_v11, 12 }
  0x97   : > { %1896 = vmatpush.bf16.msra.mxu2 %v3188_v44  ;;  %1909 = vmatpush.bf16.msra.mxu3 %v3192_v45  ;;  %1303 = vst [vmem:[#allocation2 + $0x328] sm:$0xff] %v1295_v41  ;;  %v1226_v52 = vpack.c.bf16 %v1211_v47, %v1210_v46  ;;  %v1196_v53 = vand.u32 15, %v1180_v37  ;;  %v1197_v54 = vand.u32 15, %v1181_v43  ;;  %v1114_v55 = vshrl.u32 %v4413_v0, 8 }
  0x98   : > { %v3147_v56 = vld [vmem:[#allocation2 + $0x300] sm:$0xf]  ;;  %v3767_v57 = vld [vmem:[#allocation2 + $0x304] sm:$0xf]  ;;  %v1230_v58 = vpack.c.bf16 %v1219_v49, %v1218_v48  ;;  %v1204_v59 = vand.u32 15, %v1188_v50  ;;  %v1205_v60 = vand.u32 15, %v1189_v51 }
  0x99   : > { %v3771_v61 = vld [vmem:[#allocation2 + $0x31c] sm:$0xf0]  ;;  %v3149_v62 = vld [vmem:[#allocation2 + $0x320] sm:$0xf0]  ;;  %1234 = vst [vmem:[#allocation2 + $0x2c0] sm:$0xff] %v1226_v52  ;;  %v1212_v63 = vcvt.s32.f32 %v1196_v53  ;;  %v1213_v4 = vcvt.s32.f32 %v1197_v54  ;;  %v1115_v5 = vshrl.u32 %v4416_v1, 8 }
  0x9a   : > { %v3148_v6 = vor.u32 %v3771_v61, %v3147_v56  ;;  %v3152_v9 = vor.u32 %v3767_v57, %v3149_v62  ;;  %1238 = vst [vmem:[#allocation2 + $0x2e0] sm:$0xff] %v1230_v58  ;;  %v1220_v12 = vcvt.s32.f32 %v1204_v59  ;;  %v1221_v13 = vcvt.s32.f32 %v1205_v60 }
  0x9b   : > { %v1227_v14 = vpack.c.bf16 %v1213_v4, %v1212_v63  ;;  %v1122_v15 = vshrl.u32 %v4419_v2, 8  ;;  %v1123_v16 = vshrl.u32 %v4422_v3, 8  ;;  %v1130_v17 = vand.u32 15, %v1114_v55 }
  0x9c   : > { %1871 = vmatpush.bf16.msra.mxu0 %v3148_v6  ;;  %1884 = vmatpush.bf16.msra.mxu1 %v3152_v9  ;;  %v1231_v18 = vpack.c.bf16 %v1221_v13, %v1220_v12  ;;  %v1131_v19 = vand.u32 15, %v1115_v5  ;;  %v1116_v20 = vshrl.u32 %v4428_v7, 8  ;;  %v1117_v21 = vshrl.u32 %v4431_v8, 8 }
  0x9d   : > { %v3155_v22 = vld [vmem:[#allocation2 + $0x308] sm:$0xf]  ;;  %v3768_v23 = vld [vmem:[#allocation2 + $0x30c] sm:$0xf]  ;;  %1235 = vst [vmem:[#allocation2 + $0x2c8] sm:$0xff] %v1227_v14  ;;  %v1138_v24 = vand.u32 15, %v1122_v15  ;;  %v1146_v25 = vcvt.s32.f32 %v1130_v17 }
  0x9e   : > { %v3772_v26 = vld [vmem:[#allocation2 + $0x324] sm:$0xf0]  ;;  %v3157_v27 = vld [vmem:[#allocation2 + $0x328] sm:$0xf0]  ;;  %1239 = vst [vmem:[#allocation2 + $0x2e8] sm:$0xff] %v1231_v18  ;;  %v1139_v28 = vand.u32 15, %v1123_v16  ;;  %v1147_v29 = vcvt.s32.f32 %v1131_v19 }
  0x9f   : > { %v3156_v30 = vor.u32 %v3772_v26, %v3155_v22  ;;  %v3160_v31 = vor.u32 %v3768_v23, %v3157_v27  ;;  %v1154_v32 = vcvt.s32.f32 %v1138_v24  ;;  %v1124_v33 = vshrl.u32 %v4435_v10, 8 }
  0xa0   : > { %v3115_v34 = vld [vmem:[#allocation2 + $0x2c0] sm:$0xf]  ;;  %v3759_v35 = vld [vmem:[#allocation2 + $0x2c4] sm:$0xf]  ;;  %v1155_v36 = vcvt.s32.f32 %v1139_v28  ;;  %v1162_v37 = vpack.c.bf16 %v1147_v29, %v1146_v25  ;;  %v1125_v38 = vshrl.u32 %v4438_v11, 8  ;;  %v1132_v39 = vand.u32 15, %v1116_v20 }
  0xa1   : > { %1897 = vmatpush.bf16.msra.mxu2 %v3156_v30  ;;  %1910 = vmatpush.bf16.msra.mxu3 %v3160_v31  ;;  %v3763_v40 = vld [vmem:[#allocation2 + $0x2dc] sm:$0xf0]  ;;  %v3117_v41 = vld [vmem:[#allocation2 + $0x2e0] sm:$0xf0]  ;;  %v1133_v42 = vand.u32 15, %v1117_v21  ;;  %v1140_v43 = vand.u32 15, %v1124_v33 }
  0xa2   : > { %v3116_v44 = vor.u32 %v3763_v40, %v3115_v34  ;;  %v3120_v45 = vor.u32 %v3759_v35, %v3117_v41  ;;  %v1166_v46 = vpack.c.bf16 %v1155_v36, %v1154_v32  ;;  %1170 = vst [vmem:[#allocation2 + $0x280] sm:$0xff] %v1162_v37  ;;  %v1141_v47 = vand.u32 15, %v1125_v38  ;;  %v4497_v40 = vld [vmem:[%s4406_s19 + $0xa0] sm:$0xff]  ;;  %v4500_v41 = vld [vmem:[%s4406_s19 + $0xa8] sm:$0xff] }
  0xa3   : > { %v1148_v48 = vcvt.s32.f32 %v1132_v39  ;;  %v1149_v49 = vcvt.s32.f32 %v1133_v42  ;;  %v1156_v50 = vcvt.s32.f32 %v1140_v43  ;;  %v1050_v51 = vshrl.u32 %v4413_v0, 4 }
  0xa4   : > { %1872 = vmatpush.bf16.msra.mxu0 %v3116_v44  ;;  %1885 = vmatpush.bf16.msra.mxu1 %v3120_v45  ;;  %v3123_v52 = vld [vmem:[#allocation2 + $0x2c8] sm:$0xf]  ;;  %v3760_v53 = vld [vmem:[#allocation2 + $0x2cc] sm:$0xf]  ;;  %1174 = vst [vmem:[#allocation2 + $0x2a0] sm:$0xff] %v1166_v46  ;;  %v1157_v54 = vcvt.s32.f32 %v1141_v47  ;;  %v1051_v55 = vshrl.u32 %v4416_v1, 4 }
  0xa5   : > { %v3764_v56 = vld [vmem:[#allocation2 + $0x2e4] sm:$0xf0]  ;;  %v3125_v57 = vld [vmem:[#allocation2 + $0x2e8] sm:$0xf0]  ;;  %v1163_v58 = vpack.c.bf16 %v1149_v49, %v1148_v48  ;;  %v1058_v59 = vshrl.u32 %v4419_v2, 4  ;;  %v1059_v60 = vshrl.u32 %v4422_v3, 4 }
  0xa6   : > { %v3124_v61 = vor.u32 %v3764_v56, %v3123_v52  ;;  %v3128_v62 = vor.u32 %v3760_v53, %v3125_v57  ;;  %v1167_v63 = vpack.c.bf16 %v1157_v54, %v1156_v50  ;;  %v1066_v4 = vand.u32 15, %v1050_v51  ;;  %v4505_v50 = vld [vmem:[%s4406_s19 + $0xe0] sm:$0xff] }
  0xa7   : > { %1171 = vst [vmem:[#allocation2 + $0x288] sm:$0xff] %v1163_v58  ;;  %v1067_v5 = vand.u32 15, %v1051_v55  ;;  %v1074_v6 = vand.u32 15, %v1058_v59  ;;  %v1075_v9 = vand.u32 15, %v1059_v60  ;;  %v1052_v12 = vshrl.u32 %v4428_v7, 4  ;;  %v4509_v55 = vld [vmem:[%s4406_s19 + $0xe8] sm:$0xff] }
  0xa8   : > { %1898 = vmatpush.bf16.msra.mxu2 %v3124_v61  ;;  %1911 = vmatpush.bf16.msra.mxu3 %v3128_v62  ;;  %1175 = vst [vmem:[#allocation2 + $0x2a8] sm:$0xff] %v1167_v63  ;;  %v1082_v13 = vcvt.s32.f32 %v1066_v4  ;;  %v1053_v14 = vshrl.u32 %v4431_v8, 4  ;;  %v1060_v15 = vshrl.u32 %v4435_v10, 4  ;;  %v1061_v16 = vshrl.u32 %v4438_v11, 4  ;;  %v4516_v59 = vld [vmem:[%s4406_s19 + $0xb8] sm:$0xff]  ;;  %v4522_v63 = vld [vmem:[%s4406_s19 + $0xf0] sm:$0xff] }
  0xa9   : > { %v3083_v17 = vld [vmem:[#allocation2 + $0x280] sm:$0xf]  ;;  %v3751_v18 = vld [vmem:[#allocation2 + $0x284] sm:$0xf]  ;;  %v1083_v19 = vcvt.s32.f32 %v1067_v5  ;;  %v1090_v20 = vcvt.s32.f32 %v1074_v6  ;;  %v1091_v21 = vcvt.s32.f32 %v1075_v9  ;;  %v1068_v22 = vand.u32 15, %v1052_v12 }
  0xaa   : > { %v1069_v23 = vand.u32 15, %v1053_v14  ;;  %v1076_v24 = vand.u32 15, %v1060_v15  ;;  %v1077_v25 = vand.u32 15, %v1061_v16  ;;  %v1001_v26 = vand.u32 15, %v4413_v0  ;;  %v4526_v6 = vld [vmem:[%s4406_s19 + $0xf8] sm:$0xff] }
  0xab   : > { %v3755_v27 = vld [vmem:[#allocation2 + $0x29c] sm:$0xf0]  ;;  %v3085_v28 = vld [vmem:[#allocation2 + $0x2a0] sm:$0xf0]  ;;  %v1098_v29 = vpack.c.bf16 %v1083_v19, %v1082_v13  ;;  %v1102_v30 = vpack.c.bf16 %v1091_v21, %v1090_v20  ;;  %v1084_v31 = vcvt.s32.f32 %v1068_v22  ;;  %v1002_v32 = vand.u32 15, %v4416_v1 }
  0xac   : > { %v3084_v33 = vor.u32 %v3755_v27, %v3083_v17  ;;  %v3088_v34 = vor.u32 %v3751_v18, %v3085_v28  ;;  %v1085_v35 = vcvt.s32.f32 %v1069_v23  ;;  %v1092_v36 = vcvt.s32.f32 %v1076_v24 }
  0xad   : > { %1106 = vst [vmem:[#allocation2 + $0x240] sm:$0xff] %v1098_v29  ;;  %v1093_v37 = vcvt.s32.f32 %v1077_v25  ;;  %v1009_v38 = vand.u32 15, %v4419_v2  ;;  %v1010_v39 = vand.u32 15, %v4422_v3  ;;  %v1017_v0 = vcvt.s32.f32 %v1001_v26 }
  0xae   : > { %1873 = vmatpush.bf16.msra.mxu0 %v3084_v33  ;;  %1886 = vmatpush.bf16.msra.mxu1 %v3088_v34  ;;  %v3091_v42 = vld [vmem:[#allocation2 + $0x288] sm:$0xf]  ;;  %v3752_v1 = vld [vmem:[#allocation2 + $0x28c] sm:$0xf]  ;;  %1110 = vst [vmem:[#allocation2 + $0x260] sm:$0xff] %v1102_v30  ;;  %v1099_v43 = vpack.c.bf16 %v1085_v35, %v1084_v31  ;;  %v1018_v44 = vcvt.s32.f32 %v1002_v32  ;;  %v1003_v45 = vand.u32 15, %v4428_v7 }
  0xaf   : > { %v3756_v2 = vld [vmem:[#allocation2 + $0x2a4] sm:$0xf0]  ;;  %v3093_v46 = vld [vmem:[#allocation2 + $0x2a8] sm:$0xf0]  ;;  %v1103_v3 = vpack.c.bf16 %v1093_v37, %v1092_v36  ;;  %v1025_v47 = vcvt.s32.f32 %v1009_v38  ;;  %v1026_v48 = vcvt.s32.f32 %v1010_v39  ;;  %v1004_v49 = vand.u32 15, %v4431_v8  ;;  %v4512_v7 = vld [vmem:[%s4406_s19 + $0xb0] sm:$0xff] }
  0xb0   : > { %v3092_v51 = vor.u32 %v3756_v2, %v3091_v42  ;;  %v3096_v52 = vor.u32 %v3752_v1, %v3093_v46  ;;  %1107 = vst [vmem:[#allocation2 + $0x248] sm:$0xff] %v1099_v43  ;;  %v1033_v53 = vpack.c.bf16 %v1018_v44, %v1017_v0  ;;  %v1011_v54 = vand.u32 15, %v4435_v10 }
  0xb1   : > { %1111 = vst [vmem:[#allocation2 + $0x268] sm:$0xff] %v1103_v3  ;;  %v1037_v56 = vpack.c.bf16 %v1026_v48, %v1025_v47  ;;  %v1012_v57 = vand.u32 15, %v4438_v11  ;;  %v1019_v58 = vcvt.s32.f32 %v1003_v45  ;;  %v1020_v8 = vcvt.s32.f32 %v1004_v49 }
  0xb2   : > { %1899 = vmatpush.bf16.msra.mxu2 %v3092_v51  ;;  %1912 = vmatpush.bf16.msra.mxu3 %v3096_v52  ;;  %1042 = vst [vmem:[#allocation2 + $0x200] sm:$0xff] %v1033_v53  ;;  %v1027_v60 = vcvt.s32.f32 %v1011_v54  ;;  %v1438_v10 = vshrl.u32 %v4497_v40, 28  ;;  %v1439_v61 = vshrl.u32 %v4500_v41, 28  ;;  %v1446_v62 = vshrl.u32 %v4505_v50, 28 }
  0xb3   : > { %1046 = vst [vmem:[#allocation2 + $0x220] sm:$0xff] %v1037_v56  ;;  %v1028_v4 = vcvt.s32.f32 %v1012_v57  ;;  %v1034_v11 = vpack.c.bf16 %v1020_v8, %v1019_v58  ;;  %v1447_v5 = vshrl.u32 %v4509_v55, 28  ;;  %v1440_v9 = vshrl.u32 %v4512_v7, 28 }
  0xb4   : > { %v3051_v12 = vld [vmem:[#allocation2 + $0x240] sm:$0xf]  ;;  %v3743_v13 = vld [vmem:[#allocation2 + $0x244] sm:$0xf]  ;;  %v1454_v14 = vcvt.s32.f32 %v1438_v10  ;;  %v1455_v15 = vcvt.s32.f32 %v1439_v61  ;;  %v1462_v16 = vcvt.s32.f32 %v1446_v62  ;;  %v1441_v17 = vshrl.u32 %v4516_v59, 28 }
  0xb5   : > { %v3747_v18 = vld [vmem:[#allocation2 + $0x25c] sm:$0xf0]  ;;  %v3053_v19 = vld [vmem:[#allocation2 + $0x260] sm:$0xf0]  ;;  %v1038_v20 = vpack.c.bf16 %v1028_v4, %v1027_v60  ;;  %1043 = vst [vmem:[#allocation2 + $0x208] sm:$0xff] %v1034_v11  ;;  %v1463_v21 = vcvt.s32.f32 %v1447_v5  ;;  %v1448_v22 = vshrl.u32 %v4522_v63, 28  ;;  %v1456_v23 = vcvt.s32.f32 %v1440_v9 }
  0xb6   : > { %v3052_v24 = vor.u32 %v3747_v18, %v3051_v12  ;;  %v3056_v25 = vor.u32 %v3743_v13, %v3053_v19  ;;  %v1468_v26 = vpack.c.bf16 %v1455_v15, %v1454_v14  ;;  %v1449_v27 = vshrl.u32 %v4526_v6, 28 }
  0xb7   : > { %v3059_v28 = vld [vmem:[#allocation2 + $0x248] sm:$0xf]  ;;  %v3744_v29 = vld [vmem:[#allocation2 + $0x24c] sm:$0xf]  ;;  %1047 = vst [vmem:[#allocation2 + $0x228] sm:$0xff] %v1038_v20  ;;  %v1472_v30 = vpack.c.bf16 %v1463_v21, %v1462_v16  ;;  %v1457_v31 = vcvt.s32.f32 %v1441_v17  ;;  %v1464_v32 = vcvt.s32.f32 %v1448_v22  ;;  %v1374_v33 = vshrl.u32 %v4497_v40, 24 }
  0xb8   : > { %1874 = vmatpush.bf16.msra.mxu0 %v3052_v24  ;;  %1887 = vmatpush.bf16.msra.mxu1 %v3056_v25  ;;  %v3748_v34 = vld [vmem:[#allocation2 + $0x264] sm:$0xf0]  ;;  %v3061_v35 = vld [vmem:[#allocation2 + $0x268] sm:$0xf0]  ;;  %1476 = vst [vmem:[#allocation2 + $0x3d0] sm:$0xff] %v1468_v26  ;;  %v1465_v36 = vcvt.s32.f32 %v1449_v27  ;;  %v1375_v37 = vshrl.u32 %v4500_v41, 24 }
  0xb9   : > { %v3060_v38 = vor.u32 %v3748_v34, %v3059_v28  ;;  %v3064_v39 = vor.u32 %v3744_v29, %v3061_v35  ;;  %v3019_v0 = vld [vmem:[#allocation2 + $0x200] sm:$0xf]  ;;  %v3735_v42 = vld [vmem:[#allocation2 + $0x204] sm:$0xf]  ;;  %1480 = vst [vmem:[#allocation2 + $0x3f0] sm:$0xff] %v1472_v30  ;;  %v1469_v1 = vpack.c.bf16 %v1457_v31, %v1456_v23  ;;  %v1382_v43 = vshrl.u32 %v4505_v50, 24 }
  0xba   : > { %v3739_v44 = vld [vmem:[#allocation2 + $0x21c] sm:$0xf0]  ;;  %v3021_v45 = vld [vmem:[#allocation2 + $0x220] sm:$0xf0]  ;;  %v1473_v2 = vpack.c.bf16 %v1465_v36, %v1464_v32  ;;  %v1383_v46 = vshrl.u32 %v4509_v55, 24  ;;  %v1390_v3 = vand.u32 15, %v1374_v33 }
  0xbb   : > { %1900 = vmatpush.bf16.msra.mxu2 %v3060_v38  ;;  %1913 = vmatpush.bf16.msra.mxu3 %v3064_v39  ;;  %v3020_v47 = vor.u32 %v3739_v44, %v3019_v0  ;;  %v3024_v48 = vor.u32 %v3735_v42, %v3021_v45  ;;  %1477 = vst [vmem:[#allocation2 + $0x3d8] sm:$0xff] %v1469_v1  ;;  %v1391_v49 = vand.u32 15, %v1375_v37  ;;  %v1398_v51 = vand.u32 15, %v1382_v43 }
  0xbc   : > { %v3027_v52 = vld [vmem:[#allocation2 + $0x208] sm:$0xf]  ;;  %v3736_v53 = vld [vmem:[#allocation2 + $0x20c] sm:$0xf]  ;;  %1481 = vst [vmem:[#allocation2 + $0x3f8] sm:$0xff] %v1473_v2  ;;  %v1399_v54 = vand.u32 15, %v1383_v46  ;;  %v1406_v56 = vcvt.s32.f32 %v1390_v3 }
  0xbd   : > { %1875 = vmatpush.bf16.msra.mxu0 %v3020_v47  ;;  %1888 = vmatpush.bf16.msra.mxu1 %v3024_v48  ;;  %v1407_v57 = vcvt.s32.f32 %v1391_v49  ;;  %v1414_v58 = vcvt.s32.f32 %v1398_v51  ;;  %v1376_v8 = vshrl.u32 %v4512_v7, 24  ;;  %v1377_v60 = vshrl.u32 %v4516_v59, 24 }
  0xbe   : > { %v3740_v10 = vld [vmem:[#allocation2 + $0x224] sm:$0xf0]  ;;  %v3029_v61 = vld [vmem:[#allocation2 + $0x228] sm:$0xf0]  ;;  %v1415_v62 = vcvt.s32.f32 %v1399_v54  ;;  %v1384_v4 = vshrl.u32 %v4522_v63, 24  ;;  %v1385_v11 = vshrl.u32 %v4526_v6, 24 }
  0xbf   : > { %v3028_v5 = vor.u32 %v3740_v10, %v3027_v52  ;;  %v3032_v9 = vor.u32 %v3736_v53, %v3029_v61  ;;  %v3259_v12 = vld [vmem:[#allocation2 + $0x3d0] sm:$0xf]  ;;  %v3793_v13 = vld [vmem:[#allocation2 + $0x3d4] sm:$0xf]  ;;  %v1420_v14 = vpack.c.bf16 %v1407_v57, %v1406_v56  ;;  %v1392_v15 = vand.u32 15, %v1376_v8 }
  0xc0   : > { %v3797_v16 = vld [vmem:[#allocation2 + $0x3ec] sm:$0xf0]  ;;  %v3261_v17 = vld [vmem:[#allocation2 + $0x3f0] sm:$0xf0]  ;;  %v1424_v18 = vpack.c.bf16 %v1415_v62, %v1414_v58  ;;  %v1393_v19 = vand.u32 15, %v1377_v60  ;;  %v1400_v20 = vand.u32 15, %v1384_v4 }
  0xc1   : > { %1901 = vmatpush.bf16.msra.mxu2 %v3028_v5  ;;  %1914 = vmatpush.bf16.msra.mxu3 %v3032_v9  ;;  %v3260_v21 = vor.u32 %v3797_v16, %v3259_v12  ;;  %v3264_v22 = vor.u32 %v3793_v13, %v3261_v17  ;;  %1428 = vst [vmem:[#allocation2 + $0x390] sm:$0xff] %v1420_v14  ;;  %v1401_v23 = vand.u32 15, %v1385_v11  ;;  %v1408_v24 = vcvt.s32.f32 %v1392_v15 }
  0xc2   : > { %v3267_v25 = vld [vmem:[#allocation2 + $0x3d8] sm:$0xf]  ;;  %v3794_v26 = vld [vmem:[#allocation2 + $0x3dc] sm:$0xf]  ;;  %1432 = vst [vmem:[#allocation2 + $0x3b0] sm:$0xff] %v1424_v18  ;;  %v1409_v27 = vcvt.s32.f32 %v1393_v19  ;;  %v1416_v28 = vcvt.s32.f32 %v1400_v20  ;;  %v1310_v29 = vshrl.u32 %v4497_v40, 20 }
  0xc3   : > { %1920 = vmatpush.bf16.msrb.mxu0 %v3260_v21  ;;  %1933 = vmatpush.bf16.msrb.mxu1 %v3264_v22  ;;  %v3798_v30 = vld [vmem:[#allocation2 + $0x3f4] sm:$0xf0]  ;;  %v3269_v31 = vld [vmem:[#allocation2 + $0x3f8] sm:$0xf0]  ;;  %v1417_v32 = vcvt.s32.f32 %v1401_v23  ;;  %v1311_v33 = vshrl.u32 %v4500_v41, 20  ;;  %v1318_v34 = vshrl.u32 %v4505_v50, 20 }
  0xc4   : > { %v3268_v35 = vor.u32 %v3798_v30, %v3267_v25  ;;  %v3272_v36 = vor.u32 %v3794_v26, %v3269_v31  ;;  %v1421_v37 = vpack.c.bf16 %v1409_v27, %v1408_v24  ;;  %v1319_v38 = vshrl.u32 %v4509_v55, 20 }
  0xc5   : > { %v1425_v39 = vpack.c.bf16 %v1417_v32, %v1416_v28  ;;  %v1326_v0 = vand.u32 15, %v1310_v29  ;;  %v1327_v42 = vand.u32 15, %v1311_v33  ;;  %v1334_v1 = vand.u32 15, %v1318_v34 }
  0xc6   : > { %1946 = vmatpush.bf16.msrb.mxu2 %v3268_v35  ;;  %1959 = vmatpush.bf16.msrb.mxu3 %v3272_v36  ;;  %1429 = vst [vmem:[#allocation2 + $0x398] sm:$0xff] %v1421_v37  ;;  %v1335_v43 = vand.u32 15, %v1319_v38  ;;  %v1312_v44 = vshrl.u32 %v4512_v7, 20  ;;  %v1313_v45 = vshrl.u32 %v4516_v59, 20  ;;  %v1320_v2 = vshrl.u32 %v4522_v63, 20 }
  0xc7   : > { %1433 = vst [vmem:[#allocation2 + $0x3b8] sm:$0xff] %v1425_v39  ;;  %v1342_v46 = vcvt.s32.f32 %v1326_v0  ;;  %v1343_v3 = vcvt.s32.f32 %v1327_v42  ;;  %v1350_v47 = vcvt.s32.f32 %v1334_v1  ;;  %v1321_v48 = vshrl.u32 %v4526_v6, 20 }
  0xc8   : > { %v3227_v49 = vld [vmem:[#allocation2 + $0x390] sm:$0xf]  ;;  %v3785_v51 = vld [vmem:[#allocation2 + $0x394] sm:$0xf]  ;;  %v1351_v52 = vcvt.s32.f32 %v1335_v43  ;;  %v1328_v53 = vand.u32 15, %v1312_v44  ;;  %v1329_v54 = vand.u32 15, %v1313_v45 }
  0xc9   : > { %v3789_v56 = vld [vmem:[#allocation2 + $0x3ac] sm:$0xf0]  ;;  %v3229_v57 = vld [vmem:[#allocation2 + $0x3b0] sm:$0xf0]  ;;  %v1356_v58 = vpack.c.bf16 %v1343_v3, %v1342_v46  ;;  %v1336_v8 = vand.u32 15, %v1320_v2  ;;  %v1337_v60 = vand.u32 15, %v1321_v48 }
  0xca   : > { %v3228_v10 = vor.u32 %v3789_v56, %v3227_v49  ;;  %v3232_v61 = vor.u32 %v3785_v51, %v3229_v57  ;;  %v1360_v62 = vpack.c.bf16 %v1351_v52, %v1350_v47  ;;  %v1344_v4 = vcvt.s32.f32 %v1328_v53 }
  0xcb   : > { %1364 = vst [vmem:[#allocation2 + $0x350] sm:$0xff] %v1356_v58  ;;  %v1345_v11 = vcvt.s32.f32 %v1329_v54  ;;  %v1352_v5 = vcvt.s32.f32 %v1336_v8  ;;  %v1353_v9 = vcvt.s32.f32 %v1337_v60  ;;  %v1246_v12 = vshrl.u32 %v4497_v40, 16  ;;  %v4560_v58 = vld [vmem:[#allocation3 + $0x1] sm:$0x1] }
  0xcc   : > { %1921 = vmatpush.bf16.msrb.mxu0 %v3228_v10  ;;  %1934 = vmatpush.bf16.msrb.mxu1 %v3232_v61  ;;  %1368 = vst [vmem:[#allocation2 + $0x370] sm:$0xff] %v1360_v62  ;;  %v1247_v13 = vshrl.u32 %v4500_v41, 16  ;;  %v1254_v14 = vshrl.u32 %v4505_v50, 16  ;;  %v1255_v15 = vshrl.u32 %v4509_v55, 16  ;;  %v1248_v16 = vshrl.u32 %v4512_v7, 16 }
  0xcd   : > { %v3235_v17 = vld [vmem:[#allocation2 + $0x398] sm:$0xf]  ;;  %v3786_v18 = vld [vmem:[#allocation2 + $0x39c] sm:$0xf]  ;;  %v1357_v19 = vpack.c.bf16 %v1345_v11, %v1344_v4  ;;  %v1361_v20 = vpack.c.bf16 %v1353_v9, %v1352_v5  ;;  %v1262_v21 = vand.u32 15, %v1246_v12  ;;  %v1249_v22 = vshrl.u32 %v4516_v59, 16  ;;  %1902 = vmatmul.bf16.vlgmr.msra.gmra.mxu2 %v4560_v58  ;;  %1915 = vmatmul.bf16.vlgmr.msra.gmra.mxu3 %v4560_v58 }
  0xce   : > { %v3790_v23 = vld [vmem:[#allocation2 + $0x3b4] sm:$0xf0]  ;;  %v3237_v24 = vld [vmem:[#allocation2 + $0x3b8] sm:$0xf0]  ;;  %v1263_v25 = vand.u32 15, %v1247_v13  ;;  %v1270_v26 = vand.u32 15, %v1254_v14  ;;  %1876 = vmatmul.bf16.vlgmr.msra.gmra.mxu0 %v4560_v58  ;;  %1889 = vmatmul.bf16.vlgmr.msra.gmra.mxu1 %v4560_v58 }
  0xcf   : > { %v3236_v27 = vor.u32 %v3790_v23, %v3235_v17  ;;  %v3240_v28 = vor.u32 %v3786_v18, %v3237_v24  ;;  %1365 = vst [vmem:[#allocation2 + $0x358] sm:$0xff] %v1357_v19  ;;  %v1271_v29 = vand.u32 15, %v1255_v15  ;;  %v1278_v30 = vcvt.s32.f32 %v1262_v21 }
  0xd0   : > { %1369 = vst [vmem:[#allocation2 + $0x378] sm:$0xff] %v1361_v20  ;;  %v1279_v31 = vcvt.s32.f32 %v1263_v25  ;;  %v1286_v32 = vcvt.s32.f32 %v1270_v26  ;;  %v1256_v33 = vshrl.u32 %v4522_v63, 16  ;;  %v1257_v34 = vshrl.u32 %v4526_v6, 16 }
  0xd1   : > { %1947 = vmatpush.bf16.msrb.mxu2 %v3236_v27  ;;  %1960 = vmatpush.bf16.msrb.mxu3 %v3240_v28  ;;  %v1287_v35 = vcvt.s32.f32 %v1271_v29  ;;  %v1264_v36 = vand.u32 15, %v1248_v16  ;;  %v1265_v37 = vand.u32 15, %v1249_v22  ;;  %v1182_v38 = vshrl.u32 %v4497_v40, 12 }
  0xd2   : > { %v3195_v39 = vld [vmem:[#allocation2 + $0x350] sm:$0xf]  ;;  %v3777_v0 = vld [vmem:[#allocation2 + $0x354] sm:$0xf]  ;;  %v1292_v42 = vpack.c.bf16 %v1279_v31, %v1278_v30  ;;  %v1272_v1 = vand.u32 15, %v1256_v33  ;;  %v1273_v43 = vand.u32 15, %v1257_v34 }
  0xd3   : > { %v3781_v44 = vld [vmem:[#allocation2 + $0x36c] sm:$0xf0]  ;;  %v3197_v45 = vld [vmem:[#allocation2 + $0x370] sm:$0xf0]  ;;  %v1296_v2 = vpack.c.bf16 %v1287_v35, %v1286_v32  ;;  %v1280_v46 = vcvt.s32.f32 %v1264_v36  ;;  %v1281_v3 = vcvt.s32.f32 %v1265_v37  ;;  %v1183_v47 = vshrl.u32 %v4500_v41, 12 }
  0xd4   : > { %v3196_v48 = vor.u32 %v3781_v44, %v3195_v39  ;;  %v3200_v49 = vor.u32 %v3777_v0, %v3197_v45  ;;  %1300 = vst [vmem:[#allocation2 + $0x310] sm:$0xff] %v1292_v42  ;;  %v1288_v51 = vcvt.s32.f32 %v1272_v1  ;;  %v1289_v52 = vcvt.s32.f32 %v1273_v43 }
  0xd5   : > { %1304 = vst [vmem:[#allocation2 + $0x330] sm:$0xff] %v1296_v2  ;;  %v1293_v53 = vpack.c.bf16 %v1281_v3, %v1280_v46  ;;  %v1190_v54 = vshrl.u32 %v4505_v50, 12  ;;  %v1191_v56 = vshrl.u32 %v4509_v55, 12  ;;  %v1198_v57 = vand.u32 15, %v1182_v38 }
  0xd6   : > { %1922 = vmatpush.bf16.msrb.mxu0 %v3196_v48  ;;  %1935 = vmatpush.bf16.msrb.mxu1 %v3200_v49  ;;  %v3203_v8 = vld [vmem:[#allocation2 + $0x358] sm:$0xf]  ;;  %v3778_v60 = vld [vmem:[#allocation2 + $0x35c] sm:$0xf]  ;;  %v1297_v10 = vpack.c.bf16 %v1289_v52, %v1288_v51  ;;  %v1199_v61 = vand.u32 15, %v1183_v47  ;;  %v1184_v62 = vshrl.u32 %v4512_v7, 12 }
  0xd7   : > { %v3782_v4 = vld [vmem:[#allocation2 + $0x374] sm:$0xf0]  ;;  %v3205_v11 = vld [vmem:[#allocation2 + $0x378] sm:$0xf0]  ;;  %1301 = vst [vmem:[#allocation2 + $0x318] sm:$0xff] %v1293_v53  ;;  %v1206_v5 = vand.u32 15, %v1190_v54  ;;  %v1214_v9 = vcvt.s32.f32 %v1198_v57 }
  0xd8   : > { %v3204_v12 = vor.u32 %v3782_v4, %v3203_v8  ;;  %v3208_v13 = vor.u32 %v3778_v60, %v3205_v11  ;;  %1305 = vst [vmem:[#allocation2 + $0x338] sm:$0xff] %v1297_v10  ;;  %v1207_v14 = vand.u32 15, %v1191_v56  ;;  %v1215_v15 = vcvt.s32.f32 %v1199_v61 }
  0xd9   : > { %v1222_v16 = vcvt.s32.f32 %v1206_v5  ;;  %v1185_v17 = vshrl.u32 %v4516_v59, 12  ;;  %v1192_v18 = vshrl.u32 %v4522_v63, 12  ;;  %v1193_v19 = vshrl.u32 %v4526_v6, 12 }
  0xda   : > { %1948 = vmatpush.bf16.msrb.mxu2 %v3204_v12  ;;  %1961 = vmatpush.bf16.msrb.mxu3 %v3208_v13  ;;  %v1223_v20 = vcvt.s32.f32 %v1207_v14  ;;  %v1228_v21 = vpack.c.bf16 %v1215_v15, %v1214_v9  ;;  %v1200_v22 = vand.u32 15, %v1184_v62  ;;  %v1118_v23 = vshrl.u32 %v4497_v40, 8 }
  0xdb   : > { %v3163_v24 = vld [vmem:[#allocation2 + $0x310] sm:$0xf]  ;;  %v3769_v25 = vld [vmem:[#allocation2 + $0x314] sm:$0xf]  ;;  %v1201_v26 = vand.u32 15, %v1185_v17  ;;  %v1208_v27 = vand.u32 15, %v1192_v18 }
  0xdc   : > { %v3773_v28 = vld [vmem:[#allocation2 + $0x32c] sm:$0xf0]  ;;  %v3165_v29 = vld [vmem:[#allocation2 + $0x330] sm:$0xf0]  ;;  %v1232_v30 = vpack.c.bf16 %v1223_v20, %v1222_v16  ;;  %1236 = vst [vmem:[#allocation2 + $0x2d0] sm:$0xff] %v1228_v21  ;;  %v1209_v31 = vand.u32 15, %v1193_v19  ;;  %v1216_v32 = vcvt.s32.f32 %v1200_v22 }
  0xdd   : > { %v3164_v33 = vor.u32 %v3773_v28, %v3163_v24  ;;  %v3168_v34 = vor.u32 %v3769_v25, %v3165_v29  ;;  %v1217_v35 = vcvt.s32.f32 %v1201_v26  ;;  %v1224_v36 = vcvt.s32.f32 %v1208_v27 }
  0xde   : > { %v3171_v37 = vld [vmem:[#allocation2 + $0x318] sm:$0xf]  ;;  %v3770_v38 = vld [vmem:[#allocation2 + $0x31c] sm:$0xf]  ;;  %1240 = vst [vmem:[#allocation2 + $0x2f0] sm:$0xff] %v1232_v30  ;;  %v1225_v39 = vcvt.s32.f32 %v1209_v31  ;;  %v1119_v0 = vshrl.u32 %v4500_v41, 8 }
  0xdf   : > { %1923 = vmatpush.bf16.msrb.mxu0 %v3164_v33  ;;  %1936 = vmatpush.bf16.msrb.mxu1 %v3168_v34  ;;  %v3774_v42 = vld [vmem:[#allocation2 + $0x334] sm:$0xf0]  ;;  %v3173_v1 = vld [vmem:[#allocation2 + $0x338] sm:$0xf0]  ;;  %v1229_v43 = vpack.c.bf16 %v1217_v35, %v1216_v32  ;;  %v1126_v44 = vshrl.u32 %v4505_v50, 8  ;;  %v1127_v45 = vshrl.u32 %v4509_v55, 8 }
  0xe0   : > { %v3172_v2 = vor.u32 %v3774_v42, %v3171_v37  ;;  %v3176_v46 = vor.u32 %v3770_v38, %v3173_v1  ;;  %v1233_v3 = vpack.c.bf16 %v1225_v39, %v1224_v36  ;;  %v1134_v47 = vand.u32 15, %v1118_v23 }
  0xe1   : > { %1237 = vst [vmem:[#allocation2 + $0x2d8] sm:$0xff] %v1229_v43  ;;  %v1135_v48 = vand.u32 15, %v1119_v0  ;;  %v1142_v49 = vand.u32 15, %v1126_v44  ;;  %v1143_v51 = vand.u32 15, %v1127_v45  ;;  %v1120_v52 = vshrl.u32 %v4512_v7, 8 }
  0xe2   : > { %1949 = vmatpush.bf16.msrb.mxu2 %v3172_v2  ;;  %1962 = vmatpush.bf16.msrb.mxu3 %v3176_v46  ;;  %1241 = vst [vmem:[#allocation2 + $0x2f8] sm:$0xff] %v1233_v3  ;;  %v1150_v53 = vcvt.s32.f32 %v1134_v47  ;;  %v1121_v54 = vshrl.u32 %v4516_v59, 8  ;;  %v1128_v56 = vshrl.u32 %v4522_v63, 8  ;;  %v1129_v57 = vshrl.u32 %v4526_v6, 8 }
  0xe3   : > { %v3131_v8 = vld [vmem:[#allocation2 + $0x2d0] sm:$0xf]  ;;  %v3761_v60 = vld [vmem:[#allocation2 + $0x2d4] sm:$0xf]  ;;  %v1151_v10 = vcvt.s32.f32 %v1135_v48  ;;  %v1158_v61 = vcvt.s32.f32 %v1142_v49  ;;  %v1159_v62 = vcvt.s32.f32 %v1143_v51  ;;  %v1136_v4 = vand.u32 15, %v1120_v52 }
  0xe4   : > { %v1137_v11 = vand.u32 15, %v1121_v54  ;;  %v1144_v5 = vand.u32 15, %v1128_v56  ;;  %v1145_v9 = vand.u32 15, %v1129_v57  ;;  %v1054_v12 = vshrl.u32 %v4497_v40, 4 }
  0xe5   : > { %v3765_v13 = vld [vmem:[#allocation2 + $0x2ec] sm:$0xf0]  ;;  %v3133_v14 = vld [vmem:[#allocation2 + $0x2f0] sm:$0xf0]  ;;  %v1164_v15 = vpack.c.bf16 %v1151_v10, %v1150_v53  ;;  %v1168_v16 = vpack.c.bf16 %v1159_v62, %v1158_v61  ;;  %v1152_v17 = vcvt.s32.f32 %v1136_v4  ;;  %v1055_v18 = vshrl.u32 %v4500_v41, 4 }
  0xe6   : > { %v3132_v19 = vor.u32 %v3765_v13, %v3131_v8  ;;  %v3136_v20 = vor.u32 %v3761_v60, %v3133_v14  ;;  %v1153_v21 = vcvt.s32.f32 %v1137_v11  ;;  %v1160_v22 = vcvt.s32.f32 %v1144_v5 }
  0xe7   : > { %1172 = vst [vmem:[#allocation2 + $0x290] sm:$0xff] %v1164_v15  ;;  %v1161_v23 = vcvt.s32.f32 %v1145_v9  ;;  %v1062_v24 = vshrl.u32 %v4505_v50, 4  ;;  %v1063_v25 = vshrl.u32 %v4509_v55, 4  ;;  %v1070_v26 = vand.u32 15, %v1054_v12  ;;  %v4591_v9 = vld [vmem:[%s4406_s19] sm:$0xff] }
  0xe8   : > { %1924 = vmatpush.bf16.msrb.mxu0 %v3132_v19  ;;  %1937 = vmatpush.bf16.msrb.mxu1 %v3136_v20  ;;  %v3139_v27 = vld [vmem:[#allocation2 + $0x2d8] sm:$0xf]  ;;  %v3762_v28 = vld [vmem:[#allocation2 + $0x2dc] sm:$0xf]  ;;  %1176 = vst [vmem:[#allocation2 + $0x2b0] sm:$0xff] %v1168_v16  ;;  %v1165_v29 = vpack.c.bf16 %v1153_v21, %v1152_v17  ;;  %v1071_v30 = vand.u32 15, %v1055_v18 }
  0xe9   : > { %v3766_v31 = vld [vmem:[#allocation2 + $0x2f4] sm:$0xf0]  ;;  %v3141_v32 = vld [vmem:[#allocation2 + $0x2f8] sm:$0xf0]  ;;  %v1169_v33 = vpack.c.bf16 %v1161_v23, %v1160_v22  ;;  %v1078_v34 = vand.u32 15, %v1062_v24  ;;  %v1079_v35 = vand.u32 15, %v1063_v25  ;;  %v1086_v36 = vcvt.s32.f32 %v1070_v26 }
  0xea   : > { %v3140_v37 = vor.u32 %v3766_v31, %v3139_v27  ;;  %v3144_v38 = vor.u32 %v3762_v28, %v3141_v32  ;;  %1173 = vst [vmem:[#allocation2 + $0x298] sm:$0xff] %v1165_v29  ;;  %v1087_v39 = vcvt.s32.f32 %v1071_v30  ;;  %v1056_v0 = vshrl.u32 %v4512_v7, 4  ;;  %v4595_v18 = vld [vmem:[%s4406_s19 + $0x8] sm:$0xff]  ;;  %v4601_v26 = vld [vmem:[%s4406_s19 + $0x40] sm:$0xff]  ;;  %v4607_v28 = vld [vmem:[%s4406_s19 + $0x10] sm:$0xff] }
  0xeb   : > { %1177 = vst [vmem:[#allocation2 + $0x2b8] sm:$0xff] %v1169_v33  ;;  %v1094_v42 = vcvt.s32.f32 %v1078_v34  ;;  %v1095_v1 = vcvt.s32.f32 %v1079_v35  ;;  %v1057_v43 = vshrl.u32 %v4516_v59, 4  ;;  %v1064_v44 = vshrl.u32 %v4522_v63, 4  ;;  %v4604_v27 = vld [vmem:[%s4406_s19 + $0x48] sm:$0xff]  ;;  %v4614_v32 = vld [vmem:[%s4406_s19 + $0x50] sm:$0xff]  ;;  %v4617_v33 = vld [vmem:[%s4406_s19 + $0x58] sm:$0xff] }
  0xec   : > { %1950 = vmatpush.bf16.msrb.mxu2 %v3140_v37  ;;  %1963 = vmatpush.bf16.msrb.mxu3 %v3144_v38  ;;  %v1100_v45 = vpack.c.bf16 %v1087_v39, %v1086_v36  ;;  %v1065_v2 = vshrl.u32 %v4526_v6, 4  ;;  %v1072_v46 = vand.u32 15, %v1056_v0  ;;  %v1005_v3 = vand.u32 15, %v4497_v40 }
  0xed   : > { %v1104_v47 = vpack.c.bf16 %v1095_v1, %v1094_v42  ;;  %v1073_v48 = vand.u32 15, %v1057_v43  ;;  %v1080_v49 = vand.u32 15, %v1064_v44  ;;  %v1006_v51 = vand.u32 15, %v4500_v41 }
  0xee   : > { %v3099_v52 = vld [vmem:[#allocation2 + $0x290] sm:$0xf]  ;;  %v3753_v53 = vld [vmem:[#allocation2 + $0x294] sm:$0xf]  ;;  %1108 = vst [vmem:[#allocation2 + $0x250] sm:$0xff] %v1100_v45  ;;  %v1081_v54 = vand.u32 15, %v1065_v2  ;;  %v1088_v56 = vcvt.s32.f32 %v1072_v46  ;;  %v1021_v57 = vcvt.s32.f32 %v1005_v3 }
  0xef   : > { %v3757_v8 = vld [vmem:[#allocation2 + $0x2ac] sm:$0xf0]  ;;  %v3101_v60 = vld [vmem:[#allocation2 + $0x2b0] sm:$0xf0]  ;;  %1112 = vst [vmem:[#allocation2 + $0x270] sm:$0xff] %v1104_v47  ;;  %v1089_v10 = vcvt.s32.f32 %v1073_v48  ;;  %v1096_v61 = vcvt.s32.f32 %v1080_v49  ;;  %v1013_v40 = vand.u32 15, %v4505_v50  ;;  %v1022_v62 = vcvt.s32.f32 %v1006_v51 }
  0xf0   : > { %v3100_v4 = vor.u32 %v3757_v8, %v3099_v52  ;;  %v3104_v11 = vor.u32 %v3753_v53, %v3101_v60  ;;  %v1097_v5 = vcvt.s32.f32 %v1081_v54  ;;  %v1014_v41 = vand.u32 15, %v4509_v55 }
  0xf1   : > { %v3107_v12 = vld [vmem:[#allocation2 + $0x298] sm:$0xf]  ;;  %v3754_v13 = vld [vmem:[#allocation2 + $0x29c] sm:$0xf]  ;;  %v1101_v14 = vpack.c.bf16 %v1089_v10, %v1088_v56  ;;  %v1029_v15 = vcvt.s32.f32 %v1013_v40  ;;  %v1035_v16 = vpack.c.bf16 %v1022_v62, %v1021_v57  ;;  %v1007_v17 = vand.u32 15, %v4512_v7 }
  0xf2   : > { %1925 = vmatpush.bf16.msrb.mxu0 %v3100_v4  ;;  %1938 = vmatpush.bf16.msrb.mxu1 %v3104_v11  ;;  %v3758_v50 = vld [vmem:[#allocation2 + $0x2b4] sm:$0xf0]  ;;  %v3109_v19 = vld [vmem:[#allocation2 + $0x2b8] sm:$0xf0]  ;;  %v1105_v20 = vpack.c.bf16 %v1097_v5, %v1096_v61  ;;  %v1030_v55 = vcvt.s32.f32 %v1014_v41  ;;  %v1008_v21 = vand.u32 15, %v4516_v59  ;;  %v1015_v22 = vand.u32 15, %v4522_v63 }
  0xf3   : > { %v3108_v23 = vor.u32 %v3758_v50, %v3107_v12  ;;  %v3112_v24 = vor.u32 %v3754_v13, %v3109_v19  ;;  %1109 = vst [vmem:[#allocation2 + $0x258] sm:$0xff] %v1101_v14  ;;  %v1016_v7 = vand.u32 15, %v4526_v6  ;;  %v1023_v25 = vcvt.s32.f32 %v1007_v17  ;;  %v4611_v63 = vld [vmem:[%s4406_s19 + $0x18] sm:$0xff] }
  0xf4   : > { %1113 = vst [vmem:[#allocation2 + $0x278] sm:$0xff] %v1105_v20  ;;  %v1039_v29 = vpack.c.bf16 %v1030_v55, %v1029_v15  ;;  %v1024_v30 = vcvt.s32.f32 %v1008_v21  ;;  %v1031_v59 = vcvt.s32.f32 %v1015_v22  ;;  %v869_v31 = vshrl.u32 %v4591_v9, 28 }
  0xf5   : > { %1951 = vmatpush.bf16.msrb.mxu2 %v3108_v23  ;;  %1964 = vmatpush.bf16.msrb.mxu3 %v3112_v24  ;;  %v3067_v6 = vld [vmem:[#allocation2 + $0x250] sm:$0xf]  ;;  %v3745_v34 = vld [vmem:[#allocation2 + $0x254] sm:$0xf]  ;;  %1044 = vst [vmem:[#allocation2 + $0x210] sm:$0xff] %v1035_v16  ;;  %v1032_v35 = vcvt.s32.f32 %v1016_v7  ;;  %v870_v36 = vshrl.u32 %v4595_v18, 28 }
  0xf6   : > { %v3749_v37 = vld [vmem:[#allocation2 + $0x26c] sm:$0xf0]  ;;  %v3069_v38 = vld [vmem:[#allocation2 + $0x270] sm:$0xf0]  ;;  %1048 = vst [vmem:[#allocation2 + $0x230] sm:$0xff] %v1039_v29  ;;  %v1036_v39 = vpack.c.bf16 %v1024_v30, %v1023_v25  ;;  %v877_v0 = vshrl.u32 %v4601_v26, 28  ;;  %v885_v42 = vcvt.s32.f32 %v869_v31 }
  0xf7   : > { %v3068_v1 = vor.u32 %v3749_v37, %v3067_v6  ;;  %v3072_v43 = vor.u32 %v3745_v34, %v3069_v38  ;;  %v1040_v44 = vpack.c.bf16 %v1032_v35, %v1031_v59  ;;  %v878_v45 = vshrl.u32 %v4604_v27, 28 }
  0xf8   : > { %1045 = vst [vmem:[#allocation2 + $0x218] sm:$0xff] %v1036_v39  ;;  %v886_v2 = vcvt.s32.f32 %v870_v36  ;;  %v893_v46 = vcvt.s32.f32 %v877_v0  ;;  %v871_v3 = vshrl.u32 %v4607_v28, 28  ;;  %v872_v47 = vshrl.u32 %v4611_v63, 28 }
  0xf9   : > { %1926 = vmatpush.bf16.msrb.mxu0 %v3068_v1  ;;  %1939 = vmatpush.bf16.msrb.mxu1 %v3072_v43  ;;  %1049 = vst [vmem:[#allocation2 + $0x238] sm:$0xff] %v1040_v44  ;;  %v894_v48 = vcvt.s32.f32 %v878_v45  ;;  %v879_v49 = vshrl.u32 %v4614_v32, 28  ;;  %v880_v51 = vshrl.u32 %v4617_v33, 28  ;;  %v805_v52 = vshrl.u32 %v4591_v9, 24 }
  0xfa   : > { %v3075_v53 = vld [vmem:[#allocation2 + $0x258] sm:$0xf]  ;;  %v3746_v54 = vld [vmem:[#allocation2 + $0x25c] sm:$0xf]  ;;  %v901_v56 = vpack.c.bf16 %v886_v2, %v885_v42  ;;  %v887_v57 = vcvt.s32.f32 %v871_v3  ;;  %v888_v8 = vcvt.s32.f32 %v872_v47  ;;  %v806_v60 = vshrl.u32 %v4595_v18, 24 }
  0xfb   : > { %v3750_v10 = vld [vmem:[#allocation2 + $0x274] sm:$0xf0]  ;;  %v3077_v61 = vld [vmem:[#allocation2 + $0x278] sm:$0xf0]  ;;  %v905_v40 = vpack.c.bf16 %v894_v48, %v893_v46  ;;  %v895_v62 = vcvt.s32.f32 %v879_v49  ;;  %v896_v4 = vcvt.s32.f32 %v880_v51  ;;  %v813_v11 = vshrl.u32 %v4601_v26, 24 }
  0xfc   : > { %v3076_v5 = vor.u32 %v3750_v10, %v3075_v53  ;;  %v3080_v41 = vor.u32 %v3746_v54, %v3077_v61  ;;  %v3035_v12 = vld [vmem:[#allocation2 + $0x210] sm:$0xf]  ;;  %v3737_v13 = vld [vmem:[#allocation2 + $0x214] sm:$0xf]  ;;  %909 = vst [vmem:[#allocation2 + $0x1c0] sm:$0xff] %v901_v56  ;;  %v902_v14 = vpack.c.bf16 %v888_v8, %v887_v57  ;;  %v814_v15 = vshrl.u32 %v4604_v27, 24 }
  0xfd   : > { %v3741_v16 = vld [vmem:[#allocation2 + $0x22c] sm:$0xf0]  ;;  %v3037_v17 = vld [vmem:[#allocation2 + $0x230] sm:$0xf0]  ;;  %913 = vst [vmem:[#allocation2 + $0x1e0] sm:$0xff] %v905_v40  ;;  %v906_v50 = vpack.c.bf16 %v896_v4, %v895_v62  ;;  %v821_v19 = vand.u32 15, %v805_v52 }
  0xfe   : > { %1952 = vmatpush.bf16.msrb.mxu2 %v3076_v5  ;;  %1965 = vmatpush.bf16.msrb.mxu3 %v3080_v41  ;;  %v3036_v20 = vor.u32 %v3741_v16, %v3035_v12  ;;  %v3040_v55 = vor.u32 %v3737_v13, %v3037_v17  ;;  %910 = vst [vmem:[#allocation2 + $0x1c8] sm:$0xff] %v902_v14  ;;  %v822_v21 = vand.u32 15, %v806_v60  ;;  %v829_v22 = vand.u32 15, %v813_v11 }
  0xff   : > { %v3043_v23 = vld [vmem:[#allocation2 + $0x218] sm:$0xf]  ;;  %v3738_v24 = vld [vmem:[#allocation2 + $0x21c] sm:$0xf]  ;;  %914 = vst [vmem:[#allocation2 + $0x1e8] sm:$0xff] %v906_v50  ;;  %v830_v7 = vand.u32 15, %v814_v15  ;;  %v837_v25 = vcvt.s32.f32 %v821_v19 }
 0x100   : > { %1927 = vmatpush.bf16.msrb.mxu0 %v3036_v20  ;;  %1940 = vmatpush.bf16.msrb.mxu1 %v3040_v55  ;;  %v3742_v29 = vld [vmem:[#allocation2 + $0x234] sm:$0xf0]  ;;  %v3045_v30 = vld [vmem:[#allocation2 + $0x238] sm:$0xf0]  ;;  %v838_v59 = vcvt.s32.f32 %v822_v21  ;;  %v845_v31 = vcvt.s32.f32 %v829_v22  ;;  %v807_v6 = vshrl.u32 %v4607_v28, 24  ;;  %v808_v34 = vshrl.u32 %v4611_v63, 24 }
 0x101   : > { %v3044_v35 = vor.u32 %v3742_v29, %v3043_v23  ;;  %v3048_v36 = vor.u32 %v3738_v24, %v3045_v30  ;;  %v846_v37 = vcvt.s32.f32 %v830_v7  ;;  %v815_v38 = vshrl.u32 %v4614_v32, 24 }
 0x102   : > { %v853_v39 = vpack.c.bf16 %v838_v59, %v837_v25  ;;  %v816_v0 = vshrl.u32 %v4617_v33, 24  ;;  %v823_v42 = vand.u32 15, %v807_v6  ;;  %v824_v1 = vand.u32 15, %v808_v34 }
 0x103   : > { %1953 = vmatpush.bf16.msrb.mxu2 %v3044_v35  ;;  %1966 = vmatpush.bf16.msrb.mxu3 %v3048_v36  ;;  %v3499_v43 = vld [vmem:[#allocation2 + $0x1c0] sm:$0xf]  ;;  %v3727_v44 = vld [vmem:[#allocation2 + $0x1c4] sm:$0xf]  ;;  %v857_v45 = vpack.c.bf16 %v846_v37, %v845_v31  ;;  %v831_v2 = vand.u32 15, %v815_v38  ;;  %v741_v46 = vshrl.u32 %v4591_v9, 20 }
 0x104   : > { %v3731_v3 = vld [vmem:[#allocation2 + $0x1dc] sm:$0xf0]  ;;  %v3501_v47 = vld [vmem:[#allocation2 + $0x1e0] sm:$0xf0]  ;;  %861 = vst [vmem:[#allocation2 + $0x180] sm:$0xff] %v853_v39  ;;  %v832_v48 = vand.u32 15, %v816_v0  ;;  %v839_v49 = vcvt.s32.f32 %v823_v42  ;;  %v840_v51 = vcvt.s32.f32 %v824_v1  ;;  %1928 = vmatmul.bf16.vlgmr.msrb.gmra.mxu0 %v4560_v58  ;;  %1941 = vmatmul.bf16.vlgmr.msrb.gmra.mxu1 %v4560_v58 }
 0x105   : > { %v3500_v52 = vor.u32 %v3731_v3, %v3499_v43  ;;  %v3504_v53 = vor.u32 %v3727_v44, %v3501_v47  ;;  %v3507_v54 = vld [vmem:[#allocation2 + $0x1c8] sm:$0xf]  ;;  %v3728_v56 = vld [vmem:[#allocation2 + $0x1cc] sm:$0xf]  ;;  %865 = vst [vmem:[#allocation2 + $0x1a0] sm:$0xff] %v857_v45  ;;  %v847_v57 = vcvt.s32.f32 %v831_v2  ;;  %v742_v8 = vshrl.u32 %v4595_v18, 20 }
 0x106   : > { %v3732_v60 = vld [vmem:[#allocation2 + $0x1e4] sm:$0xf0]  ;;  %v3509_v10 = vld [vmem:[#allocation2 + $0x1e8] sm:$0xf0]  ;;  %v848_v61 = vcvt.s32.f32 %v832_v48  ;;  %v854_v40 = vpack.c.bf16 %v840_v51, %v839_v49  ;;  %v749_v62 = vshrl.u32 %v4601_v26, 20  ;;  %v750_v4 = vshrl.u32 %v4604_v27, 20  ;;  %1954 = vmatmul.bf16.vlgmr.msrb.gmra.mxu2 %v4560_v58  ;;  %1967 = vmatmul.bf16.vlgmr.msrb.gmra.mxu3 %v4560_v58 }
 0x107   : > { %2292 = vmatpush.bf16.msra.mxu0 %v3500_v52  ;;  %2305 = vmatpush.bf16.msra.mxu1 %v3504_v53  ;;  %v3508_v11 = vor.u32 %v3732_v60, %v3507_v54  ;;  %v3512_v5 = vor.u32 %v3728_v56, %v3509_v10  ;;  %v757_v41 = vand.u32 15, %v741_v46  ;;  %v758_v12 = vand.u32 15, %v742_v8 }
 0x108   : > { %v858_v13 = vpack.c.bf16 %v848_v61, %v847_v57  ;;  %862 = vst [vmem:[#allocation2 + $0x188] sm:$0xff] %v854_v40  ;;  %v765_v14 = vand.u32 15, %v749_v62  ;;  %v766_v15 = vand.u32 15, %v750_v4  ;;  %v743_v16 = vshrl.u32 %v4607_v28, 20 }
 0x109   : > { %2318 = vmatpush.bf16.msra.mxu2 %v3508_v11  ;;  %2331 = vmatpush.bf16.msra.mxu3 %v3512_v5  ;;  %v773_v17 = vcvt.s32.f32 %v757_v41  ;;  %v774_v50 = vcvt.s32.f32 %v758_v12  ;;  %v744_v19 = vshrl.u32 %v4611_v63, 20  ;;  %v751_v58 = vshrl.u32 %v4614_v32, 20 }
 0x10a   : > { %866 = vst [vmem:[#allocation2 + $0x1a8] sm:$0xff] %v858_v13  ;;  %v781_v20 = vcvt.s32.f32 %v765_v14  ;;  %v782_v55 = vcvt.s32.f32 %v766_v15  ;;  %v752_v21 = vshrl.u32 %v4617_v33, 20  ;;  %v759_v22 = vand.u32 15, %v743_v16 }
 0x10b   : > { %v3467_v23 = vld [vmem:[#allocation2 + $0x180] sm:$0xf]  ;;  %v3719_v24 = vld [vmem:[#allocation2 + $0x184] sm:$0xf]  ;;  %v789_v7 = vpack.c.bf16 %v774_v50, %v773_v17  ;;  %v760_v25 = vand.u32 15, %v744_v19  ;;  %v767_v29 = vand.u32 15, %v751_v58 }
 0x10c   : > { %v3723_v30 = vld [vmem:[#allocation2 + $0x19c] sm:$0xf0]  ;;  %v3469_v59 = vld [vmem:[#allocation2 + $0x1a0] sm:$0xf0]  ;;  %v793_v31 = vpack.c.bf16 %v782_v55, %v781_v20  ;;  %v768_v6 = vand.u32 15, %v752_v21  ;;  %v775_v34 = vcvt.s32.f32 %v759_v22  ;;  %v677_v35 = vshrl.u32 %v4591_v9, 16 }
 0x10d   : > { %v3468_v36 = vor.u32 %v3723_v30, %v3467_v23  ;;  %v3472_v37 = vor.u32 %v3719_v24, %v3469_v59  ;;  %797 = vst [vmem:[#allocation2 + $0x140] sm:$0xff] %v789_v7  ;;  %v776_v38 = vcvt.s32.f32 %v760_v25  ;;  %v783_v39 = vcvt.s32.f32 %v767_v29 }
 0x10e   : > { %801 = vst [vmem:[#allocation2 + $0x160] sm:$0xff] %v793_v31  ;;  %v784_v0 = vcvt.s32.f32 %v768_v6  ;;  %v678_v42 = vshrl.u32 %v4595_v18, 16  ;;  %v685_v1 = vshrl.u32 %v4601_v26, 16  ;;  %v686_v43 = vshrl.u32 %v4604_v27, 16 }
 0x10f   : > { %2293 = vmatpush.bf16.msra.mxu0 %v3468_v36  ;;  %2306 = vmatpush.bf16.msra.mxu1 %v3472_v37  ;;  %v3475_v44 = vld [vmem:[#allocation2 + $0x188] sm:$0xf]  ;;  %v3720_v45 = vld [vmem:[#allocation2 + $0x18c] sm:$0xf]  ;;  %v790_v2 = vpack.c.bf16 %v776_v38, %v775_v34  ;;  %v693_v46 = vand.u32 15, %v677_v35  ;;  %v679_v3 = vshrl.u32 %v4607_v28, 16 }
 0x110   : > { %v794_v47 = vpack.c.bf16 %v784_v0, %v783_v39  ;;  %v694_v48 = vand.u32 15, %v678_v42  ;;  %v701_v49 = vand.u32 15, %v685_v1  ;;  %v702_v51 = vand.u32 15, %v686_v43 }
 0x111   : > { %v3724_v52 = vld [vmem:[#allocation2 + $0x1a4] sm:$0xf0]  ;;  %v3477_v53 = vld [vmem:[#allocation2 + $0x1a8] sm:$0xf0]  ;;  %798 = vst [vmem:[#allocation2 + $0x148] sm:$0xff] %v790_v2  ;;  %v709_v54 = vcvt.s32.f32 %v693_v46  ;;  %v680_v56 = vshrl.u32 %v4611_v63, 16 }
 0x112   : > { %v3476_v57 = vor.u32 %v3724_v52, %v3475_v44  ;;  %v3480_v8 = vor.u32 %v3720_v45, %v3477_v53  ;;  %802 = vst [vmem:[#allocation2 + $0x168] sm:$0xff] %v794_v47  ;;  %v710_v60 = vcvt.s32.f32 %v694_v48  ;;  %v717_v10 = vcvt.s32.f32 %v701_v49 }
 0x113   : > { %v718_v61 = vcvt.s32.f32 %v702_v51  ;;  %v687_v40 = vshrl.u32 %v4614_v32, 16  ;;  %v688_v62 = vshrl.u32 %v4617_v33, 16  ;;  %v695_v4 = vand.u32 15, %v679_v3 }
 0x114   : > { %2319 = vmatpush.bf16.msra.mxu2 %v3476_v57  ;;  %2332 = vmatpush.bf16.msra.mxu3 %v3480_v8  ;;  %v3435_v11 = vld [vmem:[#allocation2 + $0x140] sm:$0xf]  ;;  %v3711_v5 = vld [vmem:[#allocation2 + $0x144] sm:$0xf]  ;;  %v725_v41 = vpack.c.bf16 %v710_v60, %v709_v54  ;;  %v696_v12 = vand.u32 15, %v680_v56  ;;  %v613_v13 = vshrl.u32 %v4591_v9, 12 }
 0x115   : > { %v3715_v14 = vld [vmem:[#allocation2 + $0x15c] sm:$0xf0]  ;;  %v3437_v15 = vld [vmem:[#allocation2 + $0x160] sm:$0xf0]  ;;  %v729_v16 = vpack.c.bf16 %v718_v61, %v717_v10  ;;  %v703_v17 = vand.u32 15, %v687_v40  ;;  %v704_v50 = vand.u32 15, %v688_v62  ;;  %v711_v19 = vcvt.s32.f32 %v695_v4 }
 0x116   : > { %v3436_v58 = vor.u32 %v3715_v14, %v3435_v11  ;;  %v3440_v20 = vor.u32 %v3711_v5, %v3437_v15  ;;  %733 = vst [vmem:[#allocation2 + $0x100] sm:$0xff] %v725_v41  ;;  %v712_v55 = vcvt.s32.f32 %v696_v12  ;;  %v614_v21 = vshrl.u32 %v4595_v18, 12 }
 0x117   : > { %737 = vst [vmem:[#allocation2 + $0x120] sm:$0xff] %v729_v16  ;;  %v719_v22 = vcvt.s32.f32 %v703_v17  ;;  %v720_v23 = vcvt.s32.f32 %v704_v50  ;;  %v621_v24 = vshrl.u32 %v4601_v26, 12  ;;  %v622_v7 = vshrl.u32 %v4604_v27, 12 }
 0x118   : > { %2294 = vmatpush.bf16.msra.mxu0 %v3436_v58  ;;  %2307 = vmatpush.bf16.msra.mxu1 %v3440_v20  ;;  %v3443_v25 = vld [vmem:[#allocation2 + $0x148] sm:$0xf]  ;;  %v3712_v29 = vld [vmem:[#allocation2 + $0x14c] sm:$0xf]  ;;  %v726_v30 = vpack.c.bf16 %v712_v55, %v711_v19  ;;  %v629_v59 = vand.u32 15, %v613_v13  ;;  %v630_v31 = vand.u32 15, %v614_v21 }
 0x119   : > { %v3716_v6 = vld [vmem:[#allocation2 + $0x164] sm:$0xf0]  ;;  %v3445_v34 = vld [vmem:[#allocation2 + $0x168] sm:$0xf0]  ;;  %v730_v35 = vpack.c.bf16 %v720_v23, %v719_v22  ;;  %v637_v36 = vand.u32 15, %v621_v24  ;;  %v638_v37 = vand.u32 15, %v622_v7 }
 0x11a   : > { %v3444_v38 = vor.u32 %v3716_v6, %v3443_v25  ;;  %v3448_v39 = vor.u32 %v3712_v29, %v3445_v34  ;;  %734 = vst [vmem:[#allocation2 + $0x108] sm:$0xff] %v726_v30  ;;  %v645_v0 = vcvt.s32.f32 %v629_v59  ;;  %v646_v42 = vcvt.s32.f32 %v630_v31 }
 0x11b   : > { %738 = vst [vmem:[#allocation2 + $0x128] sm:$0xff] %v730_v35  ;;  %v653_v1 = vcvt.s32.f32 %v637_v36  ;;  %v654_v43 = vcvt.s32.f32 %v638_v37  ;;  %v615_v44 = vshrl.u32 %v4607_v28, 12  ;;  %v616_v45 = vshrl.u32 %v4611_v63, 12 }
 0x11c   : > { %2320 = vmatpush.bf16.msra.mxu2 %v3444_v38  ;;  %2333 = vmatpush.bf16.msra.mxu3 %v3448_v39  ;;  %v661_v2 = vpack.c.bf16 %v646_v42, %v645_v0  ;;  %v623_v46 = vshrl.u32 %v4614_v32, 12  ;;  %v624_v3 = vshrl.u32 %v4617_v33, 12  ;;  %v549_v47 = vshrl.u32 %v4591_v9, 8 }
 0x11d   : > { %v3403_v48 = vld [vmem:[#allocation2 + $0x100] sm:$0xf]  ;;  %v3703_v49 = vld [vmem:[#allocation2 + $0x104] sm:$0xf]  ;;  %v665_v51 = vpack.c.bf16 %v654_v43, %v653_v1  ;;  %v631_v52 = vand.u32 15, %v615_v44  ;;  %v632_v53 = vand.u32 15, %v616_v45 }
 0x11e   : > { %v3707_v54 = vld [vmem:[#allocation2 + $0x11c] sm:$0xf0]  ;;  %v3405_v56 = vld [vmem:[#allocation2 + $0x120] sm:$0xf0]  ;;  %669 = vst [vmem:[#allocation2 + $0xc0] sm:$0xff] %v661_v2  ;;  %v639_v57 = vand.u32 15, %v623_v46 }
 0x11f   : > { %v3404_v8 = vor.u32 %v3707_v54, %v3403_v48  ;;  %v3408_v60 = vor.u32 %v3703_v49, %v3405_v56  ;;  %673 = vst [vmem:[#allocation2 + $0xe0] sm:$0xff] %v665_v51  ;;  %v640_v10 = vand.u32 15, %v624_v3  ;;  %v647_v61 = vcvt.s32.f32 %v631_v52 }
 0x120   : > { %v648_v40 = vcvt.s32.f32 %v632_v53  ;;  %v655_v62 = vcvt.s32.f32 %v639_v57  ;;  %v550_v4 = vshrl.u32 %v4595_v18, 8  ;;  %v557_v11 = vshrl.u32 %v4601_v26, 8 }
 0x121   : > { %2295 = vmatpush.bf16.msra.mxu0 %v3404_v8  ;;  %2308 = vmatpush.bf16.msra.mxu1 %v3408_v60  ;;  %v3411_v5 = vld [vmem:[#allocation2 + $0x108] sm:$0xf]  ;;  %v3704_v41 = vld [vmem:[#allocation2 + $0x10c] sm:$0xf]  ;;  %v656_v12 = vcvt.s32.f32 %v640_v10  ;;  %v558_v13 = vshrl.u32 %v4604_v27, 8  ;;  %v565_v14 = vand.u32 15, %v549_v47 }
 0x122   : > { %v3708_v15 = vld [vmem:[#allocation2 + $0x124] sm:$0xf0]  ;;  %v3413_v16 = vld [vmem:[#allocation2 + $0x128] sm:$0xf0]  ;;  %v662_v17 = vpack.c.bf16 %v648_v40, %v647_v61  ;;  %v566_v50 = vand.u32 15, %v550_v4  ;;  %v573_v19 = vand.u32 15, %v557_v11 }
 0x123   : > { %v3412_v58 = vor.u32 %v3708_v15, %v3411_v5  ;;  %v3416_v20 = vor.u32 %v3704_v41, %v3413_v16  ;;  %v666_v55 = vpack.c.bf16 %v656_v12, %v655_v62  ;;  %v574_v21 = vand.u32 15, %v558_v13 }
 0x124   : > { %670 = vst [vmem:[#allocation2 + $0xc8] sm:$0xff] %v662_v17  ;;  %v581_v22 = vcvt.s32.f32 %v565_v14  ;;  %v582_v23 = vcvt.s32.f32 %v566_v50  ;;  %v589_v24 = vcvt.s32.f32 %v573_v19  ;;  %v551_v7 = vshrl.u32 %v4607_v28, 8 }
 0x125   : > { %2321 = vmatpush.bf16.msra.mxu2 %v3412_v58  ;;  %2334 = vmatpush.bf16.msra.mxu3 %v3416_v20  ;;  %v3371_v25 = vld [vmem:[#allocation2 + $0xc0] sm:$0xf]  ;;  %v3695_v29 = vld [vmem:[#allocation2 + $0xc4] sm:$0xf]  ;;  %674 = vst [vmem:[#allocation2 + $0xe8] sm:$0xff] %v666_v55  ;;  %v590_v30 = vcvt.s32.f32 %v574_v21  ;;  %v552_v59 = vshrl.u32 %v4611_v63, 8 }
 0x126   : > { %v3699_v31 = vld [vmem:[#allocation2 + $0xdc] sm:$0xf0]  ;;  %v3373_v6 = vld [vmem:[#allocation2 + $0xe0] sm:$0xf0]  ;;  %v597_v34 = vpack.c.bf16 %v582_v23, %v581_v22  ;;  %v559_v35 = vshrl.u32 %v4614_v32, 8  ;;  %v560_v36 = vshrl.u32 %v4617_v33, 8 }
 0x127   : > { %v3372_v37 = vor.u32 %v3699_v31, %v3371_v25  ;;  %v3376_v38 = vor.u32 %v3695_v29, %v3373_v6  ;;  %v601_v39 = vpack.c.bf16 %v590_v30, %v589_v24  ;;  %v567_v0 = vand.u32 15, %v551_v7 }
 0x128   : > { %605 = vst [vmem:[#allocation2 + $0x80] sm:$0xff] %v597_v34  ;;  %v568_v42 = vand.u32 15, %v552_v59  ;;  %v575_v1 = vand.u32 15, %v559_v35  ;;  %v576_v43 = vand.u32 15, %v560_v36  ;;  %v485_v44 = vshrl.u32 %v4591_v9, 4 }
 0x129   : > { %2296 = vmatpush.bf16.msra.mxu0 %v3372_v37  ;;  %2309 = vmatpush.bf16.msra.mxu1 %v3376_v38  ;;  %609 = vst [vmem:[#allocation2 + $0xa0] sm:$0xff] %v601_v39  ;;  %v583_v45 = vcvt.s32.f32 %v567_v0  ;;  %v486_v2 = vshrl.u32 %v4595_v18, 4  ;;  %v493_v46 = vshrl.u32 %v4601_v26, 4  ;;  %v494_v3 = vshrl.u32 %v4604_v27, 4  ;;  %v4684_v0 = vld [vmem:[%s4406_s19 + $0x20] sm:$0xff] }
 0x12a   : > { %v584_v47 = vcvt.s32.f32 %v568_v42  ;;  %v591_v48 = vcvt.s32.f32 %v575_v1  ;;  %v592_v49 = vcvt.s32.f32 %v576_v43  ;;  %v501_v51 = vand.u32 15, %v485_v44 }
 0x12b   : > { %v3379_v52 = vld [vmem:[#allocation2 + $0xc8] sm:$0xf]  ;;  %v3696_v53 = vld [vmem:[#allocation2 + $0xcc] sm:$0xf]  ;;  %v502_v54 = vand.u32 15, %v486_v2  ;;  %v509_v56 = vand.u32 15, %v493_v46 }
 0x12c   : > { %v3700_v57 = vld [vmem:[#allocation2 + $0xe4] sm:$0xf0]  ;;  %v3381_v8 = vld [vmem:[#allocation2 + $0xe8] sm:$0xf0]  ;;  %v598_v60 = vpack.c.bf16 %v584_v47, %v583_v45  ;;  %v602_v10 = vpack.c.bf16 %v592_v49, %v591_v48  ;;  %v510_v61 = vand.u32 15, %v494_v3  ;;  %v517_v40 = vcvt.s32.f32 %v501_v51 }
 0x12d   : > { %v3380_v62 = vor.u32 %v3700_v57, %v3379_v52  ;;  %v3384_v4 = vor.u32 %v3696_v53, %v3381_v8  ;;  %v518_v11 = vcvt.s32.f32 %v502_v54  ;;  %v525_v5 = vcvt.s32.f32 %v509_v56  ;;  %v4695_v47 = vld [vmem:[%s4406_s19 + $0x68] sm:$0xff]  ;;  %v4699_v53 = vld [vmem:[%s4406_s19 + $0x30] sm:$0xff] }
 0x12e   : > { %606 = vst [vmem:[#allocation2 + $0x88] sm:$0xff] %v598_v60  ;;  %v526_v41 = vcvt.s32.f32 %v510_v61  ;;  %v487_v12 = vshrl.u32 %v4607_v28, 4  ;;  %v488_v13 = vshrl.u32 %v4611_v63, 4  ;;  %v495_v14 = vshrl.u32 %v4614_v32, 4  ;;  %v4705_v54 = vld [vmem:[%s4406_s19 + $0x70] sm:$0xff] }
 0x12f   : > { %2322 = vmatpush.bf16.msra.mxu2 %v3380_v62  ;;  %2335 = vmatpush.bf16.msra.mxu3 %v3384_v4  ;;  %v3339_v15 = vld [vmem:[#allocation2 + $0x80] sm:$0xf]  ;;  %v3687_v16 = vld [vmem:[#allocation2 + $0x84] sm:$0xf]  ;;  %610 = vst [vmem:[#allocation2 + $0xa8] sm:$0xff] %v602_v10  ;;  %v533_v17 = vpack.c.bf16 %v518_v11, %v517_v40  ;;  %v496_v50 = vshrl.u32 %v4617_v33, 4 }
 0x130   : > { %v3691_v19 = vld [vmem:[#allocation2 + $0x9c] sm:$0xf0]  ;;  %v3341_v58 = vld [vmem:[#allocation2 + $0xa0] sm:$0xf0]  ;;  %v537_v20 = vpack.c.bf16 %v526_v41, %v525_v5  ;;  %v503_v55 = vand.u32 15, %v487_v12  ;;  %v504_v21 = vand.u32 15, %v488_v13 }
 0x131   : > { %v3340_v22 = vor.u32 %v3691_v19, %v3339_v15  ;;  %v3344_v23 = vor.u32 %v3687_v16, %v3341_v58  ;;  %541 = vst [vmem:[#allocation2 + $0x40] sm:$0xff] %v533_v17  ;;  %v511_v24 = vand.u32 15, %v495_v14  ;;  %v512_v7 = vand.u32 15, %v496_v50  ;;  %v4711_v41 = vld [vmem:[%s4406_s19 + $0x78] sm:$0xff] }
 0x132   : > { %545 = vst [vmem:[#allocation2 + $0x60] sm:$0xff] %v537_v20  ;;  %v519_v25 = vcvt.s32.f32 %v503_v55  ;;  %v520_v29 = vcvt.s32.f32 %v504_v21  ;;  %v437_v30 = vand.u32 15, %v4591_v9  ;;  %v438_v59 = vand.u32 15, %v4595_v18  ;;  %v4687_v9 = vld [vmem:[%s4406_s19 + $0x28] sm:$0xff] }
 0x133   : > { %2297 = vmatpush.bf16.msra.mxu0 %v3340_v22  ;;  %2310 = vmatpush.bf16.msra.mxu1 %v3344_v23  ;;  %v527_v31 = vcvt.s32.f32 %v511_v24  ;;  %v528_v6 = vcvt.s32.f32 %v512_v7  ;;  %v445_v34 = vand.u32 15, %v4601_v26  ;;  %v446_v35 = vand.u32 15, %v4604_v27  ;;  %v4691_v27 = vld [vmem:[%s4406_s19 + $0x60] sm:$0xff] }
 0x134   : > { %v534_v36 = vpack.c.bf16 %v520_v29, %v519_v25  ;;  %v453_v37 = vcvt.s32.f32 %v437_v30  ;;  %v454_v38 = vcvt.s32.f32 %v438_v59  ;;  %v439_v39 = vand.u32 15, %v4607_v28 }
 0x135   : > { %v3347_v18 = vld [vmem:[#allocation2 + $0x88] sm:$0xf]  ;;  %v3688_v42 = vld [vmem:[#allocation2 + $0x8c] sm:$0xf]  ;;  %v538_v1 = vpack.c.bf16 %v528_v6, %v527_v31  ;;  %v461_v43 = vcvt.s32.f32 %v445_v34  ;;  %v462_v44 = vcvt.s32.f32 %v446_v35  ;;  %v440_v26 = vand.u32 15, %v4611_v63  ;;  %v4702_v63 = vld [vmem:[%s4406_s19 + $0x38] sm:$0xff] }
 0x136   : > { %v3692_v45 = vld [vmem:[#allocation2 + $0xa4] sm:$0xf0]  ;;  %v3349_v2 = vld [vmem:[#allocation2 + $0xa8] sm:$0xf0]  ;;  %542 = vst [vmem:[#allocation2 + $0x48] sm:$0xff] %v534_v36  ;;  %v469_v28 = vpack.c.bf16 %v454_v38, %v453_v37  ;;  %v447_v46 = vand.u32 15, %v4614_v32  ;;  %v455_v3 = vcvt.s32.f32 %v439_v39 }
 0x137   : > { %v3348_v48 = vor.u32 %v3692_v45, %v3347_v18  ;;  %v3352_v49 = vor.u32 %v3688_v42, %v3349_v2  ;;  %546 = vst [vmem:[#allocation2 + $0x68] sm:$0xff] %v538_v1  ;;  %v473_v51 = vpack.c.bf16 %v462_v44, %v461_v43  ;;  %v448_v52 = vand.u32 15, %v4617_v33 }
 0x138   : > { %v3307_v56 = vld [vmem:[#allocation2 + $0x40] sm:$0xf]  ;;  %v3679_v57 = vld [vmem:[#allocation2 + $0x44] sm:$0xf]  ;;  %477 = vst [vmem:[#allocation2] sm:$0xff] %v469_v28  ;;  %v456_v32 = vcvt.s32.f32 %v440_v26  ;;  %v463_v8 = vcvt.s32.f32 %v447_v46  ;;  %v873_v60 = vshrl.u32 %v4684_v0, 28 }
 0x139   : > { %2323 = vmatpush.bf16.msra.mxu2 %v3348_v48  ;;  %2336 = vmatpush.bf16.msra.mxu3 %v3352_v49  ;;  %v3683_v10 = vld [vmem:[#allocation2 + $0x5c] sm:$0xf0]  ;;  %v3309_v61 = vld [vmem:[#allocation2 + $0x60] sm:$0xf0]  ;;  %481 = vst [vmem:[#allocation2 + $0x20] sm:$0xff] %v473_v51  ;;  %v464_v33 = vcvt.s32.f32 %v448_v52  ;;  %v874_v40 = vshrl.u32 %v4687_v9, 28 }
 0x13a   : > { %v3308_v62 = vor.u32 %v3683_v10, %v3307_v56  ;;  %v3312_v4 = vor.u32 %v3679_v57, %v3309_v61  ;;  %v470_v11 = vpack.c.bf16 %v456_v32, %v455_v3  ;;  %v881_v5 = vshrl.u32 %v4691_v27, 28  ;;  %v4721_v26 = vld [vmem:[#allocation3] sm:$0x1] }
 0x13b   : > { %v474_v12 = vpack.c.bf16 %v464_v33, %v463_v8  ;;  %v882_v13 = vshrl.u32 %v4695_v47, 28  ;;  %v889_v14 = vcvt.s32.f32 %v873_v60  ;;  %v890_v15 = vcvt.s32.f32 %v874_v40 }
 0x13c   : > { %2298 = vmatpush.bf16.msra.mxu0 %v3308_v62  ;;  %2311 = vmatpush.bf16.msra.mxu1 %v3312_v4  ;;  %478 = vst [vmem:[#allocation2 + $0x8] sm:$0xff] %v470_v11  ;;  %v897_v16 = vcvt.s32.f32 %v881_v5  ;;  %v875_v17 = vshrl.u32 %v4699_v53, 28  ;;  %v876_v50 = vshrl.u32 %v4702_v63, 28  ;;  %v883_v19 = vshrl.u32 %v4705_v54, 28 }
 0x13d   : > { %v3315_v58 = vld [vmem:[#allocation2 + $0x48] sm:$0xf]  ;;  %v3680_v20 = vld [vmem:[#allocation2 + $0x4c] sm:$0xf]  ;;  %482 = vst [vmem:[#allocation2 + $0x28] sm:$0xff] %v474_v12  ;;  %v898_v55 = vcvt.s32.f32 %v882_v13  ;;  %v903_v21 = vpack.c.bf16 %v890_v15, %v889_v14  ;;  %v884_v22 = vshrl.u32 %v4711_v41, 28 }
 0x13e   : > { %v3684_v23 = vld [vmem:[#allocation2 + $0x64] sm:$0xf0]  ;;  %v3317_v24 = vld [vmem:[#allocation2 + $0x68] sm:$0xf0]  ;;  %v891_v7 = vcvt.s32.f32 %v875_v17  ;;  %v892_v25 = vcvt.s32.f32 %v876_v50  ;;  %v899_v29 = vcvt.s32.f32 %v883_v19  ;;  %v809_v30 = vshrl.u32 %v4684_v0, 24 }
 0x13f   : > { %v3316_v59 = vor.u32 %v3684_v23, %v3315_v58  ;;  %v3320_v31 = vor.u32 %v3680_v20, %v3317_v24  ;;  %v3275_v6 = vld [vmem:[#allocation2] sm:$0xf]  ;;  %v3671_v34 = vld [vmem:[#allocation2 + $0x4] sm:$0xf]  ;;  %v907_v35 = vpack.c.bf16 %v898_v55, %v897_v16  ;;  %911 = vst [vmem:[#allocation2 + $0x1d0] sm:$0xff] %v903_v21  ;;  %v900_v36 = vcvt.s32.f32 %v884_v22 }
 0x140   : > { %v3675_v37 = vld [vmem:[#allocation2 + $0x1c] sm:$0xf0]  ;;  %v3277_v38 = vld [vmem:[#allocation2 + $0x20] sm:$0xf0]  ;;  %v904_v39 = vpack.c.bf16 %v892_v25, %v891_v7  ;;  %v810_v18 = vshrl.u32 %v4687_v9, 24  ;;  %v817_v42 = vshrl.u32 %v4691_v27, 24 }
 0x141   : > { %2324 = vmatpush.bf16.msra.mxu2 %v3316_v59  ;;  %2337 = vmatpush.bf16.msra.mxu3 %v3320_v31  ;;  %v3276_v1 = vor.u32 %v3675_v37, %v3275_v6  ;;  %v3280_v43 = vor.u32 %v3671_v34, %v3277_v38  ;;  %915 = vst [vmem:[#allocation2 + $0x1f0] sm:$0xff] %v907_v35  ;;  %v818_v45 = vshrl.u32 %v4695_v47, 24  ;;  %v825_v2 = vand.u32 15, %v809_v30 }
 0x142   : > { %v908_v44 = vpack.c.bf16 %v900_v36, %v899_v29  ;;  %912 = vst [vmem:[#allocation2 + $0x1d8] sm:$0xff] %v904_v39  ;;  %v826_v28 = vand.u32 15, %v810_v18  ;;  %v833_v46 = vand.u32 15, %v817_v42  ;;  %v811_v49 = vshrl.u32 %v4699_v53, 24 }
 0x143   : > { %2299 = vmatpush.bf16.msra.mxu0 %v3276_v1  ;;  %2312 = vmatpush.bf16.msra.mxu1 %v3280_v43  ;;  %v3283_v3 = vld [vmem:[#allocation2 + $0x8] sm:$0xf]  ;;  %v3672_v48 = vld [vmem:[#allocation2 + $0xc] sm:$0xf]  ;;  %v834_v56 = vand.u32 15, %v818_v45  ;;  %v841_v57 = vcvt.s32.f32 %v825_v2  ;;  %v812_v61 = vshrl.u32 %v4702_v63, 24 }
 0x144   : > { %916 = vst [vmem:[#allocation2 + $0x1f8] sm:$0xff] %v908_v44  ;;  %v3676_v51 = vld [vmem:[#allocation2 + $0x24] sm:$0xf0]  ;;  %v3285_v52 = vld [vmem:[#allocation2 + $0x28] sm:$0xf0]  ;;  %v842_v32 = vcvt.s32.f32 %v826_v28  ;;  %v849_v8 = vcvt.s32.f32 %v833_v46  ;;  %v819_v33 = vshrl.u32 %v4705_v54, 24 }
 0x145   : > { %v3284_v60 = vor.u32 %v3676_v51, %v3283_v3  ;;  %v3288_v10 = vor.u32 %v3672_v48, %v3285_v52  ;;  %v850_v4 = vcvt.s32.f32 %v834_v56  ;;  %v820_v5 = vshrl.u32 %v4711_v41, 24 }
 0x146   : > { %v3515_v40 = vld [vmem:[#allocation2 + $0x1d0] sm:$0xf]  ;;  %v3729_v62 = vld [vmem:[#allocation2 + $0x1d4] sm:$0xf]  ;;  %2300 = vmatmul.bf16.vlgmr.msra.gmra.mxu0 %v4721_v26  ;;  %2313 = vmatmul.bf16.vlgmr.msra.gmra.mxu1 %v4721_v26  ;;  %v855_v11 = vpack.c.bf16 %v842_v32, %v841_v57  ;;  %v827_v12 = vand.u32 15, %v811_v49  ;;  %v828_v13 = vand.u32 15, %v812_v61 }
 0x147   : > { %2325 = vmatpush.bf16.msra.mxu2 %v3284_v60  ;;  %2338 = vmatpush.bf16.msra.mxu3 %v3288_v10  ;;  %v835_v14 = vand.u32 15, %v819_v33  ;;  %v745_v15 = vshrl.u32 %v4684_v0, 20  ;;  %v746_v16 = vshrl.u32 %v4687_v9, 20  ;;  %v859_v19 = vpack.c.bf16 %v850_v4, %v849_v8 }
 0x148   : > { %v3733_v17 = vld [vmem:[#allocation2 + $0x1ec] sm:$0xf0]  ;;  %v3517_v50 = vld [vmem:[#allocation2 + $0x1f0] sm:$0xf0]  ;;  %863 = vst [vmem:[#allocation2 + $0x190] sm:$0xff] %v855_v11  ;;  %v836_v58 = vand.u32 15, %v820_v5  ;;  %v843_v20 = vcvt.s32.f32 %v827_v12  ;;  %v844_v24 = vcvt.s32.f32 %v828_v13 }
 0x149   : > { %v3516_v55 = vor.u32 %v3733_v17, %v3515_v40  ;;  %v3520_v21 = vor.u32 %v3729_v62, %v3517_v50  ;;  %v3523_v22 = vld [vmem:[#allocation2 + $0x1d8] sm:$0xf]  ;;  %v3730_v23 = vld [vmem:[#allocation2 + $0x1dc] sm:$0xf]  ;;  %v851_v7 = vcvt.s32.f32 %v835_v14  ;;  %867 = vst [vmem:[#allocation2 + $0x1b0] sm:$0xff] %v859_v19  ;;  %v753_v59 = vshrl.u32 %v4691_v27, 20 }
 0x14a   : > { %2326 = vmatmul.bf16.vlgmr.msra.gmra.mxu2 %v4721_v26  ;;  %2339 = vmatmul.bf16.vlgmr.msra.gmra.mxu3 %v4721_v26  ;;  %v852_v30 = vcvt.s32.f32 %v836_v58  ;;  %v856_v34 = vpack.c.bf16 %v844_v24, %v843_v20  ;;  %v754_v35 = vshrl.u32 %v4695_v47, 20  ;;  %v761_v37 = vand.u32 15, %v745_v15 }
 0x14b   : > { %v3734_v25 = vld [vmem:[#allocation2 + $0x1f4] sm:$0xf0]  ;;  %v3525_v29 = vld [vmem:[#allocation2 + $0x1f8] sm:$0xf0]  ;;  %2344 = vmatpush.bf16.msrb.mxu0 %v3516_v55  ;;  %2357 = vmatpush.bf16.msrb.mxu1 %v3520_v21  ;;  %v762_v38 = vand.u32 15, %v746_v16  ;;  %v769_v39 = vand.u32 15, %v753_v59 }
 0x14c   : > { %v3524_v31 = vor.u32 %v3734_v25, %v3523_v22  ;;  %v3528_v6 = vor.u32 %v3730_v23, %v3525_v29  ;;  %v860_v36 = vpack.c.bf16 %v852_v30, %v851_v7  ;;  %864 = vst [vmem:[#allocation2 + $0x198] sm:$0xff] %v856_v34  ;;  %v770_v18 = vand.u32 15, %v754_v35 }
 0x14d   : > { %v747_v42 = vshrl.u32 %v4699_v53, 20  ;;  %v748_v1 = vshrl.u32 %v4702_v63, 20  ;;  %v755_v43 = vshrl.u32 %v4705_v54, 20  ;;  %v777_v44 = vcvt.s32.f32 %v761_v37 }
 0x14e   : > { %2370 = vmatpush.bf16.msrb.mxu2 %v3524_v31  ;;  %2383 = vmatpush.bf16.msrb.mxu3 %v3528_v6  ;;  %868 = vst [vmem:[#allocation2 + $0x1b8] sm:$0xff] %v860_v36  ;;  %v778_v45 = vcvt.s32.f32 %v762_v38  ;;  %v785_v2 = vcvt.s32.f32 %v769_v39  ;;  %v756_v28 = vshrl.u32 %v4711_v41, 20  ;;  %v786_v48 = vcvt.s32.f32 %v770_v18 }
 0x14f   : > { %v3483_v46 = vld [vmem:[#allocation2 + $0x190] sm:$0xf]  ;;  %v3721_v3 = vld [vmem:[#allocation2 + $0x194] sm:$0xf]  ;;  %v763_v49 = vand.u32 15, %v747_v42  ;;  %v764_v51 = vand.u32 15, %v748_v1 }
 0x150   : > { %v791_v52 = vpack.c.bf16 %v778_v45, %v777_v44  ;;  %v771_v56 = vand.u32 15, %v755_v43  ;;  %v772_v57 = vand.u32 15, %v756_v28  ;;  %v681_v32 = vshrl.u32 %v4684_v0, 16  ;;  %v3725_v8 = vld [vmem:[#allocation2 + $0x1ac] sm:$0xf0] }
 0x151   : > { %v3485_v60 = vld [vmem:[#allocation2 + $0x1b0] sm:$0xf0]  ;;  %v795_v10 = vpack.c.bf16 %v786_v48, %v785_v2  ;;  %v779_v61 = vcvt.s32.f32 %v763_v49  ;;  %v780_v33 = vcvt.s32.f32 %v764_v51  ;;  %v682_v40 = vshrl.u32 %v4687_v9, 16 }
 0x152   : > { %v3484_v62 = vor.u32 %v3725_v8, %v3483_v46  ;;  %v3488_v4 = vor.u32 %v3721_v3, %v3485_v60  ;;  %799 = vst [vmem:[#allocation2 + $0x150] sm:$0xff] %v791_v52  ;;  %v787_v11 = vcvt.s32.f32 %v771_v56  ;;  %v788_v5 = vcvt.s32.f32 %v772_v57 }
 0x153   : > { %803 = vst [vmem:[#allocation2 + $0x170] sm:$0xff] %v795_v10  ;;  %v792_v12 = vpack.c.bf16 %v780_v33, %v779_v61  ;;  %v689_v13 = vshrl.u32 %v4691_v27, 16  ;;  %v690_v14 = vshrl.u32 %v4695_v47, 16  ;;  %v697_v15 = vand.u32 15, %v681_v32  ;;  %v3491_v16 = vld [vmem:[#allocation2 + $0x198] sm:$0xf] }
 0x154   : > { %2345 = vmatpush.bf16.msrb.mxu0 %v3484_v62  ;;  %2358 = vmatpush.bf16.msrb.mxu1 %v3488_v4  ;;  %v3722_v17 = vld [vmem:[#allocation2 + $0x19c] sm:$0xf]  ;;  %v796_v50 = vpack.c.bf16 %v788_v5, %v787_v11  ;;  %v698_v19 = vand.u32 15, %v682_v40  ;;  %v683_v58 = vshrl.u32 %v4699_v53, 16  ;;  %v684_v30 = vshrl.u32 %v4702_v63, 16 }
 0x155   : > { %v3726_v20 = vld [vmem:[#allocation2 + $0x1b4] sm:$0xf0]  ;;  %v3493_v55 = vld [vmem:[#allocation2 + $0x1b8] sm:$0xf0]  ;;  %800 = vst [vmem:[#allocation2 + $0x158] sm:$0xff] %v792_v12  ;;  %v705_v21 = vand.u32 15, %v689_v13  ;;  %v713_v22 = vcvt.s32.f32 %v697_v15 }
 0x156   : > { %v3492_v23 = vor.u32 %v3726_v20, %v3491_v16  ;;  %v3496_v24 = vor.u32 %v3722_v17, %v3493_v55  ;;  %804 = vst [vmem:[#allocation2 + $0x178] sm:$0xff] %v796_v50  ;;  %v706_v7 = vand.u32 15, %v690_v14  ;;  %v714_v25 = vcvt.s32.f32 %v698_v19 }
 0x157   : > { %v721_v29 = vcvt.s32.f32 %v705_v21  ;;  %v691_v59 = vshrl.u32 %v4705_v54, 16  ;;  %v692_v31 = vshrl.u32 %v4711_v41, 16  ;;  %v699_v35 = vand.u32 15, %v683_v58 }
 0x158   : > { %2371 = vmatpush.bf16.msrb.mxu2 %v3492_v23  ;;  %2384 = vmatpush.bf16.msrb.mxu3 %v3496_v24  ;;  %v722_v6 = vcvt.s32.f32 %v706_v7  ;;  %v727_v34 = vpack.c.bf16 %v714_v25, %v713_v22  ;;  %v617_v36 = vshrl.u32 %v4684_v0, 12  ;;  %v700_v39 = vand.u32 15, %v684_v30 }
 0x159   : > { %v3451_v37 = vld [vmem:[#allocation2 + $0x150] sm:$0xf]  ;;  %v3713_v38 = vld [vmem:[#allocation2 + $0x154] sm:$0xf]  ;;  %v707_v18 = vand.u32 15, %v691_v59  ;;  %v708_v44 = vand.u32 15, %v692_v31  ;;  %v715_v45 = vcvt.s32.f32 %v699_v35 }
 0x15a   : > { %v3717_v42 = vld [vmem:[#allocation2 + $0x16c] sm:$0xf0]  ;;  %v3453_v1 = vld [vmem:[#allocation2 + $0x170] sm:$0xf0]  ;;  %v731_v43 = vpack.c.bf16 %v722_v6, %v721_v29  ;;  %735 = vst [vmem:[#allocation2 + $0x110] sm:$0xff] %v727_v34  ;;  %v716_v46 = vcvt.s32.f32 %v700_v39  ;;  %v618_v52 = vshrl.u32 %v4687_v9, 12 }
 0x15b   : > { %v3452_v2 = vor.u32 %v3717_v42, %v3451_v37  ;;  %v3456_v28 = vor.u32 %v3713_v38, %v3453_v1  ;;  %v723_v3 = vcvt.s32.f32 %v707_v18  ;;  %v724_v51 = vcvt.s32.f32 %v708_v44 }
 0x15c   : > { %v3459_v48 = vld [vmem:[#allocation2 + $0x158] sm:$0xf]  ;;  %v3714_v49 = vld [vmem:[#allocation2 + $0x15c] sm:$0xf]  ;;  %739 = vst [vmem:[#allocation2 + $0x130] sm:$0xff] %v731_v43  ;;  %v728_v32 = vpack.c.bf16 %v716_v46, %v715_v45  ;;  %v625_v8 = vshrl.u32 %v4691_v27, 12 }
 0x15d   : > { %2346 = vmatpush.bf16.msrb.mxu0 %v3452_v2  ;;  %2359 = vmatpush.bf16.msrb.mxu1 %v3456_v28  ;;  %v3718_v56 = vld [vmem:[#allocation2 + $0x174] sm:$0xf0]  ;;  %v3461_v57 = vld [vmem:[#allocation2 + $0x178] sm:$0xf0]  ;;  %v626_v60 = vshrl.u32 %v4695_v47, 12  ;;  %v732_v33 = vpack.c.bf16 %v724_v51, %v723_v3  ;;  %v633_v40 = vand.u32 15, %v617_v36 }
 0x15e   : > { %v3460_v10 = vor.u32 %v3718_v56, %v3459_v48  ;;  %v3464_v61 = vor.u32 %v3714_v49, %v3461_v57  ;;  %736 = vst [vmem:[#allocation2 + $0x118] sm:$0xff] %v728_v32  ;;  %v634_v62 = vand.u32 15, %v618_v52  ;;  %v641_v4 = vand.u32 15, %v625_v8 }
 0x15f   : > { %v642_v11 = vand.u32 15, %v626_v60  ;;  %v619_v5 = vshrl.u32 %v4699_v53, 12  ;;  %740 = vst [vmem:[#allocation2 + $0x138] sm:$0xff] %v732_v33  ;;  %v649_v12 = vcvt.s32.f32 %v633_v40  ;;  %v620_v13 = vshrl.u32 %v4702_v63, 12 }
 0x160   : > { %2372 = vmatpush.bf16.msrb.mxu2 %v3460_v10  ;;  %2385 = vmatpush.bf16.msrb.mxu3 %v3464_v61  ;;  %v627_v14 = vshrl.u32 %v4705_v54, 12  ;;  %v628_v15 = vshrl.u32 %v4711_v41, 12  ;;  %v650_v50 = vcvt.s32.f32 %v634_v62  ;;  %v657_v19 = vcvt.s32.f32 %v641_v4 }
 0x161   : > { %v3419_v16 = vld [vmem:[#allocation2 + $0x110] sm:$0xf]  ;;  %v3705_v17 = vld [vmem:[#allocation2 + $0x114] sm:$0xf]  ;;  %v658_v58 = vcvt.s32.f32 %v642_v11  ;;  %v635_v20 = vand.u32 15, %v619_v5  ;;  %v636_v55 = vand.u32 15, %v620_v13 }
 0x162   : > { %v643_v21 = vand.u32 15, %v627_v14  ;;  %v644_v22 = vand.u32 15, %v628_v15  ;;  %v553_v23 = vshrl.u32 %v4684_v0, 8  ;;  %v663_v25 = vpack.c.bf16 %v650_v50, %v649_v12 }
 0x163   : > { %v3709_v24 = vld [vmem:[#allocation2 + $0x12c] sm:$0xf0]  ;;  %v3421_v7 = vld [vmem:[#allocation2 + $0x130] sm:$0xf0]  ;;  %v667_v29 = vpack.c.bf16 %v658_v58, %v657_v19  ;;  %v651_v30 = vcvt.s32.f32 %v635_v20  ;;  %v554_v59 = vshrl.u32 %v4687_v9, 8  ;;  %v652_v34 = vcvt.s32.f32 %v636_v55 }
 0x164   : > { %v3420_v31 = vor.u32 %v3709_v24, %v3419_v16  ;;  %v3424_v6 = vor.u32 %v3705_v17, %v3421_v7  ;;  %v659_v35 = vcvt.s32.f32 %v643_v21  ;;  %671 = vst [vmem:[#allocation2 + $0xd0] sm:$0xff] %v663_v25  ;;  %v660_v36 = vcvt.s32.f32 %v644_v22 }
 0x165   : > { %v561_v37 = vshrl.u32 %v4691_v27, 8  ;;  %v562_v38 = vshrl.u32 %v4695_v47, 8  ;;  %v569_v39 = vand.u32 15, %v553_v23  ;;  %v3427_v18 = vld [vmem:[#allocation2 + $0x118] sm:$0xf]  ;;  %675 = vst [vmem:[#allocation2 + $0xf0] sm:$0xff] %v667_v29  ;;  %v664_v1 = vpack.c.bf16 %v652_v34, %v651_v30 }
 0x166   : > { %2347 = vmatpush.bf16.msrb.mxu0 %v3420_v31  ;;  %2360 = vmatpush.bf16.msrb.mxu1 %v3424_v6  ;;  %v3706_v42 = vld [vmem:[#allocation2 + $0x11c] sm:$0xf]  ;;  %v570_v43 = vand.u32 15, %v554_v59  ;;  %v3710_v44 = vld [vmem:[#allocation2 + $0x134] sm:$0xf0]  ;;  %v668_v2 = vpack.c.bf16 %v660_v36, %v659_v35  ;;  %v555_v52 = vshrl.u32 %v4699_v53, 8 }
 0x167   : > { %v3429_v45 = vld [vmem:[#allocation2 + $0x138] sm:$0xf0]  ;;  %v577_v28 = vand.u32 15, %v561_v37  ;;  %v578_v46 = vand.u32 15, %v562_v38  ;;  %v585_v3 = vcvt.s32.f32 %v569_v39  ;;  %v3428_v48 = vor.u32 %v3710_v44, %v3427_v18  ;;  %672 = vst [vmem:[#allocation2 + $0xd8] sm:$0xff] %v664_v1 }
 0x168   : > { %v3432_v49 = vor.u32 %v3706_v42, %v3429_v45  ;;  %v586_v51 = vcvt.s32.f32 %v570_v43  ;;  %676 = vst [vmem:[#allocation2 + $0xf8] sm:$0xff] %v668_v2  ;;  %v556_v32 = vshrl.u32 %v4702_v63, 8  ;;  %v563_v8 = vshrl.u32 %v4705_v54, 8 }
 0x169   : > { %v593_v56 = vcvt.s32.f32 %v577_v28  ;;  %v594_v57 = vcvt.s32.f32 %v578_v46  ;;  %2373 = vmatpush.bf16.msrb.mxu2 %v3428_v48  ;;  %v564_v10 = vshrl.u32 %v4711_v41, 8  ;;  %v571_v61 = vand.u32 15, %v555_v52 }
 0x16a   : > { %2386 = vmatpush.bf16.msrb.mxu3 %v3432_v49  ;;  %v599_v60 = vpack.c.bf16 %v586_v51, %v585_v3  ;;  %v489_v33 = vshrl.u32 %v4684_v0, 4  ;;  %v572_v62 = vand.u32 15, %v556_v32  ;;  %v579_v4 = vand.u32 15, %v563_v8 }
 0x16b   : > { %v603_v40 = vpack.c.bf16 %v594_v57, %v593_v56  ;;  %v490_v11 = vshrl.u32 %v4687_v9, 4  ;;  %v3387_v5 = vld [vmem:[#allocation2 + $0xd0] sm:$0xf]  ;;  %v3697_v12 = vld [vmem:[#allocation2 + $0xd4] sm:$0xf]  ;;  %v580_v13 = vand.u32 15, %v564_v10  ;;  %v587_v14 = vcvt.s32.f32 %v571_v61 }
 0x16c   : > { %607 = vst [vmem:[#allocation2 + $0x90] sm:$0xff] %v599_v60  ;;  %v3701_v15 = vld [vmem:[#allocation2 + $0xec] sm:$0xf0]  ;;  %v3389_v16 = vld [vmem:[#allocation2 + $0xf0] sm:$0xf0]  ;;  %v588_v17 = vcvt.s32.f32 %v572_v62  ;;  %v595_v50 = vcvt.s32.f32 %v579_v4  ;;  %v497_v19 = vshrl.u32 %v4691_v27, 4 }
 0x16d   : > { %611 = vst [vmem:[#allocation2 + $0xb0] sm:$0xff] %v603_v40  ;;  %v3388_v58 = vor.u32 %v3701_v15, %v3387_v5  ;;  %v3392_v20 = vor.u32 %v3697_v12, %v3389_v16  ;;  %v596_v55 = vcvt.s32.f32 %v580_v13  ;;  %v498_v21 = vshrl.u32 %v4695_v47, 4 }
 0x16e   : > { %v3395_v22 = vld [vmem:[#allocation2 + $0xd8] sm:$0xf]  ;;  %v3698_v23 = vld [vmem:[#allocation2 + $0xdc] sm:$0xf]  ;;  %v600_v24 = vpack.c.bf16 %v588_v17, %v587_v14  ;;  %v505_v7 = vand.u32 15, %v489_v33  ;;  %v506_v25 = vand.u32 15, %v490_v11 }
 0x16f   : > { %2348 = vmatpush.bf16.msrb.mxu0 %v3388_v58  ;;  %2361 = vmatpush.bf16.msrb.mxu1 %v3392_v20  ;;  %v3702_v29 = vld [vmem:[#allocation2 + $0xf4] sm:$0xf0]  ;;  %v3397_v30 = vld [vmem:[#allocation2 + $0xf8] sm:$0xf0]  ;;  %v604_v59 = vpack.c.bf16 %v596_v55, %v595_v50  ;;  %v513_v31 = vand.u32 15, %v497_v19  ;;  %v514_v6 = vand.u32 15, %v498_v21 }
 0x170   : > { %v3396_v34 = vor.u32 %v3702_v29, %v3395_v22  ;;  %v3400_v35 = vor.u32 %v3698_v23, %v3397_v30  ;;  %608 = vst [vmem:[#allocation2 + $0x98] sm:$0xff] %v600_v24  ;;  %v521_v36 = vcvt.s32.f32 %v505_v7  ;;  %v522_v37 = vcvt.s32.f32 %v506_v25 }
 0x171   : > { %612 = vst [vmem:[#allocation2 + $0xb8] sm:$0xff] %v604_v59  ;;  %v529_v38 = vcvt.s32.f32 %v513_v31  ;;  %v530_v39 = vcvt.s32.f32 %v514_v6  ;;  %v491_v18 = vshrl.u32 %v4699_v53, 4  ;;  %v492_v42 = vshrl.u32 %v4702_v63, 4  ;;  %v3827_v31 = vld [vmem:[%s4782_s8 + $0xdc] sm:$0xf0] }
 0x172   : > { %2374 = vmatpush.bf16.msrb.mxu2 %v3396_v34  ;;  %2387 = vmatpush.bf16.msrb.mxu3 %v3400_v35  ;;  %v535_v44 = vpack.c.bf16 %v522_v37, %v521_v36  ;;  %v499_v45 = vshrl.u32 %v4705_v54, 4  ;;  %v500_v2 = vshrl.u32 %v4711_v41, 4  ;;  %v441_v60 = vand.u32 15, %v4684_v0  ;;  %v3823_v6 = vld [vmem:[%s4782_s8 + $0xc4] sm:$0xf] }
 0x173   : > { %v3355_v1 = vld [vmem:[#allocation2 + $0x90] sm:$0xf]  ;;  %v3689_v43 = vld [vmem:[#allocation2 + $0x94] sm:$0xf]  ;;  %v539_v3 = vpack.c.bf16 %v530_v39, %v529_v38  ;;  %v507_v48 = vand.u32 15, %v491_v18  ;;  %v508_v49 = vand.u32 15, %v492_v42 }
 0x174   : > { %v3693_v28 = vld [vmem:[#allocation2 + $0xac] sm:$0xf0]  ;;  %v3357_v46 = vld [vmem:[#allocation2 + $0xb0] sm:$0xf0]  ;;  %543 = vst [vmem:[#allocation2 + $0x50] sm:$0xff] %v535_v44  ;;  %v515_v56 = vand.u32 15, %v499_v45  ;;  %v457_v12 = vcvt.s32.f32 %v441_v60 }
 0x175   : > { %v3356_v51 = vor.u32 %v3693_v28, %v3355_v1  ;;  %v3360_v52 = vor.u32 %v3689_v43, %v3357_v46  ;;  %v516_v57 = vand.u32 15, %v500_v2  ;;  %547 = vst [vmem:[#allocation2 + $0x70] sm:$0xff] %v539_v3  ;;  %v523_v32 = vcvt.s32.f32 %v507_v48  ;;  %v3629_v34 = vld [vmem:[%s4782_s8 + $0xe0] sm:$0xf0]  ;;  %v3635_v43 = vld [vmem:[%s4782_s8 + $0xc8] sm:$0xf] }
 0x176   : > { %v524_v8 = vcvt.s32.f32 %v508_v49  ;;  %v442_v10 = vand.u32 15, %v4687_v9  ;;  %v531_v61 = vcvt.s32.f32 %v515_v56  ;;  %v449_v40 = vand.u32 15, %v4691_v27  ;;  %v3828_v44 = vld [vmem:[%s4782_s8 + $0xe4] sm:$0xf0]  ;;  %v3824_v45 = vld [vmem:[%s4782_s8 + $0xcc] sm:$0xf] }
 0x177   : > { %2349 = vmatpush.bf16.msrb.mxu0 %v3356_v51  ;;  %2362 = vmatpush.bf16.msrb.mxu1 %v3360_v52  ;;  %v532_v33 = vcvt.s32.f32 %v516_v57  ;;  %v450_v62 = vand.u32 15, %v4695_v47  ;;  %v3363_v4 = vld [vmem:[#allocation2 + $0x98] sm:$0xf]  ;;  %v3690_v11 = vld [vmem:[#allocation2 + $0x9c] sm:$0xf]  ;;  %v443_v14 = vand.u32 15, %v4699_v53  ;;  %v3632_v48 = vor.u32 %v3823_v6, %v3629_v34 }
 0x178   : > { %v536_v5 = vpack.c.bf16 %v524_v8, %v523_v32  ;;  %v458_v13 = vcvt.s32.f32 %v442_v10  ;;  %v3694_v15 = vld [vmem:[#allocation2 + $0xb4] sm:$0xf0]  ;;  %v3365_v16 = vld [vmem:[#allocation2 + $0xb8] sm:$0xf0]  ;;  %v465_v17 = vcvt.s32.f32 %v449_v40  ;;  %v444_v50 = vand.u32 15, %v4702_v63 }
 0x179   : > { %v540_v0 = vpack.c.bf16 %v532_v33, %v531_v61  ;;  %v466_v9 = vcvt.s32.f32 %v450_v62  ;;  %v3364_v19 = vor.u32 %v3694_v15, %v3363_v4  ;;  %v3368_v58 = vor.u32 %v3690_v11, %v3365_v16  ;;  %v3637_v46 = vld [vmem:[%s4782_s8 + $0xe8] sm:$0xf0]  ;;  %v3595_v52 = vld [vmem:[%s4782_s8 + $0x80] sm:$0xf]  ;;  %v3815_v57 = vld [vmem:[%s4782_s8 + $0x84] sm:$0xf] }
 0x17a   : > { %544 = vst [vmem:[#allocation2 + $0x58] sm:$0xff] %v536_v5  ;;  %v471_v27 = vpack.c.bf16 %v458_v13, %v457_v12  ;;  %v451_v47 = vand.u32 15, %v4705_v54  ;;  %v452_v55 = vand.u32 15, %v4711_v41  ;;  %v459_v21 = vcvt.s32.f32 %v443_v14  ;;  %v3627_v41 = vld [vmem:[%s4782_s8 + $0xc0] sm:$0xf] }
 0x17b   : > { %548 = vst [vmem:[#allocation2 + $0x78] sm:$0xff] %v540_v0  ;;  %v475_v20 = vpack.c.bf16 %v466_v9, %v465_v17  ;;  %v460_v22 = vcvt.s32.f32 %v444_v50  ;;  %2375 = vmatpush.bf16.msrb.mxu2 %v3364_v19  ;;  %2388 = vmatpush.bf16.msrb.mxu3 %v3368_v58  ;;  %v3323_v53 = vld [vmem:[#allocation2 + $0x50] sm:$0xf]  ;;  %v3681_v23 = vld [vmem:[#allocation2 + $0x54] sm:$0xf]  ;;  %v3628_v3 = vor.u32 %v3827_v31, %v3627_v41  ;;  %v4826_v41 = vpop.f32.mrf.mxu3  ;;  %vm2771_vm2 = vcmask 1040384  }
 0x17c   : > { %479 = vst [vmem:[#allocation2 + $0x10] sm:$0xff] %v471_v27  ;;  %v467_v24 = vcvt.s32.f32 %v451_v47  ;;  %v3685_v63 = vld [vmem:[#allocation2 + $0x6c] sm:$0xf0]  ;;  %v3325_v7 = vld [vmem:[#allocation2 + $0x70] sm:$0xf0]  ;;  %v468_v25 = vcvt.s32.f32 %v452_v55  ;;  %v3636_v40 = vor.u32 %v3828_v44, %v3635_v43  ;;  %v3640_v62 = vor.u32 %v3824_v45, %v3637_v46 }
 0x17d   : > { %483 = vst [vmem:[#allocation2 + $0x30] sm:$0xff] %v475_v20  ;;  %v472_v29 = vpack.c.bf16 %v460_v22, %v459_v21  ;;  %v3324_v30 = vor.u32 %v3685_v63, %v3323_v53  ;;  %v3328_v54 = vor.u32 %v3681_v23, %v3325_v7  ;;  %v3819_v56 = vld [vmem:[%s4782_s8 + $0x9c] sm:$0xf0]  ;;  %v3597_v60 = vld [vmem:[%s4782_s8 + $0xa0] sm:$0xf0]  ;;  %v4817_v7 = vpop.f32.mrf.mxu0  ;;  %vm2773_vm3 = vcmask 1042434  }
 0x17e   : > { %v476_v59 = vpack.c.bf16 %v468_v25, %v467_v24  ;;  %v3603_v10 = vld [vmem:[%s4782_s8 + $0x88] sm:$0xf]  ;;  %v3816_v12 = vld [vmem:[%s4782_s8 + $0x8c] sm:$0xf]  ;;  %v3596_v14 = vor.u32 %v3819_v56, %v3595_v52  ;;  %v3600_v15 = vor.u32 %v3815_v57, %v3597_v60  ;;  %v3563_v16 = vld [vmem:[%s4782_s8 + $0x40] sm:$0xf]  ;;  %v4819_v25 = vpop.f32.mrf.mxu1 }
 0x17f   : > { %480 = vst [vmem:[#allocation2 + $0x18] sm:$0xff] %v472_v29  ;;  %2350 = vmatpush.bf16.msrb.mxu0 %v3324_v30  ;;  %2363 = vmatpush.bf16.msrb.mxu1 %v3328_v54  ;;  %v3820_v4 = vld [vmem:[%s4782_s8 + $0xa4] sm:$0xf0]  ;;  %v3605_v13 = vld [vmem:[%s4782_s8 + $0xa8] sm:$0xf0]  ;;  %vm2778_vm4 = vcmask 1046534  }
 0x180   : > { %484 = vst [vmem:[#allocation2 + $0x38] sm:$0xff] %v476_v59  ;;  %v3811_v0 = vld [vmem:[%s4782_s8 + $0x5c] sm:$0xf0]  ;;  %v3807_v17 = vld [vmem:[%s4782_s8 + $0x44] sm:$0xf]  ;;  %v3604_v50 = vor.u32 %v3820_v4, %v3603_v10  ;;  %v3608_v19 = vor.u32 %v3816_v12, %v3605_v13  ;;  %v4824_v59 = vpop.f32.mrf.mxu2  ;;  %vm2776_vm5 = vcmask 1044484  }
 0x181   : > { %v3331_v35 = vld [vmem:[#allocation2 + $0x58] sm:$0xf]  ;;  %v3682_v36 = vld [vmem:[#allocation2 + $0x5c] sm:$0xf]  ;;  %v3565_v9 = vld [vmem:[%s4782_s8 + $0x60] sm:$0xf0]  ;;  %v3564_v55 = vor.u32 %v3811_v0, %v3563_v16 }
 0x182   : > { %v3686_v37 = vld [vmem:[#allocation2 + $0x74] sm:$0xf0]  ;;  %v3333_v38 = vld [vmem:[#allocation2 + $0x78] sm:$0xf0]  ;;  %v3571_v58 = vld [vmem:[%s4782_s8 + $0x48] sm:$0xf]  ;;  %v3568_v21 = vor.u32 %v3807_v17, %v3565_v9 }
 0x183   : > { %v3332_v39 = vor.u32 %v3686_v37, %v3331_v35  ;;  %v3336_v18 = vor.u32 %v3682_v36, %v3333_v38  ;;  %v3291_v42 = vld [vmem:[#allocation2 + $0x10] sm:$0xf]  ;;  %v3673_v1 = vld [vmem:[#allocation2 + $0x14] sm:$0xf]  ;;  %v3812_v27 = vld [vmem:[%s4782_s8 + $0x64] sm:$0xf0]  ;;  %v1918_v4 = vpop.f32.mrf.mxu3 }
 0x184   : > { %v3677_v2 = vld [vmem:[#allocation2 + $0x2c] sm:$0xf0]  ;;  %v3293_v28 = vld [vmem:[#allocation2 + $0x30] sm:$0xf0]  ;;  %v3531_v22 = vld [vmem:[%s4782_s8] sm:$0xf] }
 0x185   : > { %2376 = vmatpush.bf16.msrb.mxu2 %v3332_v39  ;;  %2389 = vmatpush.bf16.msrb.mxu3 %v3336_v18  ;;  %v3292_v49 = vor.u32 %v3677_v2, %v3291_v42  ;;  %v3296_v51 = vor.u32 %v3673_v1, %v3293_v28  ;;  %v3808_v47 = vld [vmem:[%s4782_s8 + $0x4c] sm:$0xf]  ;;  %v3803_v53 = vld [vmem:[%s4782_s8 + $0x1c] sm:$0xf0]  ;;  %v3799_v23 = vld [vmem:[%s4782_s8 + $0x4] sm:$0xf] }
 0x186   : > { %v3299_v32 = vld [vmem:[#allocation2 + $0x18] sm:$0xf]  ;;  %v3674_v8 = vld [vmem:[#allocation2 + $0x1c] sm:$0xf]  ;;  %v3573_v20 = vld [vmem:[%s4782_s8 + $0x68] sm:$0xf0]  ;;  %v3532_v37 = vor.u32 %v3803_v53, %v3531_v22  ;;  %v1892_v60 = vpop.f32.mrf.mxu1 }
 0x187   : > { %2351 = vmatpush.bf16.msrb.mxu0 %v3292_v49  ;;  %2364 = vmatpush.bf16.msrb.mxu1 %v3296_v51  ;;  %v3678_v61 = vld [vmem:[#allocation2 + $0x34] sm:$0xf0]  ;;  %v3301_v33 = vld [vmem:[#allocation2 + $0x38] sm:$0xf0]  ;;  %v3533_v24 = vld [vmem:[%s4782_s8 + $0x20] sm:$0xf0]  ;;  %v3576_v31 = vor.u32 %v3808_v47, %v3573_v20 }
 0x188   : > { %v3300_v11 = vor.u32 %v3678_v61, %v3299_v32  ;;  %v3304_v5 = vor.u32 %v3674_v8, %v3301_v33  ;;  %v3643_v63 = vld [vmem:[%s4782_s8 + $0xd0] sm:$0xf]  ;;  %v3825_v30 = vld [vmem:[%s4782_s8 + $0xd4] sm:$0xf]  ;;  %v3539_v6 = vld [vmem:[%s4782_s8 + $0x8] sm:$0xf]  ;;  %v3536_v38 = vor.u32 %v3799_v23, %v3533_v24  ;;  %v1879_v8 = vpop.f32.mrf.mxu0 }
 0x189   : > { %v3829_v29 = vld [vmem:[%s4782_s8 + $0xec] sm:$0xf0]  ;;  %v3645_v54 = vld [vmem:[%s4782_s8 + $0xf0] sm:$0xf0]  ;;  %v3804_v34 = vld [vmem:[%s4782_s8 + $0x24] sm:$0xf0] }
 0x18a   : > { %2352 = vmatmul.bf16.vlgmr.msrb.gmra.mxu0 %v4721_v26  ;;  %2365 = vmatmul.bf16.vlgmr.msrb.gmra.mxu1 %v4721_v26  ;;  %v3800_v35 = vld [vmem:[%s4782_s8 + $0xc] sm:$0xf]  ;;  %v3651_v39 = vld [vmem:[%s4782_s8 + $0xd8] sm:$0xf]  ;;  %v3826_v42 = vld [vmem:[%s4782_s8 + $0xdc] sm:$0xf]  ;;  %v3644_v43 = vor.u32 %v3829_v29, %v3643_v63  ;;  %v3648_v44 = vor.u32 %v3825_v30, %v3645_v54  ;;  %v3540_v2 = vor.u32 %v3804_v34, %v3539_v6 }
 0x18b   : > { %2654 = vmatpush.bf16.msra.mxu0 %v3628_v3  ;;  %2667 = vmatpush.bf16.msra.mxu1 %v3632_v48  ;;  %v3541_v36 = vld [vmem:[%s4782_s8 + $0x28] sm:$0xf0]  ;;  %v3830_v18 = vld [vmem:[%s4782_s8 + $0xf4] sm:$0xf0]  ;;  %v3653_v1 = vld [vmem:[%s4782_s8 + $0xf8] sm:$0xf0] }
 0x18c   : > { %2377 = vmatpush.bf16.msrb.mxu2 %v3300_v11  ;;  %2390 = vmatpush.bf16.msrb.mxu3 %v3304_v5  ;;  %v3611_v45 = vld [vmem:[%s4782_s8 + $0x90] sm:$0xf]  ;;  %v3544_v28 = vor.u32 %v3800_v35, %v3541_v36  ;;  %v3817_v3 = vld [vmem:[%s4782_s8 + $0x94] sm:$0xf]  ;;  %v3652_v49 = vor.u32 %v3830_v18, %v3651_v39  ;;  %v3656_v51 = vor.u32 %v3826_v42, %v3653_v1  ;;  %v3619_v52 = vld [vmem:[%s4782_s8 + $0x98] sm:$0xf] }
 0x18d   : > { %v3821_v46 = vld [vmem:[%s4782_s8 + $0xac] sm:$0xf0]  ;;  %v3613_v48 = vld [vmem:[%s4782_s8 + $0xb0] sm:$0xf0]  ;;  %v3822_v56 = vld [vmem:[%s4782_s8 + $0xb4] sm:$0xf0] }
 0x18e   : > { %v3818_v57 = vld [vmem:[%s4782_s8 + $0x9c] sm:$0xf]  ;;  %v3612_v61 = vor.u32 %v3821_v46, %v3611_v45  ;;  %v3616_v33 = vor.u32 %v3817_v3, %v3613_v48  ;;  %v3813_v11 = vld [vmem:[%s4782_s8 + $0x6c] sm:$0xf0]  ;;  %v3809_v5 = vld [vmem:[%s4782_s8 + $0x54] sm:$0xf]  ;;  %v3620_v13 = vor.u32 %v3822_v56, %v3619_v52  ;;  %v4872_v63 = vpop.f32.mrf.mxu1 }
 0x18f   : > { %2655 = vmatpush.bf16.msra.mxu0 %v3596_v14  ;;  %2668 = vmatpush.bf16.msra.mxu1 %v3600_v15  ;;  %v3621_v32 = vld [vmem:[%s4782_s8 + $0xb8] sm:$0xf0]  ;;  %v3581_v12 = vld [vmem:[%s4782_s8 + $0x70] sm:$0xf0]  ;;  %v3587_v15 = vld [vmem:[%s4782_s8 + $0x58] sm:$0xf] }
 0x190   : > { %2680 = vmatpush.bf16.msra.mxu2 %v3636_v40  ;;  %2693 = vmatpush.bf16.msra.mxu3 %v3640_v62  ;;  %v4844_v10 = vld [vmem:[#allocation6] sm:$0x1]  ;;  %v3579_v40 = vld [vmem:[%s4782_s8 + $0x50] sm:$0xf]  ;;  %v1905_v62 = vpop.f32.mrf.mxu2  ;;  %v3624_v14 = vor.u32 %v3818_v57, %v3621_v32  ;;  %v3814_v16 = vld [vmem:[%s4782_s8 + $0x74] sm:$0xf0]  ;;  %v4870_v24 = vpop.f32.mrf.mxu0 }
 0x191   : > { %2378 = vmatmul.bf16.vlgmr.msrb.gmra.mxu2 %v4721_v26  ;;  %2391 = vmatmul.bf16.vlgmr.msrb.gmra.mxu3 %v4721_v26  ;;  %v3572_v26 = vor.u32 %v3812_v27, %v3571_v58  ;;  %v3810_v0 = vld [vmem:[%s4782_s8 + $0x5c] sm:$0xf]  ;;  %v3580_v9 = vor.u32 %v3813_v11, %v3579_v40  ;;  %v3805_v58 = vld [vmem:[%s4782_s8 + $0x2c] sm:$0xf0]  ;;  %v3801_v27 = vld [vmem:[%s4782_s8 + $0x14] sm:$0xf]  ;;  %v3588_v20 = vor.u32 %v3814_v16, %v3587_v15 }
 0x192   : > { %v3589_v17 = vld [vmem:[%s4782_s8 + $0x78] sm:$0xf0]  ;;  %v3549_v47 = vld [vmem:[%s4782_s8 + $0x30] sm:$0xf0]  ;;  %v3806_v22 = vld [vmem:[%s4782_s8 + $0x34] sm:$0xf0] }
 0x193   : > { %2656 = vmatpush.bf16.msra.mxu0 %v3564_v55  ;;  %2669 = vmatpush.bf16.msra.mxu1 %v3568_v21  ;;  %v3592_v55 = vor.u32 %v3810_v0, %v3589_v17  ;;  %v3555_v21 = vld [vmem:[%s4782_s8 + $0x18] sm:$0xf]  ;;  %v3802_v53 = vld [vmem:[%s4782_s8 + $0x1c] sm:$0xf]  ;;  %v3552_v30 = vor.u32 %v3801_v27, %v3549_v47  ;;  %vm2780_vm6 = vcmask 1045508   ;;  %vm2782_vm7 = vcmask 1043456  }
 0x194   : > { %2681 = vmatpush.bf16.msra.mxu2 %v3604_v50  ;;  %2694 = vmatpush.bf16.msra.mxu3 %v3608_v19  ;;  %v3584_v50 = vor.u32 %v3809_v5, %v3581_v12  ;;  %v3547_v19 = vld [vmem:[%s4782_s8 + $0x10] sm:$0xf]  ;;  %v3557_v23 = vld [vmem:[%s4782_s8 + $0x38] sm:$0xf0] }
 0x195   : > { %v3548_v29 = vor.u32 %v3805_v58, %v3547_v19  ;;  %v3560_v6 = vor.u32 %v3802_v53, %v3557_v23 }
 0x196   : > { %v1944_v35 = vpop.f32.mrf.mxu1 }
 0x197   : > { %2657 = vmatpush.bf16.msra.mxu0 %v3532_v37  ;;  %2670 = vmatpush.bf16.msra.mxu1 %v3536_v38 }
 0x198   : > { %2682 = vmatpush.bf16.msra.mxu2 %v3572_v26  ;;  %2695 = vmatpush.bf16.msra.mxu3 %v3576_v31  ;;  %v4874_v54 = vpop.f32.mrf.mxu2  ;;  %v4876_v26 = vpop.f32.mrf.mxu3  ;;  %v3556_v31 = vor.u32 %v3806_v22, %v3555_v21 }
 0x199   : > { %v1931_v34 = vpop.f32.mrf.mxu0 }
 0x19a   : > { %3657 = vmatmul.msk.bf16.vlgmr.msra.gmra.mxu0 %vm2646_vm0, %v4844_v10  ;;  %3658 = vmatmul.msk.bf16.vlgmr.msra.gmra.mxu1 %vm2646_vm0, %v4844_v10 }
 0x19b   : > { %2706 = vmatpush.bf16.msrb.mxu0 %v3644_v43  ;;  %2719 = vmatpush.bf16.msrb.mxu1 %v3648_v44 }
 0x19c   : > { %2683 = vmatpush.bf16.msra.mxu2 %v3540_v2  ;;  %2696 = vmatpush.bf16.msra.mxu3 %v3544_v28 }
 0x19f   : > { %2707 = vmatpush.bf16.msrb.mxu0 %v3612_v61  ;;  %2720 = vmatpush.bf16.msrb.mxu1 %v3616_v33 }
 0x1a0   : > { %2732 = vmatpush.bf16.msrb.mxu2 %v3652_v49  ;;  %2745 = vmatpush.bf16.msrb.mxu3 %v3656_v51  ;;  %v1957_v36 = vpop.f32.mrf.mxu2  ;;  %v1970_v37 = vpop.f32.mrf.mxu3 }
 0x1a1   : > { %3659 = vmatmul.msk.bf16.vlgmr.msra.gmra.mxu2 %vm2646_vm0, %v4844_v10  ;;  %3660 = vmatmul.msk.bf16.vlgmr.msra.gmra.mxu3 %vm2646_vm0, %v4844_v10 }
 0x1a3   : > { %2708 = vmatpush.bf16.msrb.mxu0 %v3580_v9  ;;  %2721 = vmatpush.bf16.msrb.mxu1 %v3584_v50 }
 0x1a4   : > { %2733 = vmatpush.bf16.msrb.mxu2 %v3620_v13  ;;  %2746 = vmatpush.bf16.msrb.mxu3 %v3624_v14 }
 0x1a7   : > { %2709 = vmatpush.bf16.msrb.mxu0 %v3548_v29  ;;  %2722 = vmatpush.bf16.msrb.mxu1 %v3552_v30 }
 0x1a8   : > { %2734 = vmatpush.bf16.msrb.mxu2 %v3588_v20  ;;  %2747 = vmatpush.bf16.msrb.mxu3 %v3592_v55 }
 0x1aa   : > { %3661 = vmatmul.msk.bf16.vlgmr.msrb.gmra.mxu0 %vm2646_vm0, %v4844_v10  ;;  %3662 = vmatmul.msk.bf16.vlgmr.msrb.gmra.mxu1 %vm2646_vm0, %v4844_v10 }
 0x1ac   : > { %2735 = vmatpush.bf16.msrb.mxu2 %v3556_v31  ;;  %2748 = vmatpush.bf16.msrb.mxu3 %v3560_v6 }
 0x1b1   : > { %3663 = vmatmul.msk.bf16.vlgmr.msrb.gmra.mxu2 %vm2646_vm0, %v4844_v10  ;;  %3664 = vmatmul.msk.bf16.vlgmr.msrb.gmra.mxu3 %vm2646_vm0, %v4844_v10 }
 0x1c3   : > { %v2301_v38 = vpop.f32.mrf.mxu0  ;;  %v2314_v39 = vpop.f32.mrf.mxu1 }
 0x1c4   : > { %v2302_v18 = vadd.f32 %v2301_v38, %v4817_v7  ;;  %v2315_v42 = vadd.f32 %v2314_v39, %v4819_v25 }
 0x1c6   : > { %v2404_v1 = vsel %vm2396_vm1, %v2315_v42, 0.0  ;;  %v2397_v43 = vsel %vm2396_vm1, %v2302_v18, 0.0 }
 0x1c7   : > { %v2405_v44 = vrot.slane %v2404_v1, 4  ;;  %v2398_v2 = vrot.slane %v2397_v43, 4 }
 0x1c9   : > { %v2406_v45 = vadd.f32 %v2405_v44, %v2404_v1  ;;  %v2399_v51 = vadd.f32 %v2398_v2, %v2397_v43 }
 0x1cb   : > { %v2303_v28 = vpop.f32.mrf.mxu0  ;;  %v2316_v46 = vpop.f32.mrf.mxu1  ;;  %v2407_v3 = vrot.slane %v2406_v45, 2  ;;  %v2400_v60 = vrot.slane %v2399_v51, 2 }
 0x1cd   : > { %v2327_v48 = vpop.f32.mrf.mxu2  ;;  %v2340_v49 = vpop.f32.mrf.mxu3  ;;  %v2408_v7 = vadd.f32 %v2407_v3, %v2406_v45  ;;  %v2401_v5 = vadd.f32 %v2400_v60, %v2399_v51 }
 0x1ce   : > { %v2328_v52 = vadd.f32 %v2327_v48, %v4824_v59  ;;  %v2341_v56 = vadd.f32 %v2340_v49, %v4826_v41 }
 0x1cf   : > { %v2409_v33 = vrot.slane %v2408_v7, 1  ;;  %v2402_v41 = vrot.slane %v2401_v5, 1 }
 0x1d0   : > { %v2411_v25 = vsel %vm2396_vm1, %v2328_v52, 0.0  ;;  %v2418_v57 = vsel %vm2396_vm1, %v2341_v56, 0.0 }
 0x1d1   : > { %v2412_v32 = vrot.slane %v2411_v25, 4  ;;  %v2419_v8 = vrot.slane %v2418_v57, 4  ;;  %v2410_v13 = vadd.f32 %v2409_v33, %v2408_v7  ;;  %v2403_v0 = vadd.f32 %v2402_v41, %v2401_v5 }
 0x1d3   : > { %v2413_v10 = vadd.f32 %v2412_v32, %v2411_v25  ;;  %v2420_v61 = vadd.f32 %v2419_v8, %v2418_v57  ;;  %v2764_v16 = vrot.slane %v2410_v13, 7 }
 0x1d5   : > { %v2414_v40 = vrot.slane %v2413_v10, 2  ;;  %v2421_v62 = vrot.slane %v2420_v61, 2  ;;  %v2329_v4 = vpop.f32.mrf.mxu2  ;;  %v2342_v11 = vpop.f32.mrf.mxu3  ;;  %v2772_v50 = vsel %vm2771_vm2, %v2403_v0, %v2764_v16 }
 0x1d7   : > { %v2415_v12 = vadd.f32 %v2414_v40, %v2413_v10  ;;  %v2422_v59 = vadd.f32 %v2421_v62, %v2420_v61 }
 0x1d9   : > { %v2416_v14 = vrot.slane %v2415_v12, 1  ;;  %v2423_v15 = vrot.slane %v2422_v59, 1 }
 0x1db   : > { %v2417_v17 = vadd.f32 %v2416_v14, %v2415_v12  ;;  %v2424_v9 = vadd.f32 %v2423_v15, %v2422_v59 }
 0x1dd   : > { %v2765_v19 = vrot.slane %v2417_v17, 6  ;;  %v2766_v58 = vrot.slane %v2424_v9, 5 }
 0x1df   : > { %v2774_v27 = vsel %vm2773_vm3, %v2765_v19, %v2766_v58 }
 0x1e0   : > { %v4897_v47 = vsel %vm2396_vm1, %v2772_v50, %v2774_v27  ;;  %v2755_v27 = vld [vmem:[%s347_s26] sm:$0xff] }
 0x207   : > { %v2353_v20 = vpop.f32.mrf.mxu0  ;;  %v2366_v55 = vpop.f32.mrf.mxu1 }
 0x208   : > { %v2354_v21 = vadd.f32 %v2353_v20, %v4870_v24  ;;  %v2367_v22 = vadd.f32 %v2366_v55, %v4872_v63 }
 0x20a   : > { %v2425_v53 = vsel %vm2396_vm1, %v2354_v21, 0.0  ;;  %v2432_v23 = vsel %vm2396_vm1, %v2367_v22, 0.0 }
 0x20b   : > { %v2426_v29 = vrot.slane %v2425_v53, 4  ;;  %v2433_v30 = vrot.slane %v2432_v23, 4 }
 0x20d   : > { %v2427_v36 = vadd.f32 %v2426_v29, %v2425_v53  ;;  %v2434_v37 = vadd.f32 %v2433_v30, %v2432_v23 }
 0x20f   : > { %v2355_v31 = vpop.f32.mrf.mxu0  ;;  %v2368_v6 = vpop.f32.mrf.mxu1  ;;  %v2428_v1 = vrot.slane %v2427_v36, 2  ;;  %v2435_v43 = vrot.slane %v2434_v37, 2 }
 0x210   : > { %v2754_v6 = vld [vmem:[%s357_s0] sm:$0xff] }
 0x211   : > { %v2429_v51 = vadd.f32 %v2428_v1, %v2427_v36 }
 0x213   : > { %v2430_v25 = vrot.slane %v2429_v51, 1 }
 0x214   : > { %v2379_v34 = vpop.f32.mrf.mxu2  ;;  %v2392_v35 = vpop.f32.mrf.mxu3 }
 0x215   : > { %v2380_v38 = vadd.f32 %v2379_v34, %v4874_v54  ;;  %v2393_v39 = vadd.f32 %v2392_v35, %v4876_v26  ;;  %v2436_v54 = vadd.f32 %v2435_v43, %v2434_v37  ;;  %v2431_v40 = vadd.f32 %v2430_v25, %v2429_v51 }
 0x217   : > { %v2439_v24 = vsel %vm2396_vm1, %v2380_v38, 0.0  ;;  %v2446_v63 = vsel %vm2396_vm1, %v2393_v39, 0.0  ;;  %v2659_v2 = vpop.f32.mrf.mxu0  ;;  %v2672_v28 = vpop.f32.mrf.mxu1  ;;  %v2437_v57 = vrot.slane %v2436_v54, 1  ;;  %v2767_v5 = vrot.slane %v2431_v40, 4 }
 0x218   : > { %v2440_v18 = vrot.slane %v2439_v24, 4  ;;  %v2447_v42 = vrot.slane %v2446_v63, 4  ;;  %v2795_v21 = vrot.slane %v2672_v28, 7 }
 0x219   : > { %v2438_v62 = vadd.f32 %v2437_v57, %v2436_v54 }
 0x21a   : > { %v2441_v44 = vadd.f32 %v2440_v18, %v2439_v24  ;;  %v2448_v45 = vadd.f32 %v2447_v42, %v2446_v63  ;;  %v2802_v34 = vsel %vm2771_vm2, %v2659_v2, %v2795_v21 }
 0x21b   : > { %v2768_v12 = vrot.slane %v2438_v62, 3 }
 0x21c   : > { %v2442_v46 = vrot.slane %v2441_v44, 2  ;;  %v2449_v3 = vrot.slane %v2448_v45, 2  ;;  %v2381_v48 = vpop.f32.mrf.mxu2  ;;  %v2394_v49 = vpop.f32.mrf.mxu3 }
 0x21d   : > { %v2777_v16 = vsel %vm2776_vm5, %v2767_v5, %v2768_v12 }
 0x21e   : > { %v2443_v52 = vadd.f32 %v2442_v46, %v2441_v44  ;;  %v2450_v26 = vadd.f32 %v2449_v3, %v2448_v45 }
 0x21f   : > { %v2661_v32 = vpop.f32.mrf.mxu0  ;;  %v2674_v8 = vpop.f32.mrf.mxu1 }
 0x220   : > { %v2444_v56 = vrot.slane %v2443_v52, 1  ;;  %v2451_v7 = vrot.slane %v2450_v26, 1 }
 0x222   : > { %v2445_v60 = vadd.f32 %v2444_v56, %v2443_v52  ;;  %v2452_v10 = vadd.f32 %v2451_v7, %v2450_v26 }
 0x224   : > { %v2685_v61 = vpop.f32.mrf.mxu2  ;;  %v2698_v33 = vpop.f32.mrf.mxu3  ;;  %v2769_v4 = vrot.slane %v2445_v60, 2  ;;  %v2770_v11 = vrot.slane %v2452_v10, 1 }
 0x225   : > { %v2796_v17 = vrot.slane %v2685_v61, 6  ;;  %v2797_v9 = vrot.slane %v2698_v33, 5 }
 0x226   : > { %v2779_v41 = vsel %vm2778_vm4, %v2769_v4, %v2770_v11 }
 0x227   : > { %v2711_v59 = vpop.f32.mrf.mxu0  ;;  %v2724_v13 = vpop.f32.mrf.mxu1  ;;  %v2781_v0 = vsel %vm2780_vm6, %v2777_v16, %v2779_v41  ;;  %v2803_v29 = vsel %vm2773_vm3, %v2796_v17, %v2797_v9 }
 0x228   : > { %v2798_v50 = vrot.slane %v2711_v59, 4  ;;  %v2799_v19 = vrot.slane %v2724_v13, 3  ;;  %v2783_v58 = vsel %vm2782_vm7, %v4897_v47, %v2781_v0  ;;  %v2804_v36 = vsel %vm2396_vm1, %v2802_v34, %v2803_v29 }
 0x229   : > { %v2785_v23 = vmul.f32 %v2783_v58, %v2755_v27 }
 0x22a   : > { %v2805_v30 = vsel %vm2776_vm5, %v2798_v50, %v2799_v19 }
 0x22b   : > { %v2786_v38 = vadd.f32 %v2785_v23, %v2754_v6 }
 0x22c   : > { %v2687_v14 = vpop.f32.mrf.mxu2  ;;  %v2700_v15 = vpop.f32.mrf.mxu3 }
 0x22f   : > { %v2713_v20 = vpop.f32.mrf.mxu0  ;;  %v2726_v55 = vpop.f32.mrf.mxu1 }
 0x234   : > { %v2737_v22 = vpop.f32.mrf.mxu2  ;;  %v2750_v53 = vpop.f32.mrf.mxu3 }
 0x235   : > { %v2800_v31 = vrot.slane %v2737_v22, 2  ;;  %v2801_v47 = vrot.slane %v2750_v53, 1 }
 0x237   : > { %v2806_v35 = vsel %vm2778_vm4, %v2800_v31, %v2801_v47 }
 0x238   : > { %v2807_v37 = vsel %vm2780_vm6, %v2805_v30, %v2806_v35 }
 0x239   : > { %v2808_v39 = vsel %vm2782_vm7, %v2804_v36, %v2807_v37 }
 0x23a   : > { %v2810_v24 = vadd.f32 %v2808_v39, %v2786_v38 }
 0x23c   : > { %v2739_v63 = vpop.f32.mrf.mxu2  ;;  %v2752_v18 = vpop.f32.mrf.mxu3  ;;  %2811 = vst [vmem:[%s411_s25] sm:$0xff] %v2810_v24 }
 0x23d   : > { %4127 = shalt.err (!%p4124_p10)
}
 0x23e   : > { %3847 = dma.vmem_to_hbm [thread:$0]  (%p4272_p11), %s2826_s14, 128, %s2828_s12, %s2813_s28  }
 0x23f PF: > { %s4995_s16 = sld [smem:[#allocation17_spill]]  ;;  %p4997_p0 = scmp.ge.s32.totalorder %s4174_s24, 2 }
 0x241   : > { %p3870_p8 = pnand %p4997_p0, %p4276_p12 }
 0x243   : > { %p3871_p3 = pneg %p3870_p8 }
 0x245   : > { %s2839_s19 = sand.u32 1, %s4995_s16  }
 0x246   : > { %s2840_s8 = scalar_lea.sflag [#allocation5], %s2839_s19 }
 0x247   : > { %4157 = dma.done.wait (%p3871_p3), %s2840_s8, 128  }
 0x248   : > { %4159 = vsyncadd (%p3871_p3), %s2840_s8, 4294967168  ;;  %s4998_s24 = sld [smem:[#allocation18_spill]]  ;;  %s5000_s21 = smov %s4166_s22 }
 0x249   : > { %s4999_s27 = sld [smem:[#allocation19_spill]]  ;;  %s5001_s22 = smov %s4170_s23 }
 0x24e   : > { %p18_p4 = scmp.ge.s32.totalorder %s4998_s24, 4  }
 0x24f   : > { %s5002_s23 = smov %s4999_s27 }
 0x250   :  { %20 = sbr.rel (!%p18_p4) target bundleno = 8 (0x8), region = 133 }
 0x255   :  { %2846 = vsyncpa [#allocation4], 1 }
 0x256   :  { %2848 = vsyncpa [#allocation4 + $0x1], 1 }
 0x257   :  { %2849 = vsyncpa [#allocation7], 1 }
 0x258   :  { %2850 = vsyncpa [#allocation5], 1 }
 0x259   :  { %2852 = vsyncpa [#allocation5 + $0x1], 1 }

</bundles_post_ra>
